<compile_context>
chip_gen: v7x
topology: tpu7x:2x2x1
jax: 0.10.0
libtpu: 0.0.40
codegen_flags: <defaults>
</compile_context>

<pallas_src>
import functools

import numpy as np
import jax
import jax.numpy as jnp
from jax.experimental import pallas as pl
from jax.experimental.pallas import tpu as pltpu

EPS = 1e-5
MXU_OPERAND_DTYPE = jnp.bfloat16   # MXU-native; accumulation & BN stats stay f32


def choose_fold(h, w, cm):
    """Fold factor F: pack F image rows into the lane axis so F*W*cm hits a
    multiple of 128 (full lane width) when the shapes allow it."""
    f = 1
    while (f * w * cm) % 128 != 0 and h % (2 * f) == 0:
        f *= 2
    return f


# ----------------------------------------------------------------------------
# Kernel
# ----------------------------------------------------------------------------
def make_elan_kernel(n, h, w, cin, cm, cout, fold):
    rows = (n * h) // fold            # sublane axis: one folded row group per row
    h_sub = h // fold                 # folded rows per image
    count = float(n * h * w)          # BatchNorm2d population size per channel
    lm = fold * w * cm                # lane width of mid-stage activations

    def kernel(x_ref, w11_ref, w33_ref, wf_ref, gm_ref, bm_ref, gf_ref, bf_ref,
               jm_ref, jf_ref, o_ref):

        def mm(a, b):                 # conv matmuls: bf16 operands, f32 accumulation
            return jnp.dot(a, b, preferred_element_type=jnp.float32)

        def bn_silu(z, gamma_lane, beta_lane, j_ref):
            # nn.BatchNorm2d training-mode forward (batch stats over N, H, W),
            # one-pass: a single tiny f32 matmul against the block-ones matrix J
            # both sums the fold*W channel replicas and broadcasts the result
            # back into lane layout.  Mean is folded into the bias.
            s = jnp.concatenate(
                [jnp.sum(z, axis=0, keepdims=True),
                 jnp.sum(z * z, axis=0, keepdims=True)], axis=0)       # (2, L) f32
            sb = jnp.dot(s, j_ref[...],
                         preferred_element_type=jnp.float32) * (1.0 / count)
            mean = sb[0:1, :]
            var = jnp.maximum(sb[1:2, :] - mean * mean, 0.0)           # E[z^2]-mean^2
            scale = gamma_lane * jax.lax.rsqrt(var + EPS)
            bias = beta_lane - mean * scale
            y = z * scale + bias
            # SiLU with a single EUP op: sigmoid(y) = 0.5*tanh(0.5*y) + 0.5
            return y * (0.5 * jnp.tanh(0.5 * y) + 0.5)

        # Row-validity masks for the cross-(folded-)row taps of the 3x3 convs:
        # rows whose +-1 neighbour row falls outside the image contribute zero
        # (padding); this also prevents leakage across images in the row axis.
        hp = jax.lax.broadcasted_iota(jnp.int32, (rows, lm), 0) % h_sub
        mask_prev = (hp >= 1).astype(jnp.float32)
        mask_next = (hp < h_sub - 1).astype(jnp.float32)

        def conv3x3(z, idx):
            # 3x3 / stride 1 / pad 1 conv = 3 banded matmuls: same-folded-row
            # taps (incl. the vertical taps that stay inside the fold), the
            # previous folded row, and the next folded row.  Horizontal taps +
            # left/right zero padding are baked into the bands.
            base = 3 * idx
            zp = pltpu.roll(z, 1, 0) * mask_prev          # z[r-1], top pad masked
            zn = pltpu.roll(z, rows - 1, 0) * mask_next   # z[r+1], bottom pad masked
            return (mm(zp.astype(MXU_OPERAND_DTYPE), w33_ref[base + 0]) +
                    mm(z.astype(MXU_OPERAND_DTYPE), w33_ref[base + 1]) +
                    mm(zn.astype(MXU_OPERAND_DTYPE), w33_ref[base + 2]))

        x = x_ref[...]                                    # (rows, fold*W*Cin) bf16
        x1 = bn_silu(mm(x, w11_ref[0]), gm_ref[0:1, :], bm_ref[0:1, :], jm_ref)
        x2 = bn_silu(mm(x, w11_ref[1]), gm_ref[1:2, :], bm_ref[1:2, :], jm_ref)
        x3 = bn_silu(conv3x3(x2, 0), gm_ref[2:3, :], bm_ref[2:3, :], jm_ref)
        x4 = bn_silu(conv3x3(x3, 1), gm_ref[3:4, :], bm_ref[3:4, :], jm_ref)
        x5 = bn_silu(conv3x3(x4, 2), gm_ref[4:5, :], bm_ref[4:5, :], jm_ref)
        x6 = bn_silu(conv3x3(x5, 3), gm_ref[5:6, :], bm_ref[5:6, :], jm_ref)

        # final 1x1 conv on concat([x1, x3, x5, x6], channel) as 4 banded bf16
        # matmuls summed — no in-kernel lane concat needed.
        zf = (mm(x1.astype(MXU_OPERAND_DTYPE), wf_ref[0]) +
              mm(x3.astype(MXU_OPERAND_DTYPE), wf_ref[1]) +
              mm(x5.astype(MXU_OPERAND_DTYPE), wf_ref[2]) +
              mm(x6.astype(MXU_OPERAND_DTYPE), wf_ref[3]))
        o_ref[...] = bn_silu(zf, gf_ref[...], bf_ref[...], jf_ref).astype(o_ref.dtype)

    return kernel


# ----------------------------------------------------------------------------
# Host-side parameter construction / one-time packing
# ----------------------------------------------------------------------------
def init_raw_params(key, in_channels, out_channels):
    """Raw parameters in PyTorch layout: conv weights (co, ci, kh, kw), BN gamma/beta."""
    cm = out_channels // 4
    ks = jax.random.split(key, 14)

    def conv_w(k, co, ci, kh, kw):
        fan_in = ci * kh * kw
        return jax.random.normal(k, (co, ci, kh, kw), jnp.float32) / np.sqrt(fan_in)

    raw = dict(
        w1=conv_w(ks[0], cm, in_channels, 1, 1),
        w2=conv_w(ks[1], cm, in_channels, 1, 1),
        w3=conv_w(ks[2], cm, cm, 3, 3),
        w4=conv_w(ks[3], cm, cm, 3, 3),
        w5=conv_w(ks[4], cm, cm, 3, 3),
        w6=conv_w(ks[5], cm, cm, 3, 3),
        wf=conv_w(ks[6], out_channels, 4 * cm, 1, 1),
    )
    for i in range(1, 7):
        raw[f"g{i}"] = 1.0 + 0.1 * jax.random.normal(ks[6 + i], (cm,), jnp.float32)
        raw[f"b{i}"] = 0.1 * jax.random.normal(jax.random.fold_in(ks[6 + i], 1),
                                               (cm,), jnp.float32)
    raw["gf"] = 1.0 + 0.1 * jax.random.normal(ks[13], (out_channels,), jnp.float32)
    raw["bf"] = 0.1 * jax.random.normal(jax.random.fold_in(ks[13], 1),
                                        (out_channels,), jnp.float32)
    return raw


def pack_params(raw, h, w):
    """One-time repack of raw weights into lane-packed (row-folded) band matrices."""
    cm = raw["w3"].shape[0]
    cout = raw["wf"].shape[0]
    fold = choose_fold(h, w, cm)
    fw = fold * w

    def band_1x1(wmat):                     # (co, ci) -> (fold*W*ci, fold*W*co)
        return np.kron(np.eye(fw, dtype=np.float32),
                       np.asarray(wmat, np.float32).T)

    def bands_3x3(wc):
        # (co, ci, 3, 3) -> (3, fold*W*ci, fold*W*co): [prev-row, same-row, next-row]
        wc = np.asarray(wc, np.float32)
        co, ci = wc.shape[0], wc.shape[1]
        bands = np.zeros((3, fw * ci, fw * co), np.float32)
        for pd in range(fold):                           # dest sub-row inside the fold
            for dy in (-1, 0, 1):
                row_off, ps = divmod(pd + dy, fold)      # source folded-row offset / sub-row
                tgt = bands[row_off + 1]
                for kw in range(3):
                    dx = kw - 1
                    tap = wc[:, :, dy + 1, kw].T          # (ci, co)
                    for wi in range(w):                   # destination column
                        ws = wi + dx
                        if 0 <= ws < w:                   # horizontal zero padding baked in
                            tgt[(ps * w + ws) * ci:(ps * w + ws) * ci + ci,
                                (pd * w + wi) * co:(pd * w + wi) * co + co] += tap
        return bands

    w11 = np.stack([band_1x1(np.asarray(raw["w1"])[:, :, 0, 0]),
                    band_1x1(np.asarray(raw["w2"])[:, :, 0, 0])])
    w33 = np.concatenate([bands_3x3(raw[k]) for k in ("w3", "w4", "w5", "w6")], axis=0)
    wfm = np.asarray(raw["wf"], np.float32)[:, :, 0, 0]             # (cout, 4*cm)
    wfb = np.stack([band_1x1(wfm[:, b * cm:(b + 1) * cm]) for b in range(4)])

    def lane_bcast(v):                     # per-channel (c,) -> lane layout (fold*W*c,)
        return np.tile(np.asarray(v, np.float32), fw)

    gm = np.stack([lane_bcast(raw[f"g{i}"]) for i in range(1, 7)])
    bm = np.stack([lane_bcast(raw[f"b{i}"]) for i in range(1, 7)])
    gf = lane_bcast(raw["gf"]).reshape(1, -1)
    bf = lane_bcast(raw["bf"]).reshape(1, -1)

    # Block-ones matrices that fuse "sum over fold*W channel replicas" with the
    # broadcast back to lane layout (one tiny f32 matmul per BN stage).
    jm = np.kron(np.ones((fw, fw), np.float32), np.eye(cm, dtype=np.float32))
    jf = np.kron(np.ones((fw, fw), np.float32), np.eye(cout, dtype=np.float32))

    return dict(
        w11=jnp.asarray(w11, dtype=MXU_OPERAND_DTYPE),  # (2, fW*Cin, fW*cm)
        w33=jnp.asarray(w33, dtype=MXU_OPERAND_DTYPE),  # (12, fW*cm, fW*cm)
        wf=jnp.asarray(wfb, dtype=MXU_OPERAND_DTYPE),   # (4, fW*cm, fW*Cout)
        gm=jnp.asarray(gm), bm=jnp.asarray(bm),         # (6, fW*cm) f32
        gf=jnp.asarray(gf), bf=jnp.asarray(bf),         # (1, fW*Cout) f32
        jm=jnp.asarray(jm), jf=jnp.asarray(jf),         # f32 stats matrices
    )


# ----------------------------------------------------------------------------
# Wrapper
# ----------------------------------------------------------------------------
def elan_block_forward(x_nchw, packed, out_channels):
    n, cin, h, w = x_nchw.shape
    cout = out_channels
    cm = cout // 4
    fold = choose_fold(h, w, cm)
    rows = (n * h) // fold
    lin, lm, lo = fold * w * cin, fold * w * cm, fold * w * cout

    # NCHW -> lane-packed (N*H/fold, fold*W*Cin) in matmul-LHS dtype (bf16).
    x2d = (jnp.transpose(x_nchw, (0, 2, 3, 1))
           .reshape(rows, lin)
           .astype(MXU_OPERAND_DTYPE))

    kernel = make_elan_kernel(n, h, w, cin, cm, cout, fold)

    def fullspec(*shape):
        zeros = (0,) * len(shape)
        return pl.BlockSpec(shape, lambda i, z=zeros: z)

    operands = (x2d, packed["w11"], packed["w33"], packed["wf"],
                packed["gm"], packed["bm"], packed["gf"], packed["bf"],
                packed["jm"], packed["jf"])

    # VMEM budget derived from the actual working set (inputs + output + ~8
    # live activation slabs), clamped to fit every generation's scoped VMEM.
    work_bytes = sum(int(np.prod(a.shape)) * a.dtype.itemsize for a in operands)
    work_bytes += rows * lo * 4 + 8 * rows * lm * 4
    vmem_limit = int(min(max(3 * work_bytes, 16 << 20), 48 << 20))

    out2d = pl.pallas_call(
        kernel,
        out_shape=jax.ShapeDtypeStruct((rows, lo), jnp.float32),
        grid=(1,),
        in_specs=[
            fullspec(rows, lin),
            fullspec(2, lin, lm),
            fullspec(12, lm, lm),
            fullspec(4, lm, lo),
            fullspec(6, lm),
            fullspec(6, lm),
            fullspec(1, lo),
            fullspec(1, lo),
            fullspec(lm, lm),
            fullspec(lo, lo),
        ],
        out_specs=fullspec(rows, lo),
        compiler_params=pltpu.CompilerParams(
            dimension_semantics=("arbitrary",),
            vmem_limit_bytes=vmem_limit),
    )(*operands)

    # lane-packed (rows, fold*W*Cout) -> NCHW
    return jnp.transpose(out2d.reshape(n, h, w, cout), (0, 3, 1, 2))


# ----------------------------------------------------------------------------
# Pure-JAX reference (exact module semantics) for in-script verification
# ----------------------------------------------------------------------------
def _conv_bn_silu_ref(x, wgt, gamma, beta, padding):
    y = jax.lax.conv_general_dilated(
        x, wgt, window_strides=(1, 1),
        padding=[(padding, padding), (padding, padding)],
        dimension_numbers=("NCHW", "OIHW", "NCHW"))
    mu = jnp.mean(y, axis=(0, 2, 3), keepdims=True)
    var = jnp.mean((y - mu) ** 2, axis=(0, 2, 3), keepdims=True)
    yn = gamma.reshape(1, -1, 1, 1) * (y - mu) * jax.lax.rsqrt(var + EPS) \
        + beta.reshape(1, -1, 1, 1)
    return yn * jax.nn.sigmoid(yn)


def elan_ref(x, raw):
    x1 = _conv_bn_silu_ref(x, raw["w1"], raw["g1"], raw["b1"], 0)
    x2 = _conv_bn_silu_ref(x, raw["w2"], raw["g2"], raw["b2"], 0)
    x3 = _conv_bn_silu_ref(x2, raw["w3"], raw["g3"], raw["b3"], 1)
    x4 = _conv_bn_silu_ref(x3, raw["w4"], raw["g4"], raw["b4"], 1)
    x5 = _conv_bn_silu_ref(x4, raw["w5"], raw["g5"], raw["b5"], 1)
    x6 = _conv_bn_silu_ref(x5, raw["w6"], raw["g6"], raw["b6"], 1)
    cc = jnp.concatenate([x1, x3, x5, x6], axis=1)
    return _conv_bn_silu_ref(cc, raw["wf"], raw["gf"], raw["bf"], 0)


# ----------------------------------------------------------------------------
if __name__ == "__main__":
    N, Cin, H, W = 2, 4, 16, 16
    Cout = 16                                   # mid_channels = 4

    key = jax.random.PRNGKey(0)
    kx, kp = jax.random.split(key)
    x = jax.random.normal(kx, (N, Cin, H, W), jnp.float32)

    raw = init_raw_params(kp, Cin, Cout)
    packed = pack_params(raw, H, W)             # one-time host-side repacking

    fwd = jax.jit(functools.partial(elan_block_forward, out_channels=Cout))
    y = fwd(x, packed)
    jax.block_until_ready(y)

    assert y.shape == (N, Cout, H, W), y.shape
    assert bool(jnp.all(jnp.isfinite(y)))

    # Correctness check against the pure-JAX f32 reference of the PyTorch
    # module.  bf16 MXU operands through 7 chained conv+BN+SiLU stages (BN
    # stats and accumulation in f32) => check a mixed relative/absolute error.
    y_ref = elan_ref(x, raw)
    err = float(jnp.max(jnp.abs(y - y_ref) / jnp.maximum(jnp.abs(y_ref), 1.0)))
    assert err < 7.5e-2, f"kernel/reference mismatch: max rel err {err}"

    print("KERNEL_OK")
</pallas_src>

<mosaic_0001>
module attributes {stable_mosaic.version = 11 : i64} {
  func.func @kernel(%arg0: i32, %arg1: memref<16x128xbf16, #tpu.memory_space<vmem>>, %arg2: memref<2x128x128xbf16, #tpu.memory_space<vmem>>, %arg3: memref<12x128x128xbf16, #tpu.memory_space<vmem>>, %arg4: memref<4x128x512xbf16, #tpu.memory_space<vmem>>, %arg5: memref<6x128xf32, #tpu.memory_space<vmem>>, %arg6: memref<6x128xf32, #tpu.memory_space<vmem>>, %arg7: memref<1x512xf32, #tpu.memory_space<vmem>>, %arg8: memref<1x512xf32, #tpu.memory_space<vmem>>, %arg9: memref<128x128xf32, #tpu.memory_space<vmem>>, %arg10: memref<512x512xf32, #tpu.memory_space<vmem>>, %arg11: memref<16x512xf32, #tpu.memory_space<vmem>>) attributes {dimension_semantics = [#tpu.dimension_semantics<arbitrary>], iteration_bounds = array<i64: 1>, scalar_prefetch = 0 : i64, scratch_operands = 0 : i64, tpu.core_type = #tpu.core_type<tc>, window_params = [{pipeline_mode = #tpu.pipeline_mode<synchronous>, transform_indices = @transform_0, window_bounds = array<i64: 16, 128>}, {pipeline_mode = #tpu.pipeline_mode<synchronous>, transform_indices = @transform_1, window_bounds = array<i64: 2, 128, 128>}, {pipeline_mode = #tpu.pipeline_mode<synchronous>, transform_indices = @transform_2, window_bounds = array<i64: 12, 128, 128>}, {pipeline_mode = #tpu.pipeline_mode<synchronous>, transform_indices = @transform_3, window_bounds = array<i64: 4, 128, 512>}, {pipeline_mode = #tpu.pipeline_mode<synchronous>, transform_indices = @transform_4, window_bounds = array<i64: 6, 128>}, {pipeline_mode = #tpu.pipeline_mode<synchronous>, transform_indices = @transform_5, window_bounds = array<i64: 6, 128>}, {pipeline_mode = #tpu.pipeline_mode<synchronous>, transform_indices = @transform_6, window_bounds = array<i64: 1, 512>}, {pipeline_mode = #tpu.pipeline_mode<synchronous>, transform_indices = @transform_7, window_bounds = array<i64: 1, 512>}, {pipeline_mode = #tpu.pipeline_mode<synchronous>, transform_indices = @transform_8, window_bounds = array<i64: 128, 128>}, {pipeline_mode = #tpu.pipeline_mode<synchronous>, transform_indices = @transform_9, window_bounds = array<i64: 512, 512>}, {pipeline_mode = #tpu.pipeline_mode<synchronous>, transform_indices = @transform_10, window_bounds = array<i64: 16, 512>}]} {
    %0 = tpu.iota {dimensions = array<i32: 0>} : vector<16x128xi32>
    %c8_i32 = arith.constant 8 : i32
    %c0_i32 = arith.constant 0 : i32
    %1 = arith.cmpi eq, %c8_i32, %c0_i32 : i32
    %c1_i32 = arith.constant 1 : i32
    %2 = arith.select %1, %c1_i32, %c8_i32 : i32
    %3 = vector.broadcast %2 : i32 to vector<16x128xi32>
    %4 = arith.remsi %0, %3 : vector<16x128xi32>
    %c0_i32_0 = arith.constant 0 : i32
    %5 = vector.broadcast %c0_i32_0 : i32 to vector<16x128xi32>
    %6 = arith.cmpi ne, %4, %5 : vector<16x128xi32>
    %c0_i32_1 = arith.constant 0 : i32
    %7 = vector.broadcast %c0_i32_1 : i32 to vector<16x128xi32>
    %8 = arith.cmpi slt, %4, %7 : vector<16x128xi32>
    %c0_i32_2 = arith.constant 0 : i32
    %9 = arith.cmpi slt, %2, %c0_i32_2 : i32
    %10 = vector.broadcast %9 : i1 to vector<16x128xi1>
    %11 = vector.broadcast %10 : vector<16x128xi1> to vector<16x128xi1>
    %12 = arith.xori %8, %11 : vector<16x128xi1>
    %13 = arith.andi %12, %6 : vector<16x128xi1>
    %14 = vector.broadcast %2 : i32 to vector<16x128xi32>
    %15 = arith.addi %4, %14 : vector<16x128xi32>
    %16 = arith.select %13, %15, %4 : vector<16x128xi1>, vector<16x128xi32>
    %c1_i32_3 = arith.constant 1 : i32
    %17 = vector.broadcast %c1_i32_3 : i32 to vector<16x128xi32>
    %18 = arith.cmpi sge, %16, %17 : vector<16x128xi32>
    %19 = arith.extui %18 : vector<16x128xi1> to vector<16x128xi32>
    %20 = arith.sitofp %19 : vector<16x128xi32> to vector<16x128xf32>
    %c7_i32 = arith.constant 7 : i32
    %21 = vector.broadcast %c7_i32 : i32 to vector<16x128xi32>
    %22 = arith.cmpi slt, %16, %21 : vector<16x128xi32>
    %23 = arith.extui %22 : vector<16x128xi1> to vector<16x128xi32>
    %24 = arith.sitofp %23 : vector<16x128xi32> to vector<16x128xf32>
    %c0 = arith.constant 0 : index
    %c0_4 = arith.constant 0 : index
    %25 = vector.load %arg1[%c0, %c0_4] : memref<16x128xbf16, #tpu.memory_space<vmem>>, vector<16x128xbf16>
    %c0_5 = arith.constant 0 : index
    %c0_6 = arith.constant 0 : index
    %c0_7 = arith.constant 0 : index
    %26 = vector.load %arg2[%c0_5, %c0_6, %c0_7] : memref<2x128x128xbf16, #tpu.memory_space<vmem>>, vector<1x128x128xbf16>
    %27 = vector.shape_cast %26 : vector<1x128x128xbf16> to vector<128x128xbf16>
    %cst = arith.constant dense<0.000000e+00> : vector<16x128xf32>
    %28 = tpu.matmul %25, %27, %cst {dimension_numbers = #tpu.dot_dimension_numbers<[1], [0], [0], [1], [0, 0, 1, 1], [], []>} : vector<16x128xbf16>, vector<128x128xbf16>, vector<16x128xf32> -> vector<16x128xf32>
    %c0_8 = arith.constant 0 : index
    %c0_9 = arith.constant 0 : index
    %29 = vector.load %arg5[%c0_8, %c0_9] : memref<6x128xf32, #tpu.memory_space<vmem>>, vector<1x128xf32>
    %c0_10 = arith.constant 0 : index
    %c0_11 = arith.constant 0 : index
    %30 = vector.load %arg6[%c0_10, %c0_11] : memref<6x128xf32, #tpu.memory_space<vmem>>, vector<1x128xf32>
    %cst_12 = arith.constant dense<0.000000e+00> : vector<128xf32>
    %31 = vector.multi_reduction <add>, %28, %cst_12 [0] : vector<16x128xf32> to vector<128xf32>
    %32 = vector.shape_cast %31 : vector<128xf32> to vector<1x128xf32>
    %33 = arith.mulf %28, %28 : vector<16x128xf32>
    %cst_13 = arith.constant dense<0.000000e+00> : vector<128xf32>
    %34 = vector.multi_reduction <add>, %33, %cst_13 [0] : vector<16x128xf32> to vector<128xf32>
    %35 = vector.shape_cast %34 : vector<128xf32> to vector<1x128xf32>
    %36 = tpu.concatenate %32, %35 in 0 : vector<1x128xf32>, vector<1x128xf32> -> vector<2x128xf32>
    %c0_14 = arith.constant 0 : index
    %c0_15 = arith.constant 0 : index
    %37 = vector.load %arg9[%c0_14, %c0_15] : memref<128x128xf32, #tpu.memory_space<vmem>>, vector<128x128xf32>
    %cst_16 = arith.constant dense<0.000000e+00> : vector<2x128xf32>
    %38 = tpu.matmul %36, %37, %cst_16 {dimension_numbers = #tpu.dot_dimension_numbers<[1], [0], [0], [1], [0, 0, 1, 1], [], []>} : vector<2x128xf32>, vector<128x128xf32>, vector<2x128xf32> -> vector<2x128xf32>
    %cst_17 = arith.constant 0.001953125 : f32
    %39 = vector.broadcast %cst_17 : f32 to vector<2x128xf32>
    %40 = arith.mulf %38, %39 : vector<2x128xf32>
    %41 = vector.extract_strided_slice %40 {offsets = [0, 0], sizes = [1, 128], strides = [1, 1]} : vector<2x128xf32> to vector<1x128xf32>
    %42 = vector.extract_strided_slice %40 {offsets = [1, 0], sizes = [1, 128], strides = [1, 1]} : vector<2x128xf32> to vector<1x128xf32>
    %43 = arith.mulf %41, %41 : vector<1x128xf32>
    %44 = arith.subf %42, %43 : vector<1x128xf32>
    %cst_18 = arith.constant 0.000000e+00 : f32
    %45 = vector.broadcast %cst_18 : f32 to vector<1x128xf32>
    %46 = arith.maximumf %44, %45 : vector<1x128xf32>
    %cst_19 = arith.constant 9.99999974E-6 : f32
    %47 = vector.broadcast %cst_19 : f32 to vector<1x128xf32>
    %48 = arith.addf %46, %47 : vector<1x128xf32>
    %49 = math.rsqrt %48 : vector<1x128xf32>
    %50 = arith.mulf %29, %49 : vector<1x128xf32>
    %51 = arith.mulf %41, %50 : vector<1x128xf32>
    %52 = arith.subf %30, %51 : vector<1x128xf32>
    %53 = vector.broadcast %50 : vector<1x128xf32> to vector<16x128xf32>
    %54 = arith.mulf %28, %53 : vector<16x128xf32>
    %55 = vector.broadcast %52 : vector<1x128xf32> to vector<16x128xf32>
    %56 = arith.addf %54, %55 : vector<16x128xf32>
    %cst_20 = arith.constant 5.000000e-01 : f32
    %57 = vector.broadcast %cst_20 : f32 to vector<16x128xf32>
    %58 = arith.mulf %57, %56 : vector<16x128xf32>
    %59 = math.tanh %58 : vector<16x128xf32>
    %cst_21 = arith.constant 5.000000e-01 : f32
    %60 = vector.broadcast %cst_21 : f32 to vector<16x128xf32>
    %61 = arith.mulf %60, %59 : vector<16x128xf32>
    %cst_22 = arith.constant 5.000000e-01 : f32
    %62 = vector.broadcast %cst_22 : f32 to vector<16x128xf32>
    %63 = arith.addf %61, %62 : vector<16x128xf32>
    %64 = arith.mulf %56, %63 : vector<16x128xf32>
    %c1 = arith.constant 1 : index
    %c0_23 = arith.constant 0 : index
    %c0_24 = arith.constant 0 : index
    %65 = vector.load %arg2[%c1, %c0_23, %c0_24] : memref<2x128x128xbf16, #tpu.memory_space<vmem>>, vector<1x128x128xbf16>
    %66 = vector.shape_cast %65 : vector<1x128x128xbf16> to vector<128x128xbf16>
    %cst_25 = arith.constant dense<0.000000e+00> : vector<16x128xf32>
    %67 = tpu.matmul %25, %66, %cst_25 {dimension_numbers = #tpu.dot_dimension_numbers<[1], [0], [0], [1], [0, 0, 1, 1], [], []>} : vector<16x128xbf16>, vector<128x128xbf16>, vector<16x128xf32> -> vector<16x128xf32>
    %c1_26 = arith.constant 1 : index
    %c0_27 = arith.constant 0 : index
    %68 = vector.load %arg5[%c1_26, %c0_27] : memref<6x128xf32, #tpu.memory_space<vmem>>, vector<1x128xf32>
    %c1_28 = arith.constant 1 : index
    %c0_29 = arith.constant 0 : index
    %69 = vector.load %arg6[%c1_28, %c0_29] : memref<6x128xf32, #tpu.memory_space<vmem>>, vector<1x128xf32>
    %cst_30 = arith.constant dense<0.000000e+00> : vector<128xf32>
    %70 = vector.multi_reduction <add>, %67, %cst_30 [0] : vector<16x128xf32> to vector<128xf32>
    %71 = vector.shape_cast %70 : vector<128xf32> to vector<1x128xf32>
    %72 = arith.mulf %67, %67 : vector<16x128xf32>
    %cst_31 = arith.constant dense<0.000000e+00> : vector<128xf32>
    %73 = vector.multi_reduction <add>, %72, %cst_31 [0] : vector<16x128xf32> to vector<128xf32>
    %74 = vector.shape_cast %73 : vector<128xf32> to vector<1x128xf32>
    %75 = tpu.concatenate %71, %74 in 0 : vector<1x128xf32>, vector<1x128xf32> -> vector<2x128xf32>
    %c0_32 = arith.constant 0 : index
    %c0_33 = arith.constant 0 : index
    %76 = vector.load %arg9[%c0_32, %c0_33] : memref<128x128xf32, #tpu.memory_space<vmem>>, vector<128x128xf32>
    %cst_34 = arith.constant dense<0.000000e+00> : vector<2x128xf32>
    %77 = tpu.matmul %75, %76, %cst_34 {dimension_numbers = #tpu.dot_dimension_numbers<[1], [0], [0], [1], [0, 0, 1, 1], [], []>} : vector<2x128xf32>, vector<128x128xf32>, vector<2x128xf32> -> vector<2x128xf32>
    %cst_35 = arith.constant 0.001953125 : f32
    %78 = vector.broadcast %cst_35 : f32 to vector<2x128xf32>
    %79 = arith.mulf %77, %78 : vector<2x128xf32>
    %80 = vector.extract_strided_slice %79 {offsets = [0, 0], sizes = [1, 128], strides = [1, 1]} : vector<2x128xf32> to vector<1x128xf32>
    %81 = vector.extract_strided_slice %79 {offsets = [1, 0], sizes = [1, 128], strides = [1, 1]} : vector<2x128xf32> to vector<1x128xf32>
    %82 = arith.mulf %80, %80 : vector<1x128xf32>
    %83 = arith.subf %81, %82 : vector<1x128xf32>
    %cst_36 = arith.constant 0.000000e+00 : f32
    %84 = vector.broadcast %cst_36 : f32 to vector<1x128xf32>
    %85 = arith.maximumf %83, %84 : vector<1x128xf32>
    %cst_37 = arith.constant 9.99999974E-6 : f32
    %86 = vector.broadcast %cst_37 : f32 to vector<1x128xf32>
    %87 = arith.addf %85, %86 : vector<1x128xf32>
    %88 = math.rsqrt %87 : vector<1x128xf32>
    %89 = arith.mulf %68, %88 : vector<1x128xf32>
    %90 = arith.mulf %80, %89 : vector<1x128xf32>
    %91 = arith.subf %69, %90 : vector<1x128xf32>
    %92 = vector.broadcast %89 : vector<1x128xf32> to vector<16x128xf32>
    %93 = arith.mulf %67, %92 : vector<16x128xf32>
    %94 = vector.broadcast %91 : vector<1x128xf32> to vector<16x128xf32>
    %95 = arith.addf %93, %94 : vector<16x128xf32>
    %cst_38 = arith.constant 5.000000e-01 : f32
    %96 = vector.broadcast %cst_38 : f32 to vector<16x128xf32>
    %97 = arith.mulf %96, %95 : vector<16x128xf32>
    %98 = math.tanh %97 : vector<16x128xf32>
    %cst_39 = arith.constant 5.000000e-01 : f32
    %99 = vector.broadcast %cst_39 : f32 to vector<16x128xf32>
    %100 = arith.mulf %99, %98 : vector<16x128xf32>
    %cst_40 = arith.constant 5.000000e-01 : f32
    %101 = vector.broadcast %cst_40 : f32 to vector<16x128xf32>
    %102 = arith.addf %100, %101 : vector<16x128xf32>
    %103 = arith.mulf %95, %102 : vector<16x128xf32>
    %c1_i32_41 = arith.constant 1 : i32
    %104 = tpu.dynamic_rotate %103 by %c1_i32_41 dim 0 : vector<16x128xf32>, i32 -> vector<16x128xf32>
    %105 = arith.mulf %104, %20 : vector<16x128xf32>
    %c15_i32 = arith.constant 15 : i32
    %106 = tpu.dynamic_rotate %103 by %c15_i32 dim 0 : vector<16x128xf32>, i32 -> vector<16x128xf32>
    %107 = arith.mulf %106, %24 : vector<16x128xf32>
    %108 = arith.truncf %105 : vector<16x128xf32> to vector<16x128xbf16>
    %c0_42 = arith.constant 0 : index
    %c0_43 = arith.constant 0 : index
    %c0_44 = arith.constant 0 : index
    %109 = vector.load %arg3[%c0_42, %c0_43, %c0_44] : memref<12x128x128xbf16, #tpu.memory_space<vmem>>, vector<1x128x128xbf16>
    %110 = vector.shape_cast %109 : vector<1x128x128xbf16> to vector<128x128xbf16>
    %cst_45 = arith.constant dense<0.000000e+00> : vector<16x128xf32>
    %111 = tpu.matmul %108, %110, %cst_45 {dimension_numbers = #tpu.dot_dimension_numbers<[1], [0], [0], [1], [0, 0, 1, 1], [], []>} : vector<16x128xbf16>, vector<128x128xbf16>, vector<16x128xf32> -> vector<16x128xf32>
    %112 = arith.truncf %103 : vector<16x128xf32> to vector<16x128xbf16>
    %c1_46 = arith.constant 1 : index
    %c0_47 = arith.constant 0 : index
    %c0_48 = arith.constant 0 : index
    %113 = vector.load %arg3[%c1_46, %c0_47, %c0_48] : memref<12x128x128xbf16, #tpu.memory_space<vmem>>, vector<1x128x128xbf16>
    %114 = vector.shape_cast %113 : vector<1x128x128xbf16> to vector<128x128xbf16>
    %cst_49 = arith.constant dense<0.000000e+00> : vector<16x128xf32>
    %115 = tpu.matmul %112, %114, %cst_49 {dimension_numbers = #tpu.dot_dimension_numbers<[1], [0], [0], [1], [0, 0, 1, 1], [], []>} : vector<16x128xbf16>, vector<128x128xbf16>, vector<16x128xf32> -> vector<16x128xf32>
    %116 = arith.addf %111, %115 : vector<16x128xf32>
    %117 = arith.truncf %107 : vector<16x128xf32> to vector<16x128xbf16>
    %c2 = arith.constant 2 : index
    %c0_50 = arith.constant 0 : index
    %c0_51 = arith.constant 0 : index
    %118 = vector.load %arg3[%c2, %c0_50, %c0_51] : memref<12x128x128xbf16, #tpu.memory_space<vmem>>, vector<1x128x128xbf16>
    %119 = vector.shape_cast %118 : vector<1x128x128xbf16> to vector<128x128xbf16>
    %cst_52 = arith.constant dense<0.000000e+00> : vector<16x128xf32>
    %120 = tpu.matmul %117, %119, %cst_52 {dimension_numbers = #tpu.dot_dimension_numbers<[1], [0], [0], [1], [0, 0, 1, 1], [], []>} : vector<16x128xbf16>, vector<128x128xbf16>, vector<16x128xf32> -> vector<16x128xf32>
    %121 = arith.addf %116, %120 : vector<16x128xf32>
    %c2_53 = arith.constant 2 : index
    %c0_54 = arith.constant 0 : index
    %122 = vector.load %arg5[%c2_53, %c0_54] : memref<6x128xf32, #tpu.memory_space<vmem>>, vector<1x128xf32>
    %c2_55 = arith.constant 2 : index
    %c0_56 = arith.constant 0 : index
    %123 = vector.load %arg6[%c2_55, %c0_56] : memref<6x128xf32, #tpu.memory_space<vmem>>, vector<1x128xf32>
    %cst_57 = arith.constant dense<0.000000e+00> : vector<128xf32>
    %124 = vector.multi_reduction <add>, %121, %cst_57 [0] : vector<16x128xf32> to vector<128xf32>
    %125 = vector.shape_cast %124 : vector<128xf32> to vector<1x128xf32>
    %126 = arith.mulf %121, %121 : vector<16x128xf32>
    %cst_58 = arith.constant dense<0.000000e+00> : vector<128xf32>
    %127 = vector.multi_reduction <add>, %126, %cst_58 [0] : vector<16x128xf32> to vector<128xf32>
    %128 = vector.shape_cast %127 : vector<128xf32> to vector<1x128xf32>
    %129 = tpu.concatenate %125, %128 in 0 : vector<1x128xf32>, vector<1x128xf32> -> vector<2x128xf32>
    %c0_59 = arith.constant 0 : index
    %c0_60 = arith.constant 0 : index
    %130 = vector.load %arg9[%c0_59, %c0_60] : memref<128x128xf32, #tpu.memory_space<vmem>>, vector<128x128xf32>
    %cst_61 = arith.constant dense<0.000000e+00> : vector<2x128xf32>
    %131 = tpu.matmul %129, %130, %cst_61 {dimension_numbers = #tpu.dot_dimension_numbers<[1], [0], [0], [1], [0, 0, 1, 1], [], []>} : vector<2x128xf32>, vector<128x128xf32>, vector<2x128xf32> -> vector<2x128xf32>
    %cst_62 = arith.constant 0.001953125 : f32
    %132 = vector.broadcast %cst_62 : f32 to vector<2x128xf32>
    %133 = arith.mulf %131, %132 : vector<2x128xf32>
    %134 = vector.extract_strided_slice %133 {offsets = [0, 0], sizes = [1, 128], strides = [1, 1]} : vector<2x128xf32> to vector<1x128xf32>
    %135 = vector.extract_strided_slice %133 {offsets = [1, 0], sizes = [1, 128], strides = [1, 1]} : vector<2x128xf32> to vector<1x128xf32>
    %136 = arith.mulf %134, %134 : vector<1x128xf32>
    %137 = arith.subf %135, %136 : vector<1x128xf32>
    %cst_63 = arith.constant 0.000000e+00 : f32
    %138 = vector.broadcast %cst_63 : f32 to vector<1x128xf32>
    %139 = arith.maximumf %137, %138 : vector<1x128xf32>
    %cst_64 = arith.constant 9.99999974E-6 : f32
    %140 = vector.broadcast %cst_64 : f32 to vector<1x128xf32>
    %141 = arith.addf %139, %140 : vector<1x128xf32>
    %142 = math.rsqrt %141 : vector<1x128xf32>
    %143 = arith.mulf %122, %142 : vector<1x128xf32>
    %144 = arith.mulf %134, %143 : vector<1x128xf32>
    %145 = arith.subf %123, %144 : vector<1x128xf32>
    %146 = vector.broadcast %143 : vector<1x128xf32> to vector<16x128xf32>
    %147 = arith.mulf %121, %146 : vector<16x128xf32>
    %148 = vector.broadcast %145 : vector<1x128xf32> to vector<16x128xf32>
    %149 = arith.addf %147, %148 : vector<16x128xf32>
    %cst_65 = arith.constant 5.000000e-01 : f32
    %150 = vector.broadcast %cst_65 : f32 to vector<16x128xf32>
    %151 = arith.mulf %150, %149 : vector<16x128xf32>
    %152 = math.tanh %151 : vector<16x128xf32>
    %cst_66 = arith.constant 5.000000e-01 : f32
    %153 = vector.broadcast %cst_66 : f32 to vector<16x128xf32>
    %154 = arith.mulf %153, %152 : vector<16x128xf32>
    %cst_67 = arith.constant 5.000000e-01 : f32
    %155 = vector.broadcast %cst_67 : f32 to vector<16x128xf32>
    %156 = arith.addf %154, %155 : vector<16x128xf32>
    %157 = arith.mulf %149, %156 : vector<16x128xf32>
    %c1_i32_68 = arith.constant 1 : i32
    %158 = tpu.dynamic_rotate %157 by %c1_i32_68 dim 0 : vector<16x128xf32>, i32 -> vector<16x128xf32>
    %159 = arith.mulf %158, %20 : vector<16x128xf32>
    %c15_i32_69 = arith.constant 15 : i32
    %160 = tpu.dynamic_rotate %157 by %c15_i32_69 dim 0 : vector<16x128xf32>, i32 -> vector<16x128xf32>
    %161 = arith.mulf %160, %24 : vector<16x128xf32>
    %162 = arith.truncf %159 : vector<16x128xf32> to vector<16x128xbf16>
    %c3 = arith.constant 3 : index
    %c0_70 = arith.constant 0 : index
    %c0_71 = arith.constant 0 : index
    %163 = vector.load %arg3[%c3, %c0_70, %c0_71] : memref<12x128x128xbf16, #tpu.memory_space<vmem>>, vector<1x128x128xbf16>
    %164 = vector.shape_cast %163 : vector<1x128x128xbf16> to vector<128x128xbf16>
    %cst_72 = arith.constant dense<0.000000e+00> : vector<16x128xf32>
    %165 = tpu.matmul %162, %164, %cst_72 {dimension_numbers = #tpu.dot_dimension_numbers<[1], [0], [0], [1], [0, 0, 1, 1], [], []>} : vector<16x128xbf16>, vector<128x128xbf16>, vector<16x128xf32> -> vector<16x128xf32>
    %166 = arith.truncf %157 : vector<16x128xf32> to vector<16x128xbf16>
    %c4 = arith.constant 4 : index
    %c0_73 = arith.constant 0 : index
    %c0_74 = arith.constant 0 : index
    %167 = vector.load %arg3[%c4, %c0_73, %c0_74] : memref<12x128x128xbf16, #tpu.memory_space<vmem>>, vector<1x128x128xbf16>
    %168 = vector.shape_cast %167 : vector<1x128x128xbf16> to vector<128x128xbf16>
    %cst_75 = arith.constant dense<0.000000e+00> : vector<16x128xf32>
    %169 = tpu.matmul %166, %168, %cst_75 {dimension_numbers = #tpu.dot_dimension_numbers<[1], [0], [0], [1], [0, 0, 1, 1], [], []>} : vector<16x128xbf16>, vector<128x128xbf16>, vector<16x128xf32> -> vector<16x128xf32>
    %170 = arith.addf %165, %169 : vector<16x128xf32>
    %171 = arith.truncf %161 : vector<16x128xf32> to vector<16x128xbf16>
    %c5 = arith.constant 5 : index
    %c0_76 = arith.constant 0 : index
    %c0_77 = arith.constant 0 : index
    %172 = vector.load %arg3[%c5, %c0_76, %c0_77] : memref<12x128x128xbf16, #tpu.memory_space<vmem>>, vector<1x128x128xbf16>
    %173 = vector.shape_cast %172 : vector<1x128x128xbf16> to vector<128x128xbf16>
    %cst_78 = arith.constant dense<0.000000e+00> : vector<16x128xf32>
    %174 = tpu.matmul %171, %173, %cst_78 {dimension_numbers = #tpu.dot_dimension_numbers<[1], [0], [0], [1], [0, 0, 1, 1], [], []>} : vector<16x128xbf16>, vector<128x128xbf16>, vector<16x128xf32> -> vector<16x128xf32>
    %175 = arith.addf %170, %174 : vector<16x128xf32>
    %c3_79 = arith.constant 3 : index
    %c0_80 = arith.constant 0 : index
    %176 = vector.load %arg5[%c3_79, %c0_80] : memref<6x128xf32, #tpu.memory_space<vmem>>, vector<1x128xf32>
    %c3_81 = arith.constant 3 : index
    %c0_82 = arith.constant 0 : index
    %177 = vector.load %arg6[%c3_81, %c0_82] : memref<6x128xf32, #tpu.memory_space<vmem>>, vector<1x128xf32>
    %cst_83 = arith.constant dense<0.000000e+00> : vector<128xf32>
    %178 = vector.multi_reduction <add>, %175, %cst_83 [0] : vector<16x128xf32> to vector<128xf32>
    %179 = vector.shape_cast %178 : vector<128xf32> to vector<1x128xf32>
    %180 = arith.mulf %175, %175 : vector<16x128xf32>
    %cst_84 = arith.constant dense<0.000000e+00> : vector<128xf32>
    %181 = vector.multi_reduction <add>, %180, %cst_84 [0] : vector<16x128xf32> to vector<128xf32>
    %182 = vector.shape_cast %181 : vector<128xf32> to vector<1x128xf32>
    %183 = tpu.concatenate %179, %182 in 0 : vector<1x128xf32>, vector<1x128xf32> -> vector<2x128xf32>
    %c0_85 = arith.constant 0 : index
    %c0_86 = arith.constant 0 : index
    %184 = vector.load %arg9[%c0_85, %c0_86] : memref<128x128xf32, #tpu.memory_space<vmem>>, vector<128x128xf32>
    %cst_87 = arith.constant dense<0.000000e+00> : vector<2x128xf32>
    %185 = tpu.matmul %183, %184, %cst_87 {dimension_numbers = #tpu.dot_dimension_numbers<[1], [0], [0], [1], [0, 0, 1, 1], [], []>} : vector<2x128xf32>, vector<128x128xf32>, vector<2x128xf32> -> vector<2x128xf32>
    %cst_88 = arith.constant 0.001953125 : f32
    %186 = vector.broadcast %cst_88 : f32 to vector<2x128xf32>
    %187 = arith.mulf %185, %186 : vector<2x128xf32>
    %188 = vector.extract_strided_slice %187 {offsets = [0, 0], sizes = [1, 128], strides = [1, 1]} : vector<2x128xf32> to vector<1x128xf32>
    %189 = vector.extract_strided_slice %187 {offsets = [1, 0], sizes = [1, 128], strides = [1, 1]} : vector<2x128xf32> to vector<1x128xf32>
    %190 = arith.mulf %188, %188 : vector<1x128xf32>
    %191 = arith.subf %189, %190 : vector<1x128xf32>
    %cst_89 = arith.constant 0.000000e+00 : f32
    %192 = vector.broadcast %cst_89 : f32 to vector<1x128xf32>
    %193 = arith.maximumf %191, %192 : vector<1x128xf32>
    %cst_90 = arith.constant 9.99999974E-6 : f32
    %194 = vector.broadcast %cst_90 : f32 to vector<1x128xf32>
    %195 = arith.addf %193, %194 : vector<1x128xf32>
    %196 = math.rsqrt %195 : vector<1x128xf32>
    %197 = arith.mulf %176, %196 : vector<1x128xf32>
    %198 = arith.mulf %188, %197 : vector<1x128xf32>
    %199 = arith.subf %177, %198 : vector<1x128xf32>
    %200 = vector.broadcast %197 : vector<1x128xf32> to vector<16x128xf32>
    %201 = arith.mulf %175, %200 : vector<16x128xf32>
    %202 = vector.broadcast %199 : vector<1x128xf32> to vector<16x128xf32>
    %203 = arith.addf %201, %202 : vector<16x128xf32>
    %cst_91 = arith.constant 5.000000e-01 : f32
    %204 = vector.broadcast %cst_91 : f32 to vector<16x128xf32>
    %205 = arith.mulf %204, %203 : vector<16x128xf32>
    %206 = math.tanh %205 : vector<16x128xf32>
    %cst_92 = arith.constant 5.000000e-01 : f32
    %207 = vector.broadcast %cst_92 : f32 to vector<16x128xf32>
    %208 = arith.mulf %207, %206 : vector<16x128xf32>
    %cst_93 = arith.constant 5.000000e-01 : f32
    %209 = vector.broadcast %cst_93 : f32 to vector<16x128xf32>
    %210 = arith.addf %208, %209 : vector<16x128xf32>
    %211 = arith.mulf %203, %210 : vector<16x128xf32>
    %c1_i32_94 = arith.constant 1 : i32
    %212 = tpu.dynamic_rotate %211 by %c1_i32_94 dim 0 : vector<16x128xf32>, i32 -> vector<16x128xf32>
    %213 = arith.mulf %212, %20 : vector<16x128xf32>
    %c15_i32_95 = arith.constant 15 : i32
    %214 = tpu.dynamic_rotate %211 by %c15_i32_95 dim 0 : vector<16x128xf32>, i32 -> vector<16x128xf32>
    %215 = arith.mulf %214, %24 : vector<16x128xf32>
    %216 = arith.truncf %213 : vector<16x128xf32> to vector<16x128xbf16>
    %c6 = arith.constant 6 : index
    %c0_96 = arith.constant 0 : index
    %c0_97 = arith.constant 0 : index
    %217 = vector.load %arg3[%c6, %c0_96, %c0_97] : memref<12x128x128xbf16, #tpu.memory_space<vmem>>, vector<1x128x128xbf16>
    %218 = vector.shape_cast %217 : vector<1x128x128xbf16> to vector<128x128xbf16>
    %cst_98 = arith.constant dense<0.000000e+00> : vector<16x128xf32>
    %219 = tpu.matmul %216, %218, %cst_98 {dimension_numbers = #tpu.dot_dimension_numbers<[1], [0], [0], [1], [0, 0, 1, 1], [], []>} : vector<16x128xbf16>, vector<128x128xbf16>, vector<16x128xf32> -> vector<16x128xf32>
    %220 = arith.truncf %211 : vector<16x128xf32> to vector<16x128xbf16>
    %c7 = arith.constant 7 : index
    %c0_99 = arith.constant 0 : index
    %c0_100 = arith.constant 0 : index
    %221 = vector.load %arg3[%c7, %c0_99, %c0_100] : memref<12x128x128xbf16, #tpu.memory_space<vmem>>, vector<1x128x128xbf16>
    %222 = vector.shape_cast %221 : vector<1x128x128xbf16> to vector<128x128xbf16>
    %cst_101 = arith.constant dense<0.000000e+00> : vector<16x128xf32>
    %223 = tpu.matmul %220, %222, %cst_101 {dimension_numbers = #tpu.dot_dimension_numbers<[1], [0], [0], [1], [0, 0, 1, 1], [], []>} : vector<16x128xbf16>, vector<128x128xbf16>, vector<16x128xf32> -> vector<16x128xf32>
    %224 = arith.addf %219, %223 : vector<16x128xf32>
    %225 = arith.truncf %215 : vector<16x128xf32> to vector<16x128xbf16>
    %c8 = arith.constant 8 : index
    %c0_102 = arith.constant 0 : index
    %c0_103 = arith.constant 0 : index
    %226 = vector.load %arg3[%c8, %c0_102, %c0_103] : memref<12x128x128xbf16, #tpu.memory_space<vmem>>, vector<1x128x128xbf16>
    %227 = vector.shape_cast %226 : vector<1x128x128xbf16> to vector<128x128xbf16>
    %cst_104 = arith.constant dense<0.000000e+00> : vector<16x128xf32>
    %228 = tpu.matmul %225, %227, %cst_104 {dimension_numbers = #tpu.dot_dimension_numbers<[1], [0], [0], [1], [0, 0, 1, 1], [], []>} : vector<16x128xbf16>, vector<128x128xbf16>, vector<16x128xf32> -> vector<16x128xf32>
    %229 = arith.addf %224, %228 : vector<16x128xf32>
    %c4_105 = arith.constant 4 : index
    %c0_106 = arith.constant 0 : index
    %230 = vector.load %arg5[%c4_105, %c0_106] : memref<6x128xf32, #tpu.memory_space<vmem>>, vector<1x128xf32>
    %c4_107 = arith.constant 4 : index
    %c0_108 = arith.constant 0 : index
    %231 = vector.load %arg6[%c4_107, %c0_108] : memref<6x128xf32, #tpu.memory_space<vmem>>, vector<1x128xf32>
    %cst_109 = arith.constant dense<0.000000e+00> : vector<128xf32>
    %232 = vector.multi_reduction <add>, %229, %cst_109 [0] : vector<16x128xf32> to vector<128xf32>
    %233 = vector.shape_cast %232 : vector<128xf32> to vector<1x128xf32>
    %234 = arith.mulf %229, %229 : vector<16x128xf32>
    %cst_110 = arith.constant dense<0.000000e+00> : vector<128xf32>
    %235 = vector.multi_reduction <add>, %234, %cst_110 [0] : vector<16x128xf32> to vector<128xf32>
    %236 = vector.shape_cast %235 : vector<128xf32> to vector<1x128xf32>
    %237 = tpu.concatenate %233, %236 in 0 : vector<1x128xf32>, vector<1x128xf32> -> vector<2x128xf32>
    %c0_111 = arith.constant 0 : index
    %c0_112 = arith.constant 0 : index
    %238 = vector.load %arg9[%c0_111, %c0_112] : memref<128x128xf32, #tpu.memory_space<vmem>>, vector<128x128xf32>
    %cst_113 = arith.constant dense<0.000000e+00> : vector<2x128xf32>
    %239 = tpu.matmul %237, %238, %cst_113 {dimension_numbers = #tpu.dot_dimension_numbers<[1], [0], [0], [1], [0, 0, 1, 1], [], []>} : vector<2x128xf32>, vector<128x128xf32>, vector<2x128xf32> -> vector<2x128xf32>
    %cst_114 = arith.constant 0.001953125 : f32
    %240 = vector.broadcast %cst_114 : f32 to vector<2x128xf32>
    %241 = arith.mulf %239, %240 : vector<2x128xf32>
    %242 = vector.extract_strided_slice %241 {offsets = [0, 0], sizes = [1, 128], strides = [1, 1]} : vector<2x128xf32> to vector<1x128xf32>
    %243 = vector.extract_strided_slice %241 {offsets = [1, 0], sizes = [1, 128], strides = [1, 1]} : vector<2x128xf32> to vector<1x128xf32>
    %244 = arith.mulf %242, %242 : vector<1x128xf32>
    %245 = arith.subf %243, %244 : vector<1x128xf32>
    %cst_115 = arith.constant 0.000000e+00 : f32
    %246 = vector.broadcast %cst_115 : f32 to vector<1x128xf32>
    %247 = arith.maximumf %245, %246 : vector<1x128xf32>
    %cst_116 = arith.constant 9.99999974E-6 : f32
    %248 = vector.broadcast %cst_116 : f32 to vector<1x128xf32>
    %249 = arith.addf %247, %248 : vector<1x128xf32>
    %250 = math.rsqrt %249 : vector<1x128xf32>
    %251 = arith.mulf %230, %250 : vector<1x128xf32>
    %252 = arith.mulf %242, %251 : vector<1x128xf32>
    %253 = arith.subf %231, %252 : vector<1x128xf32>
    %254 = vector.broadcast %251 : vector<1x128xf32> to vector<16x128xf32>
    %255 = arith.mulf %229, %254 : vector<16x128xf32>
    %256 = vector.broadcast %253 : vector<1x128xf32> to vector<16x128xf32>
    %257 = arith.addf %255, %256 : vector<16x128xf32>
    %cst_117 = arith.constant 5.000000e-01 : f32
    %258 = vector.broadcast %cst_117 : f32 to vector<16x128xf32>
    %259 = arith.mulf %258, %257 : vector<16x128xf32>
    %260 = math.tanh %259 : vector<16x128xf32>
    %cst_118 = arith.constant 5.000000e-01 : f32
    %261 = vector.broadcast %cst_118 : f32 to vector<16x128xf32>
    %262 = arith.mulf %261, %260 : vector<16x128xf32>
    %cst_119 = arith.constant 5.000000e-01 : f32
    %263 = vector.broadcast %cst_119 : f32 to vector<16x128xf32>
    %264 = arith.addf %262, %263 : vector<16x128xf32>
    %265 = arith.mulf %257, %264 : vector<16x128xf32>
    %c1_i32_120 = arith.constant 1 : i32
    %266 = tpu.dynamic_rotate %265 by %c1_i32_120 dim 0 : vector<16x128xf32>, i32 -> vector<16x128xf32>
    %267 = arith.mulf %266, %20 : vector<16x128xf32>
    %c15_i32_121 = arith.constant 15 : i32
    %268 = tpu.dynamic_rotate %265 by %c15_i32_121 dim 0 : vector<16x128xf32>, i32 -> vector<16x128xf32>
    %269 = arith.mulf %268, %24 : vector<16x128xf32>
    %270 = arith.truncf %267 : vector<16x128xf32> to vector<16x128xbf16>
    %c9 = arith.constant 9 : index
    %c0_122 = arith.constant 0 : index
    %c0_123 = arith.constant 0 : index
    %271 = vector.load %arg3[%c9, %c0_122, %c0_123] : memref<12x128x128xbf16, #tpu.memory_space<vmem>>, vector<1x128x128xbf16>
    %272 = vector.shape_cast %271 : vector<1x128x128xbf16> to vector<128x128xbf16>
    %cst_124 = arith.constant dense<0.000000e+00> : vector<16x128xf32>
    %273 = tpu.matmul %270, %272, %cst_124 {dimension_numbers = #tpu.dot_dimension_numbers<[1], [0], [0], [1], [0, 0, 1, 1], [], []>} : vector<16x128xbf16>, vector<128x128xbf16>, vector<16x128xf32> -> vector<16x128xf32>
    %274 = arith.truncf %265 : vector<16x128xf32> to vector<16x128xbf16>
    %c10 = arith.constant 10 : index
    %c0_125 = arith.constant 0 : index
    %c0_126 = arith.constant 0 : index
    %275 = vector.load %arg3[%c10, %c0_125, %c0_126] : memref<12x128x128xbf16, #tpu.memory_space<vmem>>, vector<1x128x128xbf16>
    %276 = vector.shape_cast %275 : vector<1x128x128xbf16> to vector<128x128xbf16>
    %cst_127 = arith.constant dense<0.000000e+00> : vector<16x128xf32>
    %277 = tpu.matmul %274, %276, %cst_127 {dimension_numbers = #tpu.dot_dimension_numbers<[1], [0], [0], [1], [0, 0, 1, 1], [], []>} : vector<16x128xbf16>, vector<128x128xbf16>, vector<16x128xf32> -> vector<16x128xf32>
    %278 = arith.addf %273, %277 : vector<16x128xf32>
    %279 = arith.truncf %269 : vector<16x128xf32> to vector<16x128xbf16>
    %c11 = arith.constant 11 : index
    %c0_128 = arith.constant 0 : index
    %c0_129 = arith.constant 0 : index
    %280 = vector.load %arg3[%c11, %c0_128, %c0_129] : memref<12x128x128xbf16, #tpu.memory_space<vmem>>, vector<1x128x128xbf16>
    %281 = vector.shape_cast %280 : vector<1x128x128xbf16> to vector<128x128xbf16>
    %cst_130 = arith.constant dense<0.000000e+00> : vector<16x128xf32>
    %282 = tpu.matmul %279, %281, %cst_130 {dimension_numbers = #tpu.dot_dimension_numbers<[1], [0], [0], [1], [0, 0, 1, 1], [], []>} : vector<16x128xbf16>, vector<128x128xbf16>, vector<16x128xf32> -> vector<16x128xf32>
    %283 = arith.addf %278, %282 : vector<16x128xf32>
    %c5_131 = arith.constant 5 : index
    %c0_132 = arith.constant 0 : index
    %284 = vector.load %arg5[%c5_131, %c0_132] : memref<6x128xf32, #tpu.memory_space<vmem>>, vector<1x128xf32>
    %c5_133 = arith.constant 5 : index
    %c0_134 = arith.constant 0 : index
    %285 = vector.load %arg6[%c5_133, %c0_134] : memref<6x128xf32, #tpu.memory_space<vmem>>, vector<1x128xf32>
    %cst_135 = arith.constant dense<0.000000e+00> : vector<128xf32>
    %286 = vector.multi_reduction <add>, %283, %cst_135 [0] : vector<16x128xf32> to vector<128xf32>
    %287 = vector.shape_cast %286 : vector<128xf32> to vector<1x128xf32>
    %288 = arith.mulf %283, %283 : vector<16x128xf32>
    %cst_136 = arith.constant dense<0.000000e+00> : vector<128xf32>
    %289 = vector.multi_reduction <add>, %288, %cst_136 [0] : vector<16x128xf32> to vector<128xf32>
    %290 = vector.shape_cast %289 : vector<128xf32> to vector<1x128xf32>
    %291 = tpu.concatenate %287, %290 in 0 : vector<1x128xf32>, vector<1x128xf32> -> vector<2x128xf32>
    %c0_137 = arith.constant 0 : index
    %c0_138 = arith.constant 0 : index
    %292 = vector.load %arg9[%c0_137, %c0_138] : memref<128x128xf32, #tpu.memory_space<vmem>>, vector<128x128xf32>
    %cst_139 = arith.constant dense<0.000000e+00> : vector<2x128xf32>
    %293 = tpu.matmul %291, %292, %cst_139 {dimension_numbers = #tpu.dot_dimension_numbers<[1], [0], [0], [1], [0, 0, 1, 1], [], []>} : vector<2x128xf32>, vector<128x128xf32>, vector<2x128xf32> -> vector<2x128xf32>
    %cst_140 = arith.constant 0.001953125 : f32
    %294 = vector.broadcast %cst_140 : f32 to vector<2x128xf32>
    %295 = arith.mulf %293, %294 : vector<2x128xf32>
    %296 = vector.extract_strided_slice %295 {offsets = [0, 0], sizes = [1, 128], strides = [1, 1]} : vector<2x128xf32> to vector<1x128xf32>
    %297 = vector.extract_strided_slice %295 {offsets = [1, 0], sizes = [1, 128], strides = [1, 1]} : vector<2x128xf32> to vector<1x128xf32>
    %298 = arith.mulf %296, %296 : vector<1x128xf32>
    %299 = arith.subf %297, %298 : vector<1x128xf32>
    %cst_141 = arith.constant 0.000000e+00 : f32
    %300 = vector.broadcast %cst_141 : f32 to vector<1x128xf32>
    %301 = arith.maximumf %299, %300 : vector<1x128xf32>
    %cst_142 = arith.constant 9.99999974E-6 : f32
    %302 = vector.broadcast %cst_142 : f32 to vector<1x128xf32>
    %303 = arith.addf %301, %302 : vector<1x128xf32>
    %304 = math.rsqrt %303 : vector<1x128xf32>
    %305 = arith.mulf %284, %304 : vector<1x128xf32>
    %306 = arith.mulf %296, %305 : vector<1x128xf32>
    %307 = arith.subf %285, %306 : vector<1x128xf32>
    %308 = vector.broadcast %305 : vector<1x128xf32> to vector<16x128xf32>
    %309 = arith.mulf %283, %308 : vector<16x128xf32>
    %310 = vector.broadcast %307 : vector<1x128xf32> to vector<16x128xf32>
    %311 = arith.addf %309, %310 : vector<16x128xf32>
    %cst_143 = arith.constant 5.000000e-01 : f32
    %312 = vector.broadcast %cst_143 : f32 to vector<16x128xf32>
    %313 = arith.mulf %312, %311 : vector<16x128xf32>
    %314 = math.tanh %313 : vector<16x128xf32>
    %cst_144 = arith.constant 5.000000e-01 : f32
    %315 = vector.broadcast %cst_144 : f32 to vector<16x128xf32>
    %316 = arith.mulf %315, %314 : vector<16x128xf32>
    %cst_145 = arith.constant 5.000000e-01 : f32
    %317 = vector.broadcast %cst_145 : f32 to vector<16x128xf32>
    %318 = arith.addf %316, %317 : vector<16x128xf32>
    %319 = arith.mulf %311, %318 : vector<16x128xf32>
    %320 = arith.truncf %64 : vector<16x128xf32> to vector<16x128xbf16>
    %c0_146 = arith.constant 0 : index
    %c0_147 = arith.constant 0 : index
    %c0_148 = arith.constant 0 : index
    %321 = vector.load %arg4[%c0_146, %c0_147, %c0_148] : memref<4x128x512xbf16, #tpu.memory_space<vmem>>, vector<1x128x512xbf16>
    %322 = vector.shape_cast %321 : vector<1x128x512xbf16> to vector<128x512xbf16>
    %cst_149 = arith.constant dense<0.000000e+00> : vector<16x512xf32>
    %323 = tpu.matmul %320, %322, %cst_149 {dimension_numbers = #tpu.dot_dimension_numbers<[1], [0], [0], [1], [0, 0, 1, 1], [], []>} : vector<16x128xbf16>, vector<128x512xbf16>, vector<16x512xf32> -> vector<16x512xf32>
    %324 = arith.truncf %157 : vector<16x128xf32> to vector<16x128xbf16>
    %c1_150 = arith.constant 1 : index
    %c0_151 = arith.constant 0 : index
    %c0_152 = arith.constant 0 : index
    %325 = vector.load %arg4[%c1_150, %c0_151, %c0_152] : memref<4x128x512xbf16, #tpu.memory_space<vmem>>, vector<1x128x512xbf16>
    %326 = vector.shape_cast %325 : vector<1x128x512xbf16> to vector<128x512xbf16>
    %cst_153 = arith.constant dense<0.000000e+00> : vector<16x512xf32>
    %327 = tpu.matmul %324, %326, %cst_153 {dimension_numbers = #tpu.dot_dimension_numbers<[1], [0], [0], [1], [0, 0, 1, 1], [], []>} : vector<16x128xbf16>, vector<128x512xbf16>, vector<16x512xf32> -> vector<16x512xf32>
    %328 = arith.addf %323, %327 : vector<16x512xf32>
    %329 = arith.truncf %265 : vector<16x128xf32> to vector<16x128xbf16>
    %c2_154 = arith.constant 2 : index
    %c0_155 = arith.constant 0 : index
    %c0_156 = arith.constant 0 : index
    %330 = vector.load %arg4[%c2_154, %c0_155, %c0_156] : memref<4x128x512xbf16, #tpu.memory_space<vmem>>, vector<1x128x512xbf16>
    %331 = vector.shape_cast %330 : vector<1x128x512xbf16> to vector<128x512xbf16>
    %cst_157 = arith.constant dense<0.000000e+00> : vector<16x512xf32>
    %332 = tpu.matmul %329, %331, %cst_157 {dimension_numbers = #tpu.dot_dimension_numbers<[1], [0], [0], [1], [0, 0, 1, 1], [], []>} : vector<16x128xbf16>, vector<128x512xbf16>, vector<16x512xf32> -> vector<16x512xf32>
    %333 = arith.addf %328, %332 : vector<16x512xf32>
    %334 = arith.truncf %319 : vector<16x128xf32> to vector<16x128xbf16>
    %c3_158 = arith.constant 3 : index
    %c0_159 = arith.constant 0 : index
    %c0_160 = arith.constant 0 : index
    %335 = vector.load %arg4[%c3_158, %c0_159, %c0_160] : memref<4x128x512xbf16, #tpu.memory_space<vmem>>, vector<1x128x512xbf16>
    %336 = vector.shape_cast %335 : vector<1x128x512xbf16> to vector<128x512xbf16>
    %cst_161 = arith.constant dense<0.000000e+00> : vector<16x512xf32>
    %337 = tpu.matmul %334, %336, %cst_161 {dimension_numbers = #tpu.dot_dimension_numbers<[1], [0], [0], [1], [0, 0, 1, 1], [], []>} : vector<16x128xbf16>, vector<128x512xbf16>, vector<16x512xf32> -> vector<16x512xf32>
    %338 = arith.addf %333, %337 : vector<16x512xf32>
    %c0_162 = arith.constant 0 : index
    %c0_163 = arith.constant 0 : index
    %339 = vector.load %arg7[%c0_162, %c0_163] : memref<1x512xf32, #tpu.memory_space<vmem>>, vector<1x512xf32>
    %c0_164 = arith.constant 0 : index
    %c0_165 = arith.constant 0 : index
    %340 = vector.load %arg8[%c0_164, %c0_165] : memref<1x512xf32, #tpu.memory_space<vmem>>, vector<1x512xf32>
    %cst_166 = arith.constant dense<0.000000e+00> : vector<512xf32>
    %341 = vector.multi_reduction <add>, %338, %cst_166 [0] : vector<16x512xf32> to vector<512xf32>
    %342 = vector.shape_cast %341 : vector<512xf32> to vector<1x512xf32>
    %343 = arith.mulf %338, %338 : vector<16x512xf32>
    %cst_167 = arith.constant dense<0.000000e+00> : vector<512xf32>
    %344 = vector.multi_reduction <add>, %343, %cst_167 [0] : vector<16x512xf32> to vector<512xf32>
    %345 = vector.shape_cast %344 : vector<512xf32> to vector<1x512xf32>
    %346 = tpu.concatenate %342, %345 in 0 : vector<1x512xf32>, vector<1x512xf32> -> vector<2x512xf32>
    %c0_168 = arith.constant 0 : index
    %c0_169 = arith.constant 0 : index
    %347 = vector.load %arg10[%c0_168, %c0_169] : memref<512x512xf32, #tpu.memory_space<vmem>>, vector<512x512xf32>
    %cst_170 = arith.constant dense<0.000000e+00> : vector<2x512xf32>
    %348 = tpu.matmul %346, %347, %cst_170 {dimension_numbers = #tpu.dot_dimension_numbers<[1], [0], [0], [1], [0, 0, 1, 1], [], []>} : vector<2x512xf32>, vector<512x512xf32>, vector<2x512xf32> -> vector<2x512xf32>
    %cst_171 = arith.constant 0.001953125 : f32
    %349 = vector.broadcast %cst_171 : f32 to vector<2x512xf32>
    %350 = arith.mulf %348, %349 : vector<2x512xf32>
    %351 = vector.extract_strided_slice %350 {offsets = [0, 0], sizes = [1, 512], strides = [1, 1]} : vector<2x512xf32> to vector<1x512xf32>
    %352 = vector.extract_strided_slice %350 {offsets = [1, 0], sizes = [1, 512], strides = [1, 1]} : vector<2x512xf32> to vector<1x512xf32>
    %353 = arith.mulf %351, %351 : vector<1x512xf32>
    %354 = arith.subf %352, %353 : vector<1x512xf32>
    %cst_172 = arith.constant 0.000000e+00 : f32
    %355 = vector.broadcast %cst_172 : f32 to vector<1x512xf32>
    %356 = arith.maximumf %354, %355 : vector<1x512xf32>
    %cst_173 = arith.constant 9.99999974E-6 : f32
    %357 = vector.broadcast %cst_173 : f32 to vector<1x512xf32>
    %358 = arith.addf %356, %357 : vector<1x512xf32>
    %359 = math.rsqrt %358 : vector<1x512xf32>
    %360 = arith.mulf %339, %359 : vector<1x512xf32>
    %361 = arith.mulf %351, %360 : vector<1x512xf32>
    %362 = arith.subf %340, %361 : vector<1x512xf32>
    %363 = vector.broadcast %360 : vector<1x512xf32> to vector<16x512xf32>
    %364 = arith.mulf %338, %363 : vector<16x512xf32>
    %365 = vector.broadcast %362 : vector<1x512xf32> to vector<16x512xf32>
    %366 = arith.addf %364, %365 : vector<16x512xf32>
    %cst_174 = arith.constant 5.000000e-01 : f32
    %367 = vector.broadcast %cst_174 : f32 to vector<16x512xf32>
    %368 = arith.mulf %367, %366 : vector<16x512xf32>
    %369 = math.tanh %368 : vector<16x512xf32>
    %cst_175 = arith.constant 5.000000e-01 : f32
    %370 = vector.broadcast %cst_175 : f32 to vector<16x512xf32>
    %371 = arith.mulf %370, %369 : vector<16x512xf32>
    %cst_176 = arith.constant 5.000000e-01 : f32
    %372 = vector.broadcast %cst_176 : f32 to vector<16x512xf32>
    %373 = arith.addf %371, %372 : vector<16x512xf32>
    %374 = arith.mulf %366, %373 : vector<16x512xf32>
    %c0_177 = arith.constant 0 : index
    %c0_178 = arith.constant 0 : index
    %375 = vector.load %arg11[%c0_177, %c0_178] : memref<16x512xf32, #tpu.memory_space<vmem>>, vector<16x512xf32>
    tpu.vector_store %arg11[%c0_177, %c0_178], %374 {strides = array<i32>} : memref<16x512xf32, #tpu.memory_space<vmem>>, vector<16x512xf32>,
    return
  }
  func.func @transform_0(%arg0: i32) -> (i32, i32) {
    %c0_i32 = arith.constant 0 : i32
    %c0_i32_0 = arith.constant 0 : i32
    %c0_i32_1 = arith.constant 0 : i32
    return %c0_i32, %c0_i32_0 : i32, i32
  }
  func.func @transform_1(%arg0: i32) -> (i32, i32, i32) {
    %c0_i32 = arith.constant 0 : i32
    %c0_i32_0 = arith.constant 0 : i32
    %c0_i32_1 = arith.constant 0 : i32
    %c0_i32_2 = arith.constant 0 : i32
    return %c0_i32, %c0_i32_0, %c0_i32_1 : i32, i32, i32
  }
  func.func @transform_2(%arg0: i32) -> (i32, i32, i32) {
    %c0_i32 = arith.constant 0 : i32
    %c0_i32_0 = arith.constant 0 : i32
    %c0_i32_1 = arith.constant 0 : i32
    %c0_i32_2 = arith.constant 0 : i32
    return %c0_i32, %c0_i32_0, %c0_i32_1 : i32, i32, i32
  }
  func.func @transform_3(%arg0: i32) -> (i32, i32, i32) {
    %c0_i32 = arith.constant 0 : i32
    %c0_i32_0 = arith.constant 0 : i32
    %c0_i32_1 = arith.constant 0 : i32
    %c0_i32_2 = arith.constant 0 : i32
    return %c0_i32, %c0_i32_0, %c0_i32_1 : i32, i32, i32
  }
  func.func @transform_4(%arg0: i32) -> (i32, i32) {
    %c0_i32 = arith.constant 0 : i32
    %c0_i32_0 = arith.constant 0 : i32
    %c0_i32_1 = arith.constant 0 : i32
    return %c0_i32, %c0_i32_0 : i32, i32
  }
  func.func @transform_5(%arg0: i32) -> (i32, i32) {
    %c0_i32 = arith.constant 0 : i32
    %c0_i32_0 = arith.constant 0 : i32
    %c0_i32_1 = arith.constant 0 : i32
    return %c0_i32, %c0_i32_0 : i32, i32
  }
  func.func @transform_6(%arg0: i32) -> (i32, i32) {
    %c0_i32 = arith.constant 0 : i32
    %c0_i32_0 = arith.constant 0 : i32
    %c0_i32_1 = arith.constant 0 : i32
    return %c0_i32, %c0_i32_0 : i32, i32
  }
  func.func @transform_7(%arg0: i32) -> (i32, i32) {
    %c0_i32 = arith.constant 0 : i32
    %c0_i32_0 = arith.constant 0 : i32
    %c0_i32_1 = arith.constant 0 : i32
    return %c0_i32, %c0_i32_0 : i32, i32
  }
  func.func @transform_8(%arg0: i32) -> (i32, i32) {
    %c0_i32 = arith.constant 0 : i32
    %c0_i32_0 = arith.constant 0 : i32
    %c0_i32_1 = arith.constant 0 : i32
    return %c0_i32, %c0_i32_0 : i32, i32
  }
  func.func @transform_9(%arg0: i32) -> (i32, i32) {
    %c0_i32 = arith.constant 0 : i32
    %c0_i32_0 = arith.constant 0 : i32
    %c0_i32_1 = arith.constant 0 : i32
    return %c0_i32, %c0_i32_0 : i32, i32
  }
  func.func @transform_10(%arg0: i32) -> (i32, i32) {
    %c0_i32 = arith.constant 0 : i32
    %c0_i32_0 = arith.constant 0 : i32
    %c0_i32_1 = arith.constant 0 : i32
    return %c0_i32, %c0_i32_0 : i32, i32
  }
}

</mosaic_0001>

<bundles_post_ra>
// kernel: elan_block_forward.1
= control target key start
LH: loop header
LB: loop body
LE: loop exit
PB: predicated region body
PF: predicated region fallthrough
CT: control target
= control target key end

     0   :  { %15 = vsyncpa [#allocation3], 0  ;;  %s7478_s0 = inlined_call_operand.vmem [shape: bf16[16,128], index: 0, kind: input, shape index: {}]   ;;  %s7479_s1 = inlined_call_operand.hbm [shape: bf16[2,128,128], index: 1, kind: input, shape index: {}]   ;;  %s7480_s2 = inlined_call_operand.vmem [shape: bf16[12,128,128], index: 2, kind: input, shape index: {}]   ;;  %s7481_s3 = inlined_call_operand.hbm [shape: bf16[4,128,512], index: 3, kind: input, shape index: {}]   ;;  %s7482_s4 = inlined_call_operand.vmem [shape: f32[6,128], index: 4, kind: input, shape index: {}]   ;;  %s7483_s5 = inlined_call_operand.vmem [shape: f32[6,128], index: 5, kind: input, shape index: {}]   ;;  %s7484_s6 = inlined_call_operand.vmem [shape: f32[1,512], index: 6, kind: input, shape index: {}]   ;;  %s7485_s7 = inlined_call_operand.vmem [shape: f32[1,512], index: 7, kind: input, shape index: {}]   ;;  %s7486_s8 = inlined_call_operand.hbm [shape: f32[128,128], index: 8, kind: input, shape index: {}]   ;;  %s7487_s9 = inlined_call_operand.hbm [shape: f32[512,512], index: 9, kind: input, shape index: {}]   ;;  %s7488_s10 = inlined_call_operand.vmem [shape: f32[16,512], index: 10, kind: output, shape index: {}]  }
   0x1   :  { %16 = vsyncpa [#allocation5], 0 }
   0x2   :  { %17 = vsyncpa [#allocation8], 0  ;;  %s6494_s13 = smov [#allocation4]   ;;  %s6400_s17 = scalar_lea.hbm %s7481_s3, 16384 }
   0x3   :  { %s39_s14 = sshll.u32 %s6494_s13, 4  ;;  %p6401_p0 = scmp.ne.s32.totalorder %s7481_s3, %s6400_s17  ;;  %s40_s14 = int_to_ptr.vmem [resolvable:$true] %s39_s14 }
   0x4   :  { %p6404_p1 = scmp.lt.u32.totalorder %s6400_s17, %s7481_s3 }
   0x6   :  { %p6406_p2 = pnand %p6404_p1, %p6401_p0 }
   0x8   :  { %6409 = shalt.err (!%p6406_p2)
}
   0x9   :  { %s6410_s22 = scalar_lea.vmem %s40_s14, 16384  ;;  %p6415_p4 = scmp.lt.s32.totalorder %s40_s14, %s40_s14 }
   0xa   :  { %p6411_p3 = scmp.ne.s32.totalorder %s40_s14, %s6410_s22  ;;  %p6416_p5 = scmp.lt.s32.totalorder %s6410_s22, %s6410_s22 }
   0xc   :  { %p6417_p6 = por %p6416_p5, %p6415_p4 }
   0xe   :  { %p6418_p7 = pnand %p6417_p6, %p6411_p3 }
  0x10   :  { %6421 = shalt.err (!%p6418_p7)
}
  0x11   :  { %s6495_s23 = smov 256   ;;  %s6496_s24 = smov 16  }
  0x12   :  { %45 = dma.hbm_to_vmem [thread:$0]  %s7481_s3, 16384, %s40_s14, [#allocation5], %s6495_s23, %s6495_s23, %s6496_s24  }
  0x13   :  { %s6497_s27 = smov [#allocation2]   ;;  %s6422_s11 = scalar_lea.hbm %s7479_s1, 2048 }
  0x14   :  { %s25_s28 = sshll.u32 %s6497_s27, 4  ;;  %p6423_p8 = scmp.ne.s32.totalorder %s7479_s1, %s6422_s11  ;;  %s26_s28 = int_to_ptr.vmem [resolvable:$true] %s25_s28 }
  0x15   :  { %p6426_p9 = scmp.lt.u32.totalorder %s6422_s11, %s7479_s1 }
  0x17   :  { %p6428_p10 = pnand %p6426_p9, %p6423_p8 }
  0x19   :  { %6431 = shalt.err (!%p6428_p10)
}
  0x1a   :  { %s6432_s17 = scalar_lea.vmem %s26_s28, 2048  ;;  %p6437_p12 = scmp.lt.s32.totalorder %s26_s28, %s26_s28 }
  0x1b   :  { %p6433_p11 = scmp.ne.s32.totalorder %s26_s28, %s6432_s17  ;;  %p6438_p13 = scmp.lt.s32.totalorder %s6432_s17, %s6432_s17 }
  0x1d   :  { %p6439_p0 = por %p6438_p13, %p6437_p12 }
  0x1f   :  { %p6440_p1 = pnand %p6439_p0, %p6433_p11 }
  0x21   :  { %6443 = shalt.err (!%p6440_p1)
}
  0x22   :  { %s6498_s3 = smov 64   ;;  %s6499_s14 = smov 4  }
  0x23   :  { %31 = dma.hbm_to_vmem [thread:$0]  %s7479_s1, 2048, %s26_s28, [#allocation3], %s6498_s3, %s6498_s3, %s6499_s14  }
  0x24   :  { %s6500_s20 = smov [#allocation6]   ;;  %s6444_s24 = scalar_lea.hbm %s7486_s8, 2048 }
  0x25   :  { %s59_s21 = sshll.u32 %s6500_s20, 4  ;;  %p6445_p2 = scmp.ne.s32.totalorder %s7486_s8, %s6444_s24  ;;  %s60_s21 = int_to_ptr.vmem [resolvable:$true] %s59_s21 }
  0x26   :  { %p6448_p3 = scmp.lt.u32.totalorder %s6444_s24, %s7486_s8 }
  0x28   :  { %p6450_p4 = pnand %p6448_p3, %p6445_p2 }
  0x2a   :  { %6453 = shalt.err (!%p6450_p4)
}
  0x2b   :  { %s6454_s30 = scalar_lea.vmem %s60_s21, 2048  ;;  %p6459_p6 = scmp.lt.s32.totalorder %s60_s21, %s60_s21 }
  0x2c   :  { %p6455_p5 = scmp.ne.s32.totalorder %s60_s21, %s6454_s30  ;;  %p6460_p7 = scmp.lt.s32.totalorder %s6454_s30, %s6454_s30 }
  0x2e   :  { %p6461_p8 = por %p6460_p7, %p6459_p6 }
  0x30   :  { %p6462_p9 = pnand %p6461_p8, %p6455_p5 }
  0x32   :  { %6465 = shalt.err (!%p6462_p9)
}
  0x33   :  { %s6501_s1 = smov 128   ;;  %s6502_s28 = smov 8  }
  0x34   :  { %65 = dma.hbm_to_vmem [thread:$0]  %s7486_s8, 2048, %s60_s21, [#allocation5], %s6501_s1, %s6501_s1, %s6502_s28  }
  0x35   :  { %s6503_s13 = smov [#allocation7]   ;;  %s6466_s3 = scalar_lea.hbm %s7487_s9, 32768 }
  0x36   :  { %s71_s15 = sshll.u32 %s6503_s13, 4  ;;  %p6467_p10 = scmp.ne.s32.totalorder %s7487_s9, %s6466_s3  ;;  %s72_s15 = int_to_ptr.vmem [resolvable:$true] %s71_s15 }
  0x37   :  { %p6470_p11 = scmp.lt.u32.totalorder %s6466_s3, %s7487_s9 }
  0x39   :  { %p6472_p12 = pnand %p6470_p11, %p6467_p10 }
  0x3b   :  { %6475 = shalt.err (!%p6472_p12)
}
  0x3c   :  { %s6476_s22 = scalar_lea.vmem %s72_s15, 32768  ;;  %p6481_p0 = scmp.lt.s32.totalorder %s72_s15, %s72_s15 }
  0x3d   :  { %p6477_p13 = scmp.ne.s32.totalorder %s72_s15, %s6476_s22  ;;  %p6482_p1 = scmp.lt.s32.totalorder %s6476_s22, %s6476_s22 }
  0x3f   :  { %p6483_p2 = por %p6482_p1, %p6481_p0 }
  0x41   :  { %p6484_p3 = pnand %p6483_p2, %p6477_p13 }
  0x43   :  { %6487 = shalt.err (!%p6484_p3)
}
  0x44   :  { %s6504_s8 = smov 512   ;;  %s6505_s21 = smov 32  }
  0x45   :  { %77 = dma.hbm_to_vmem [thread:$0]  %s7487_s9, 32768, %s72_s15, [#allocation8], %s6504_s8, %s6504_s8, %s6505_s21  }
  0x46   :  { %6488 = dma.done.wait [#allocation3], 2048  }
  0x47   :  { %6489 = vsyncadd [#allocation3], 4294965248 }
  0x48   :  { %6490 = dma.done.wait [#allocation5], 18432  }
  0x49   :  { %6491 = vsyncadd [#allocation5], 4294948864 }
  0x4a   :  { %6492 = dma.done.wait [#allocation8], 32768  }
  0x4b   :  { %6493 = vsyncadd [#allocation8], 4294934528  ;;  %v6506_v0 = vmov 0.0   ;;  %vm6507_vm0 = vmmov 0   ;;  %v6508_v1 = vmov 0.0|0.0   ;;  %v6035_v2 = vld [vmem:[#allocation2] sm:$0xff]  }
  0x4c   :  { %5068 = vmatprep.subr.bf16.mxu0 %v6506_v0  ;;  %5084 = vmatprep.mubr.msk.bf16.mxu0 %vm6507_vm0, %v6506_v0  ;;  %v6036_v3 = vld [vmem:[#allocation2 + $0x8] sm:$0xff]   ;;  %v6037_v4 = vld [vmem:[#allocation2 + $0x10] sm:$0xff]   ;;  %v6038_v5 = vld [vmem:[#allocation2 + $0x18] sm:$0xff]   ;;  %vm261_vm1 = vcmask 1040384  }
  0x4d   :  { %5558 = vmatprep.subr.bf16.mxu1 %v6508_v1  ;;  %5120 = vmatprep.mubr.msk.f32.mxu1 %vm6507_vm0, %v6506_v0  ;;  %v6039_v6 = vld [vmem:[#allocation2 + $0x20] sm:$0xff]   ;;  %v264_v8 = vld [vmem:[#allocation6 + $0x8] sm:$0xff]  ;;  %v265_v9 = vld [vmem:[#allocation6 + $0x10] sm:$0xff] }
  0x4e   :  { %5069 = vmatpush3.bf16.msra.mxu0 %v6035_v2  ;;  %v263_v7 = vld [vmem:[#allocation6] sm:$0xff]  ;;  %v6040_v10 = vld [vmem:[#allocation2 + $0x28] sm:$0xff]   ;;  %v266_v12 = vld [vmem:[#allocation6 + $0x18] sm:$0xff] }
  0x4f   :  { %5070 = vmatprep.subr.bf16.mxu0 %v6506_v0  ;;  %v6624_v11 = vpack.c.bf16 %v264_v8, %v263_v7  ;;  %v267_v13 = vld [vmem:[#allocation6 + $0x20] sm:$0xff]  ;;  %v268_v14 = vld [vmem:[#allocation6 + $0x28] sm:$0xff]  ;;  %v6041_v15 = vld [vmem:[#allocation2 + $0x30] sm:$0xff]   ;;  %v6628_v16 = vpack.c.bf16 %v266_v12, %v265_v9 }
  0x50   :  { %v6042_v17 = vld [vmem:[#allocation2 + $0x38] sm:$0xff]   ;;  %v6633_v18 = vpack.c.bf16 %v268_v14, %v267_v13  ;;  %v6043_v19 = vld [vmem:[%s7478_s0] sm:$0xff]   ;;  %v6045_v21 = vld [vmem:[#allocation2 + $0x48] sm:$0xff]  }
  0x51   :  { %5560 = vmatpush3.bf16.msra.mxu1 %v6624_v11  ;;  %v6044_v20 = vld [vmem:[#allocation2 + $0x40] sm:$0xff]   ;;  %v6046_v22 = vld [vmem:[#allocation2 + $0x50] sm:$0xff]   ;;  %v6047_v23 = vld [vmem:[#allocation2 + $0x58] sm:$0xff]  }
  0x52   :  { %5071 = vmatpush3.bf16.msra.mxu0 %v6036_v3  ;;  %5561 = vmatprep.subr.bf16.mxu1 %v6508_v1  ;;  %v6048_v24 = vld [vmem:[#allocation2 + $0x60] sm:$0xff]   ;;  %v6049_v25 = vld [vmem:[#allocation2 + $0x68] sm:$0xff]   ;;  %v6050_v26 = vld [vmem:[#allocation2 + $0x70] sm:$0xff]  }
  0x53   :  { %5072 = vmatprep.subr.bf16.mxu0 %v6506_v0  ;;  %v6051_v27 = vld [vmem:[#allocation2 + $0x78] sm:$0xff]   ;;  %v269_v28 = vld [vmem:[#allocation6 + $0x30] sm:$0xff]  ;;  %v271_v31 = vld [vmem:[#allocation6 + $0x40] sm:$0xff] }
  0x54   :  { %v270_v29 = vld [vmem:[#allocation6 + $0x38] sm:$0xff]  ;;  %v272_v32 = vld [vmem:[#allocation6 + $0x48] sm:$0xff]  ;;  %v273_v34 = vld [vmem:[#allocation6 + $0x50] sm:$0xff] }
  0x55   :  { %5563 = vmatpush3.bf16.msra.mxu1 %v6628_v16  ;;  %v6655_v30 = vpack.c.bf16 %v270_v29, %v269_v28  ;;  %v6659_v33 = vpack.c.bf16 %v272_v32, %v271_v31  ;;  %v274_v35 = vld [vmem:[#allocation6 + $0x58] sm:$0xff]  ;;  %v275_v37 = vld [vmem:[#allocation6 + $0x60] sm:$0xff]  ;;  %v276_v38 = vld [vmem:[#allocation6 + $0x68] sm:$0xff] }
  0x56   :  { %5073 = vmatpush3.bf16.msra.mxu0 %v6037_v4  ;;  %5564 = vmatprep.subr.bf16.mxu1 %v6508_v1  ;;  %v6663_v36 = vpack.c.bf16 %v274_v35, %v273_v34  ;;  %v6667_v39 = vpack.c.bf16 %v276_v38, %v275_v37  ;;  %v277_v40 = vld [vmem:[#allocation6 + $0x70] sm:$0xff]  ;;  %v278_v41 = vld [vmem:[#allocation6 + $0x78] sm:$0xff]  ;;  %v6056_v31 = vld [vmem:[%s7480_s2 + $0x60] sm:$0xff]  }
  0x57   :  { %5074 = vmatprep.subr.bf16.mxu0 %v6506_v0  ;;  %v6670_v42 = vpack.c.bf16 %v278_v41, %v277_v40  ;;  %v6054_v28 = vld [vmem:[%s7480_s2 + $0x50] sm:$0xff]   ;;  %v6055_v29 = vld [vmem:[%s7480_s2 + $0x58] sm:$0xff]   ;;  %v6057_v32 = vld [vmem:[%s7480_s2 + $0x68] sm:$0xff]  }
  0x58   :  { %v6058_v34 = vld [vmem:[%s7480_s2 + $0x70] sm:$0xff]   ;;  %v6059_v35 = vld [vmem:[%s7480_s2 + $0x78] sm:$0xff]  }
  0x59   :  { %5566 = vmatpush3.bf16.msra.mxu1 %v6633_v18 }
  0x5a   :  { %5075 = vmatpush3.bf16.msra.mxu0 %v6038_v5  ;;  %5567 = vmatprep.subr.bf16.mxu1 %v6508_v1 }
  0x5b   :  { %5076 = vmatprep.subr.bf16.mxu0 %v6506_v0 }
  0x5d   :  { %5569 = vmatpush3.bf16.msra.mxu1 %v6655_v30 }
  0x5e   :  { %5077 = vmatpush3.bf16.msra.mxu0 %v6039_v6  ;;  %5570 = vmatprep.subr.bf16.mxu1 %v6508_v1 }
  0x5f   :  { %5078 = vmatprep.subr.bf16.mxu0 %v6506_v0 }
  0x61   :  { %5572 = vmatpush3.bf16.msra.mxu1 %v6659_v33 }
  0x62   :  { %5079 = vmatpush3.bf16.msra.mxu0 %v6040_v10  ;;  %5573 = vmatprep.subr.bf16.mxu1 %v6508_v1 }
  0x63   :  { %5080 = vmatprep.subr.bf16.mxu0 %v6506_v0 }
  0x65   :  { %5575 = vmatpush3.bf16.msra.mxu1 %v6663_v36 }
  0x66   :  { %5081 = vmatpush3.bf16.msra.mxu0 %v6041_v15  ;;  %5576 = vmatprep.subr.bf16.mxu1 %v6508_v1 }
  0x67   :  { %5082 = vmatprep.subr.bf16.mxu0 %v6506_v0 }
  0x69   :  { %5578 = vmatpush3.bf16.msra.mxu1 %v6667_v39 }
  0x6a   :  { %5083 = vmatpush3.bf16.msra.mxu0 %v6042_v17  ;;  %5579 = vmatprep.subr.bf16.mxu1 %v6508_v1 }
  0x6b   :  { %5123 = vmatprep.subr.bf16.mxu0 %v6506_v0 }
  0x6d   :  { %5085 = vmatmul.mubr.bf16.vlgmr.msra.gmra.mrb[0].mxu0 %v6043_v19  ;;  %5581 = vmatpush3.bf16.msra.mxu1 %v6670_v42 }
  0x6e   :  { %5124 = vmatpush3.bf16.msra.mxu0 %v6044_v20  ;;  %5139 = vmatprep.mubr.msk.bf16.mxu0 %vm6507_vm0, %v6506_v0 }
  0x6f   :  { %5125 = vmatprep.subr.bf16.mxu0 %v6506_v0  ;;  %5582 = vmatprep.subr.bf16.mxu1 %v6508_v1 }
  0x72   :  { %5126 = vmatpush3.bf16.msra.mxu0 %v6045_v21 }
  0x73   :  { %5127 = vmatprep.subr.bf16.mxu0 %v6506_v0 }
  0x76   :  { %5128 = vmatpush3.bf16.msra.mxu0 %v6046_v22 }
  0x77   :  { %5129 = vmatprep.subr.bf16.mxu0 %v6506_v0 }
  0x7a   :  { %5130 = vmatpush3.bf16.msra.mxu0 %v6047_v23 }
  0x7b   :  { %5131 = vmatprep.subr.bf16.mxu0 %v6506_v0 }
  0x7e   :  { %5132 = vmatpush3.bf16.msra.mxu0 %v6048_v24 }
  0x7f   :  { %5133 = vmatprep.subr.bf16.mxu0 %v6506_v0 }
  0x82   :  { %5134 = vmatpush3.bf16.msra.mxu0 %v6049_v25 }
  0x83   :  { %5135 = vmatprep.subr.bf16.mxu0 %v6506_v0 }
  0x86   :  { %5136 = vmatpush3.bf16.msra.mxu0 %v6050_v26  ;;  %v6052_v26 = vld [vmem:[%s7480_s2 + $0x40] sm:$0xff]  }
  0x87   :  { %5137 = vmatprep.subr.bf16.mxu0 %v6506_v0 }
  0x8a   :  { %5138 = vmatpush3.bf16.msra.mxu0 %v6051_v27  ;;  %v6053_v27 = vld [vmem:[%s7480_s2 + $0x48] sm:$0xff]  }
  0x8b   :  { %5178 = vmatprep.subr.bf16.mxu0 %v6506_v0 }
  0x8d   :  { %5140 = vmatmul.mubr.bf16.vlgmr.msra.gmra.mrb[4].mxu0 %v6043_v19 }
  0x8e   :  { %5194 = vmatprep.mubr.msk.bf16.mxu0 %vm6507_vm0, %v6506_v0  ;;  %5179 = vmatpush3.bf16.msra.mxu0 %v6052_v26 }
  0x8f   :  { %5180 = vmatprep.subr.bf16.mxu0 %v6506_v0 }
  0x92   :  { %5181 = vmatpush3.bf16.msra.mxu0 %v6053_v27 }
  0x93   :  { %5182 = vmatprep.subr.bf16.mxu0 %v6506_v0 }
  0x96   :  { %5183 = vmatpush3.bf16.msra.mxu0 %v6054_v28 }
  0x97   :  { %5184 = vmatprep.subr.bf16.mxu0 %v6506_v0 }
  0x9a   :  { %5185 = vmatpush3.bf16.msra.mxu0 %v6055_v29  ;;  %v493_v29 = vld [vmem:[%s7483_s5 + $0x1] sm:$0x1] }
  0x9b   :  { %5186 = vmatprep.subr.bf16.mxu0 %v6506_v0 }
  0x9e   :  { %5187 = vmatpush3.bf16.msra.mxu0 %v6056_v31 }
  0x9f   :  { %5188 = vmatprep.subr.bf16.mxu0 %v6506_v0 }
  0xa2   :  { %5189 = vmatpush3.bf16.msra.mxu0 %v6057_v32 }
  0xa3   :  { %5190 = vmatprep.subr.bf16.mxu0 %v6506_v0 }
  0xa6   :  { %5191 = vmatpush3.bf16.msra.mxu0 %v6058_v34 }
  0xa7   :  { %5192 = vmatprep.subr.bf16.mxu0 %v6506_v0 }
  0xaa   :  { %5193 = vmatpush3.bf16.msra.mxu0 %v6059_v35 }
  0xab   :  { %5198 = vmatprep.subr.bf16.mxu0 %v6506_v0 }
 0x140   :  { %v6675_v43 = vpop.f32.mrb[0].mxu0 }
 0x141   :  { %v252_v44 = vmul.f32 %v6675_v43, %v6675_v43  ;;  %v5086_v45 = vpop.f32.mrb[1].mxu0 }
 0x142   :  { %v6679_v46 = vpop.f32.mrb[2].mxu0 }
 0x143   :  { %v245_v47 = vadd.f32 %v6679_v46, %v6675_v43  ;;  %v253_v48 = vmul.f32 %v6679_v46, %v6679_v46  ;;  %v5087_v49 = vpop.f32.mrb[3].mxu0 }
 0x144   :  { %v91_v49 = vlaneseq }
 0x145   :  { %v246_v50 = vrot.slane %v245_v47, 4  ;;  %v254_v51 = vadd.f32 %v253_v48, %v252_v44 }
 0x147   :  { %v247_v52 = vadd.f32 %v246_v50, %v245_v47  ;;  %v255_v53 = vrot.slane %v254_v51, 4  ;;  %v6765_v50 = vshrl.u32 %v91_v49, 7 }
 0x149   :  { %v248_v54 = vrot.slane %v247_v52, 2  ;;  %v256_v55 = vadd.f32 %v255_v53, %v254_v51  ;;  %vm620_vm5 = vcmp.lt.s32.totalorder %v6765_v50, 1  ;;  %vm627_vm7 = vcmp.lt.s32.totalorder %v6765_v50, 7 }
 0x14b   :  { %v249_v56 = vadd.f32 %v248_v54, %v247_v52  ;;  %v257_v57 = vrot.slane %v256_v55, 2  ;;  %v243_v52 = vld [vmem:[%s7482_s4] sm:$0x1]  ;;  %v6771_v54 = vsub.s32 0, %v6765_v50 }
 0x14d   :  { %v250_v58 = vrot.slane %v249_v56, 1  ;;  %v258_v59 = vadd.f32 %v257_v57, %v256_v55 }
 0x14f   :  { %v259_v60 = vrot.slane %v258_v59, 1  ;;  %v251_v61 = vadd.f32 %v250_v58, %v249_v56  ;;  %v244_v56 = vld [vmem:[%s7483_s5] sm:$0x1] }
 0x151   :  { %v260_v62 = vadd.f32 %v259_v60, %v258_v59 }
 0x153   :  { %v262_v63 = vsel %vm261_vm1, %v251_v61, %v260_v62 }
 0x154   :  { %5121 = vmatmul.mubr.f32.vlgmr.msra.gmra.mrb[0].mxu1 %v262_v63 }
 0x155   :  { %5584 = vmatpush3.bf16.msra.mxu1 %v6624_v11  ;;  %5175 = vmatprep.mubr.msk.f32.mxu1 %vm6507_vm0, %v6506_v0 }
 0x156   :  { %5585 = vmatprep.subr.bf16.mxu1 %v6508_v1 }
 0x159   :  { %5587 = vmatpush3.bf16.msra.mxu1 %v6628_v16 }
 0x15a   :  { %5588 = vmatprep.subr.bf16.mxu1 %v6508_v1 }
 0x15d   :  { %5590 = vmatpush3.bf16.msra.mxu1 %v6633_v18 }
 0x15e   :  { %5591 = vmatprep.subr.bf16.mxu1 %v6508_v1 }
 0x160   :  { %v6694_v2 = vpop.f32.mrb[4].mxu0 }
 0x161   :  { %v5141_v3 = vpop.f32.mrb[5].mxu0  ;;  %5593 = vmatpush3.bf16.msra.mxu1 %v6655_v30  ;;  %v501_v5 = vmul.f32 %v6694_v2, %v6694_v2 }
 0x162   :  { %v6697_v4 = vpop.f32.mrb[6].mxu0  ;;  %5594 = vmatprep.subr.bf16.mxu1 %v6508_v1 }
 0x163   :  { %v494_v6 = vadd.f32 %v6697_v4, %v6694_v2  ;;  %v502_v7 = vmul.f32 %v6697_v4, %v6697_v4  ;;  %v5142_v8 = vpop.f32.mrb[7].mxu0 }
 0x165   :  { %v495_v9 = vrot.slane %v494_v6, 4  ;;  %v503_v10 = vadd.f32 %v502_v7, %v501_v5  ;;  %5596 = vmatpush3.bf16.msra.mxu1 %v6659_v33 }
 0x166   :  { %5597 = vmatprep.subr.bf16.mxu1 %v6508_v1 }
 0x167   :  { %v496_v12 = vadd.f32 %v495_v9, %v494_v6  ;;  %v504_v13 = vrot.slane %v503_v10, 4 }
 0x169   :  { %v497_v14 = vrot.slane %v496_v12, 2  ;;  %v505_v15 = vadd.f32 %v504_v13, %v503_v10  ;;  %5599 = vmatpush3.bf16.msra.mxu1 %v6663_v36 }
 0x16a   :  { %5600 = vmatprep.subr.bf16.mxu1 %v6508_v1 }
 0x16b   :  { %v498_v17 = vadd.f32 %v497_v14, %v496_v12  ;;  %v506_v19 = vrot.slane %v505_v15, 2 }
 0x16d   :  { %v499_v20 = vrot.slane %v498_v17, 1  ;;  %v507_v21 = vadd.f32 %v506_v19, %v505_v15  ;;  %5602 = vmatpush3.bf16.msra.mxu1 %v6667_v39 }
 0x16e   :  { %5603 = vmatprep.subr.bf16.mxu1 %v6508_v1 }
 0x16f   :  { %v508_v22 = vrot.slane %v507_v21, 1  ;;  %v500_v23 = vadd.f32 %v499_v20, %v498_v17 }
 0x171   :  { %5605 = vmatpush3.bf16.msra.mxu1 %v6670_v42  ;;  %v509_v24 = vadd.f32 %v508_v22, %v507_v21 }
 0x172   :  { %5606 = vmatprep.subr.bf16.mxu1 %v6508_v1 }
 0x173   :  { %v510_v25 = vsel %vm261_vm1, %v500_v23, %v509_v24 }
 0x174   :  { %5176 = vmatmul.mubr.f32.vlgmr.msra.gmra.mrb[2].mxu1 %v510_v25  ;;  %v492_v25 = vld [vmem:[%s7482_s4 + $0x1] sm:$0x1] }
 0x175   :  { %5608 = vmatpush3.bf16.msra.mxu1 %v6624_v11  ;;  %5270 = vmatprep.mubr.msk.f32.mxu1 %vm6507_vm0, %v6506_v0 }
 0x176   :  { %5609 = vmatprep.subr.bf16.mxu1 %v6508_v1 }
 0x179   :  { %5611 = vmatpush3.bf16.msra.mxu1 %v6628_v16 }
 0x17a   :  { %5612 = vmatprep.subr.bf16.mxu1 %v6508_v1 }
 0x17d   :  { %5614 = vmatpush3.bf16.msra.mxu1 %v6633_v18 }
 0x17e   :  { %5615 = vmatprep.subr.bf16.mxu1 %v6508_v1 }
 0x181   :  { %5617 = vmatpush3.bf16.msra.mxu1 %v6655_v30 }
 0x182   :  { %5618 = vmatprep.subr.bf16.mxu1 %v6508_v1 }
 0x185   :  { %5620 = vmatpush3.bf16.msra.mxu1 %v6659_v33 }
 0x186   :  { %5621 = vmatprep.subr.bf16.mxu1 %v6508_v1 }
 0x189   :  { %5623 = vmatpush3.bf16.msra.mxu1 %v6663_v36 }
 0x18a   :  { %5624 = vmatprep.subr.bf16.mxu1 %v6508_v1 }
 0x18d   :  { %5626 = vmatpush3.bf16.msra.mxu1 %v6667_v39 }
 0x18e   :  { %5627 = vmatprep.subr.bf16.mxu1 %v6508_v1 }
 0x191   :  { %5629 = vmatpush3.bf16.msra.mxu1 %v6670_v42 }
 0x192   :  { %5273 = vmatprep.subr.bf16.mxu1 %v6506_v0 }
 0x227   :  { %v345_v37 = vpop.f32.mrb[0].mxu1 }
 0x228   :  { %v349_v38 = vmul.f32 0.001953125, %v345_v37  ;;  %v5122_v40 = vpop.f32.mrb[1].mxu1 }
 0x22a   :  { %v350_v41 = vmul.f32 %v349_v38, %v349_v38 }
 0x22c   :  { %v352_v44 = vrot.slane %v350_v41, 7 }
 0x22e   :  { %v354_v45 = vsub.f32 %v349_v38, %v352_v44 }
 0x230   :  { %v355_v47 = vmax.f32 %v354_v45, 0.0 }
 0x232   :  { %v356_v48 = vadd.f32 1e-05, %v355_v47  ;;  %v93_v47 = vadd.s32 8, %v6765_v50 }
 0x234   :  { %6340 = vrsqrt.f32 %v356_v48  ;;  %v98_v48 = vand.u32 7, %v6765_v50 }
 0x236   :  { %vm118_vm2 = vcmp.ge.s32.totalorder %v98_v48, 1  ;;  %vm124_vm4 = vcmp.lt.s32.totalorder %v98_v48, 7 }
 0x23e   :  { %v6341_v51 = vpop.eup %6340 }
 0x23f   :  { %v359_v53 = vrot.slane %v6341_v51, 1  ;;  %v105_v51 = vand.u32 7, %v93_v47 }
 0x241   :  { %v361_v55 = vmul.f32 %v359_v53, %v243_v52  ;;  %vm119_vm3 = vcmp.ge.s32.totalorder %v105_v51, 1  ;;  %vm125_vm6 = vcmp.lt.s32.totalorder %v105_v51, 7 }
 0x243   :  { %v362_v57 = vmul.f32 %v361_v55, %v349_v38  ;;  %v367_v58 = vrot.slane %v361_v55, %v6771_v54 }
 0x245   :  { %v363_v59 = vsub.f32 %v244_v56, %v362_v57  ;;  %v368_v60 = vmul.f32 %v367_v58, %v6675_v43  ;;  %v369_v61 = vmul.f32 %v367_v58, %v6679_v46  ;;  %v6795_v58 = vsel %vm118_vm2, 1.0, %v6506_v0 }
 0x247   :  { %v373_v62 = vrot.slane %v363_v59, %v6771_v54  ;;  %v577_v63 = vpop.f32.mrb[2].mxu1  ;;  %v6060_v59 = vld [vmem:[%s7480_s2] sm:$0xff]  }
 0x248   :  { %v581_v3 = vmul.f32 0.001953125, %v577_v63  ;;  %v5177_v5 = vpop.f32.mrb[3].mxu1 }
 0x249   :  { %v374_v6 = vadd.f32 %v373_v62, %v368_v60  ;;  %v375_v7 = vadd.f32 %v373_v62, %v369_v61  ;;  %v6802_v60 = vsel %vm119_vm3, 1.0, %v6506_v0  ;;  %v6806_v5 = vsel %vm124_vm4, 1.0, %v6506_v0 }
 0x24a   :  { %v582_v8 = vmul.f32 %v581_v3, %v581_v3 }
 0x24b   :  { %v376_v9 = vmul.f32 0.5, %v374_v6  ;;  %v377_v10 = vmul.f32 0.5, %v375_v7 }
 0x24c   :  { %v584_v12 = vrot.slane %v582_v8, 7 }
 0x24d   :  { %6342 = vtanh.f32 %v376_v9 }
 0x24e   :  { %6344 = vtanh.f32 %v377_v10  ;;  %v586_v13 = vsub.f32 %v581_v3, %v584_v12 }
 0x250   :  { %v587_v14 = vmax.f32 %v586_v13, 0.0  ;;  %v6061_v13 = vld [vmem:[%s7480_s2 + $0x8] sm:$0xff]  }
 0x252   :  { %v588_v15 = vadd.f32 1e-05, %v587_v14 }
 0x254   :  { %6346 = vrsqrt.f32 %v588_v15 }
 0x257   :  { %v6343_v43 = vpop.eup %6342 }
 0x258   :  { %v6345_v17 = vpop.eup %6344  ;;  %v380_v46 = vmul.f32 0.5, %v6343_v43 }
 0x259   :  { %v381_v19 = vmul.f32 0.5, %v6345_v17 }
 0x25a   :  { %v382_v20 = vadd.f32 0.5, %v380_v46 }
 0x25b   :  { %v383_v21 = vadd.f32 0.5, %v381_v19 }
 0x25c   :  { %v384_v22 = vmul.f32 %v382_v20, %v374_v6  ;;  %v6062_v20 = vld [vmem:[%s7480_s2 + $0x10] sm:$0xff]  }
 0x25d   :  { %v385_v23 = vmul.f32 %v383_v21, %v375_v7  ;;  %v6809_v7 = vsel %vm125_vm6, 1.0, %v6506_v0  ;;  %v6063_v21 = vld [vmem:[%s7480_s2 + $0x18] sm:$0xff]  }
 0x25e   :  { %v6347_v24 = vpop.eup %6346 }
 0x25f   :  { %v591_v26 = vrot.slane %v6347_v24, 1  ;;  %v6783_v27 = vpack.c.bf16 %v385_v23, %v384_v22  ;;  %v6064_v22 = vld [vmem:[%s7480_s2 + $0x20] sm:$0xff]   ;;  %v6065_v23 = vld [vmem:[%s7480_s2 + $0x28] sm:$0xff]   ;;  %v6066_v24 = vld [vmem:[%s7480_s2 + $0x30] sm:$0xff]  }
 0x261   :  { %v593_v28 = vmul.f32 %v591_v26, %v492_v25  ;;  %v6067_v25 = vld [vmem:[%s7480_s2 + $0x38] sm:$0xff]   ;;  %v6068_v26 = vld [vmem:[%s7480_s2 + $0x80] sm:$0xff]  }
 0x263   :  { %v594_v31 = vmul.f32 %v593_v28, %v581_v3  ;;  %v599_v32 = vrot.slane %v593_v28, %v6771_v54  ;;  %v6069_v28 = vld [vmem:[%s7480_s2 + $0x88] sm:$0xff]  }
 0x265   :  { %v595_v34 = vsub.f32 %v493_v29, %v594_v31  ;;  %v600_v35 = vmul.f32 %v599_v32, %v6694_v2  ;;  %v601_v37 = vmul.f32 %v599_v32, %v6697_v4  ;;  %v6070_v29 = vld [vmem:[%s7480_s2 + $0x90] sm:$0xff]   ;;  %v6071_v31 = vld [vmem:[%s7480_s2 + $0x98] sm:$0xff]   ;;  %v6072_v32 = vld [vmem:[%s7480_s2 + $0xa0] sm:$0xff]  }
 0x267   :  { %v605_v38 = vrot.slane %v595_v34, %v6771_v54  ;;  %v6073_v34 = vld [vmem:[%s7480_s2 + $0xa8] sm:$0xff]  }
 0x269   :  { %v606_v40 = vadd.f32 %v605_v38, %v600_v35  ;;  %v607_v41 = vadd.f32 %v605_v38, %v601_v37  ;;  %v6074_v35 = vld [vmem:[%s7480_s2 + $0xb0] sm:$0xff]   ;;  %v6075_v37 = vld [vmem:[%s7480_s2 + $0xb8] sm:$0xff]  }
 0x26b   :  { %v608_v44 = vmul.f32 0.5, %v606_v40  ;;  %v609_v45 = vmul.f32 0.5, %v607_v41 }
 0x26d   :  { %6348 = vtanh.f32 %v608_v44 }
 0x26e   :  { %6350 = vtanh.f32 %v609_v45 }
 0x277   :  { %v6349_v49 = vpop.eup %6348 }
 0x278   :  { %v6351_v52 = vpop.eup %6350  ;;  %v612_v53 = vmul.f32 0.5, %v6349_v49 }
 0x279   :  { %v613_v55 = vmul.f32 0.5, %v6351_v52 }
 0x27a   :  { %v614_v2 = vadd.f32 0.5, %v612_v53 }
 0x27b   :  { %v615_v4 = vadd.f32 0.5, %v613_v55 }
 0x27c   :  { %v616_v56 = vmul.f32 %v614_v2, %v606_v40 }
 0x27d   :  { %v617_v57 = vmul.f32 %v615_v4, %v607_v41 }
 0x27e   :  { %v618_v61 = vrot.slane %v616_v56, 7  ;;  %v625_v62 = vrot.slane %v616_v56, 1 }
 0x27f   :  { %v649_v63 = vpack.c.bf16 %v617_v57, %v616_v56  ;;  %v619_v3 = vrot.slane %v617_v57, 7  ;;  %v626_v6 = vrot.slane %v617_v57, 1 }
 0x281   :  { %5195 = vmatmul.mubr.bf16.vlgmr.msra.gmra.mrb[8].mxu0 %v649_v63  ;;  %v621_v8 = vsel %vm620_vm5, %v618_v61, %v619_v3  ;;  %v622_v9 = vsel %vm620_vm5, %v619_v3, %v618_v61  ;;  %v628_v10 = vsel %vm627_vm7, %v625_v62, %v626_v6  ;;  %v629_v12 = vsel %vm627_vm7, %v626_v6, %v625_v62  ;;  %v6076_v6 = vld [vmem:[%s7480_s2 + $0x100] sm:$0xff]  }
 0x282   :  { %5199 = vmatpush3.bf16.msra.mxu0 %v6060_v59  ;;  %5214 = vmatprep.mubr.msk.bf16.mxu0 %vm6507_vm0, %v6506_v0  ;;  %v623_v14 = vmul.f32 %v6795_v58, %v622_v9  ;;  %v624_v15 = vmul.f32 %v6802_v60, %v621_v8  ;;  %v630_v43 = vmul.f32 %v6806_v5, %v628_v10  ;;  %v6077_v8 = vld [vmem:[%s7480_s2 + $0x108] sm:$0xff]   ;;  %v6078_v9 = vld [vmem:[%s7480_s2 + $0x110] sm:$0xff]   ;;  %v6079_v10 = vld [vmem:[%s7480_s2 + $0x118] sm:$0xff]  }
 0x283   :  { %5200 = vmatprep.subr.bf16.mxu0 %v6506_v0  ;;  %v631_v17 = vmul.f32 %v6809_v7, %v629_v12  ;;  %v6080_v12 = vld [vmem:[%s7480_s2 + $0x120] sm:$0xff]  }
 0x284   :  { %v632_v46 = vpack.c.bf16 %v624_v15, %v623_v14  ;;  %v6082_v14 = vld [vmem:[%s7480_s2 + $0x130] sm:$0xff]   ;;  %v6083_v15 = vld [vmem:[%s7480_s2 + $0x138] sm:$0xff]  }
 0x285   :  { %v845_v19 = vpack.c.bf16 %v631_v17, %v630_v43 }
 0x286   :  { %5201 = vmatpush3.bf16.msra.mxu0 %v6061_v13  ;;  %v6081_v13 = vld [vmem:[%s7480_s2 + $0x128] sm:$0xff]  }
 0x287   :  { %5202 = vmatprep.subr.bf16.mxu0 %v6506_v0 }
 0x28a   :  { %5203 = vmatpush3.bf16.msra.mxu0 %v6062_v20 }
 0x28b   :  { %5204 = vmatprep.subr.bf16.mxu0 %v6506_v0 }
 0x28e   :  { %5205 = vmatpush3.bf16.msra.mxu0 %v6063_v21 }
 0x28f   :  { %5206 = vmatprep.subr.bf16.mxu0 %v6506_v0 }
 0x292   :  { %5207 = vmatpush3.bf16.msra.mxu0 %v6064_v22 }
 0x293   :  { %5208 = vmatprep.subr.bf16.mxu0 %v6506_v0 }
 0x296   :  { %5209 = vmatpush3.bf16.msra.mxu0 %v6065_v23 }
 0x297   :  { %5210 = vmatprep.subr.bf16.mxu0 %v6506_v0 }
 0x29a   :  { %5211 = vmatpush3.bf16.msra.mxu0 %v6066_v24 }
 0x29b   :  { %5212 = vmatprep.subr.bf16.mxu0 %v6506_v0 }
 0x29e   :  { %5213 = vmatpush3.bf16.msra.mxu0 %v6067_v25  ;;  %v954_v25 = vld [vmem:[%s7482_s4 + $0x2] sm:$0x1] }
 0x29f   :  { %5218 = vmatprep.subr.bf16.mxu0 %v6506_v0 }
 0x2a1   :  { %5215 = vmatmul.mubr.bf16.vlgmr.msra.gmra.mrb[8].mxu0 %v632_v46 }
 0x2a2   :  { %5219 = vmatpush3.bf16.msra.mxu0 %v6068_v26  ;;  %5234 = vmatprep.mubr.msk.bf16.mxu0 %vm6507_vm0, %v6506_v0 }
 0x2a3   :  { %5220 = vmatprep.subr.bf16.mxu0 %v6506_v0 }
 0x2a6   :  { %5221 = vmatpush3.bf16.msra.mxu0 %v6069_v28 }
 0x2a7   :  { %5222 = vmatprep.subr.bf16.mxu0 %v6506_v0 }
 0x2aa   :  { %5223 = vmatpush3.bf16.msra.mxu0 %v6070_v29  ;;  %v955_v29 = vld [vmem:[%s7483_s5 + $0x2] sm:$0x1] }
 0x2ab   :  { %5224 = vmatprep.subr.bf16.mxu0 %v6506_v0 }
 0x2ae   :  { %5225 = vmatpush3.bf16.msra.mxu0 %v6071_v31 }
 0x2af   :  { %5226 = vmatprep.subr.bf16.mxu0 %v6506_v0 }
 0x2b2   :  { %5227 = vmatpush3.bf16.msra.mxu0 %v6072_v32 }
 0x2b3   :  { %5228 = vmatprep.subr.bf16.mxu0 %v6506_v0 }
 0x2b6   :  { %5229 = vmatpush3.bf16.msra.mxu0 %v6073_v34 }
 0x2b7   :  { %5230 = vmatprep.subr.bf16.mxu0 %v6506_v0 }
 0x2ba   :  { %5231 = vmatpush3.bf16.msra.mxu0 %v6074_v35 }
 0x2bb   :  { %5232 = vmatprep.subr.bf16.mxu0 %v6506_v0 }
 0x2be   :  { %5233 = vmatpush3.bf16.msra.mxu0 %v6075_v37 }
 0x2bf   :  { %5630 = vmatprep.subr.bf16.mxu0 %v6508_v1 }
 0x2c1   :  { %5235 = vmatmul.mubr.bf16.vlgmr.msra.gmra.mrb[8].mxu0 %v845_v19 }
 0x2c2   :  { %5632 = vmatpush3.bf16.msra.mxu0 %v6624_v11  ;;  %5365 = vmatprep.mubr.msk.f32.mxu0 %vm6507_vm0, %v6506_v0 }
 0x2c3   :  { %5633 = vmatprep.subr.bf16.mxu0 %v6508_v1 }
 0x2c6   :  { %5635 = vmatpush3.bf16.msra.mxu0 %v6628_v16 }
 0x2c7   :  { %5636 = vmatprep.subr.bf16.mxu0 %v6508_v1 }
 0x2ca   :  { %5638 = vmatpush3.bf16.msra.mxu0 %v6633_v18 }
 0x2cb   :  { %5639 = vmatprep.subr.bf16.mxu0 %v6508_v1 }
 0x2ce   :  { %5641 = vmatpush3.bf16.msra.mxu0 %v6655_v30 }
 0x2cf   :  { %5642 = vmatprep.subr.bf16.mxu0 %v6508_v1 }
 0x2d2   :  { %5644 = vmatpush3.bf16.msra.mxu0 %v6659_v33 }
 0x2d3   :  { %5645 = vmatprep.subr.bf16.mxu0 %v6508_v1 }
 0x2d6   :  { %5647 = vmatpush3.bf16.msra.mxu0 %v6663_v36 }
 0x2d7   :  { %5648 = vmatprep.subr.bf16.mxu0 %v6508_v1 }
 0x2da   :  { %5650 = vmatpush3.bf16.msra.mxu0 %v6667_v39 }
 0x2db   :  { %5651 = vmatprep.subr.bf16.mxu0 %v6508_v1 }
 0x2de   :  { %5653 = vmatpush3.bf16.msra.mxu0 %v6670_v42 }
 0x2df   :  { %5368 = vmatprep.subr.bf16.mxu0 %v6506_v0 }
 0x394   :  { %v6906_v38 = vpop.f32.mrb[8].mxu0 }
 0x395   :  { %v5236_v40 = vpop.f32.mrb[9].mxu0  ;;  %v963_v44 = vmul.f32 %v6906_v38, %v6906_v38 }
 0x396   :  { %v6908_v41 = vpop.f32.mrb[10].mxu0 }
 0x397   :  { %v956_v45 = vadd.f32 %v6908_v41, %v6906_v38  ;;  %v964_v47 = vmul.f32 %v6908_v41, %v6908_v41  ;;  %v5237_v48 = vpop.f32.mrb[11].mxu0 }
 0x399   :  { %v957_v49 = vrot.slane %v956_v45, 4  ;;  %v965_v51 = vadd.f32 %v964_v47, %v963_v44 }
 0x39b   :  { %v958_v52 = vadd.f32 %v957_v49, %v956_v45  ;;  %v966_v53 = vrot.slane %v965_v51, 4 }
 0x39d   :  { %v959_v55 = vrot.slane %v958_v52, 2  ;;  %v967_v2 = vadd.f32 %v966_v53, %v965_v51 }
 0x39f   :  { %v960_v4 = vadd.f32 %v959_v55, %v958_v52  ;;  %v968_v56 = vrot.slane %v967_v2, 2 }
 0x3a1   :  { %v961_v57 = vrot.slane %v960_v4, 1  ;;  %v969_v59 = vadd.f32 %v968_v56, %v967_v2 }
 0x3a3   :  { %v970_v61 = vrot.slane %v969_v59, 1  ;;  %v962_v62 = vadd.f32 %v961_v57, %v960_v4 }
 0x3a5   :  { %v971_v63 = vadd.f32 %v970_v61, %v969_v59 }
 0x3a7   :  { %v972_v3 = vsel %vm261_vm1, %v962_v62, %v971_v63 }
 0x3a8   :  { %5271 = vmatmul.mubr.f32.vlgmr.msra.gmra.mrb[4].mxu1 %v972_v3 }
 0x3a9   :  { %5289 = vmatprep.mubr.msk.bf16.mxu1 %vm6507_vm0, %v6506_v0  ;;  %5274 = vmatpush3.bf16.msra.mxu1 %v6076_v6 }
 0x3aa   :  { %5275 = vmatprep.subr.bf16.mxu1 %v6506_v0 }
 0x3ad   :  { %5276 = vmatpush3.bf16.msra.mxu1 %v6077_v8 }
 0x3ae   :  { %5277 = vmatprep.subr.bf16.mxu1 %v6506_v0 }
 0x3b1   :  { %5278 = vmatpush3.bf16.msra.mxu1 %v6078_v9  ;;  %v6085_v9 = vld [vmem:[%s7480_s2 + $0xc8] sm:$0xff]  }
 0x3b2   :  { %5279 = vmatprep.subr.bf16.mxu1 %v6506_v0 }
 0x3b5   :  { %5280 = vmatpush3.bf16.msra.mxu1 %v6079_v10 }
 0x3b6   :  { %5281 = vmatprep.subr.bf16.mxu1 %v6506_v0 }
 0x3b9   :  { %5282 = vmatpush3.bf16.msra.mxu1 %v6080_v12 }
 0x3ba   :  { %5283 = vmatprep.subr.bf16.mxu1 %v6506_v0 }
 0x3bd   :  { %5284 = vmatpush3.bf16.msra.mxu1 %v6081_v13 }
 0x3be   :  { %5285 = vmatprep.subr.bf16.mxu1 %v6506_v0 }
 0x3c1   :  { %5286 = vmatpush3.bf16.msra.mxu1 %v6082_v14 }
 0x3c2   :  { %5287 = vmatprep.subr.bf16.mxu1 %v6506_v0 }
 0x3c5   :  { %5288 = vmatpush3.bf16.msra.mxu1 %v6083_v15 }
 0x3c6   :  { %5293 = vmatprep.subr.bf16.mxu1 %v6506_v0 }
 0x47b   :  { %v1039_v43 = vpop.f32.mrb[4].mxu1 }
 0x47c   :  { %v1043_v17 = vmul.f32 0.001953125, %v1039_v43  ;;  %v5272_v46 = vpop.f32.mrb[5].mxu1 }
 0x47d   :  { %v6087_v46 = vld [vmem:[%s7480_s2 + $0xd8] sm:$0xff]  }
 0x47e   :  { %v1044_v19 = vmul.f32 %v1043_v17, %v1043_v17 }
 0x480   :  { %v1046_v20 = vrot.slane %v1044_v19, 7  ;;  %v6088_v19 = vld [vmem:[%s7480_s2 + $0xe0] sm:$0xff]  }
 0x482   :  { %v1048_v21 = vsub.f32 %v1043_v17, %v1046_v20  ;;  %v6089_v20 = vld [vmem:[%s7480_s2 + $0xe8] sm:$0xff]  }
 0x484   :  { %v1049_v22 = vmax.f32 %v1048_v21, 0.0  ;;  %v6090_v21 = vld [vmem:[%s7480_s2 + $0xf0] sm:$0xff]  }
 0x486   :  { %v1050_v23 = vadd.f32 1e-05, %v1049_v22  ;;  %v6091_v22 = vld [vmem:[%s7480_s2 + $0xf8] sm:$0xff]  }
 0x488   :  { %6352 = vrsqrt.f32 %v1050_v23  ;;  %v6092_v23 = vld [vmem:[%s7480_s2 + $0x140] sm:$0xff]  }
 0x492   :  { %v6353_v24 = vpop.eup %6352 }
 0x493   :  { %v1053_v26 = vrot.slane %v6353_v24, 1  ;;  %v6093_v24 = vld [vmem:[%s7480_s2 + $0x148] sm:$0xff]  }
 0x495   :  { %v1055_v28 = vmul.f32 %v1053_v26, %v954_v25  ;;  %v6094_v25 = vld [vmem:[%s7480_s2 + $0x150] sm:$0xff]   ;;  %v6095_v26 = vld [vmem:[%s7480_s2 + $0x158] sm:$0xff]  }
 0x497   :  { %v1056_v31 = vmul.f32 %v1055_v28, %v1043_v17  ;;  %v1061_v32 = vrot.slane %v1055_v28, %v6771_v54  ;;  %v6086_v17 = vld [vmem:[%s7480_s2 + $0xd0] sm:$0xff]   ;;  %v6096_v28 = vld [vmem:[%s7480_s2 + $0x160] sm:$0xff]  }
 0x499   :  { %v1057_v34 = vsub.f32 %v955_v29, %v1056_v31  ;;  %v1062_v35 = vmul.f32 %v1061_v32, %v6906_v38  ;;  %v1063_v37 = vmul.f32 %v1061_v32, %v6908_v41  ;;  %v6084_v38 = vld [vmem:[%s7480_s2 + $0xc0] sm:$0xff]   ;;  %v6097_v29 = vld [vmem:[%s7480_s2 + $0x168] sm:$0xff]   ;;  %v6098_v31 = vld [vmem:[%s7480_s2 + $0x170] sm:$0xff]  }
 0x49a   :  { %v6099_v32 = vld [vmem:[%s7480_s2 + $0x178] sm:$0xff]  }
 0x49b   :  { %v1067_v40 = vrot.slane %v1057_v34, %v6771_v54 }
 0x49d   :  { %v1068_v44 = vadd.f32 %v1067_v40, %v1062_v35  ;;  %v1069_v45 = vadd.f32 %v1067_v40, %v1063_v37 }
 0x49f   :  { %v1070_v47 = vmul.f32 0.5, %v1068_v44  ;;  %v1071_v48 = vmul.f32 0.5, %v1069_v45 }
 0x4a1   :  { %6354 = vtanh.f32 %v1070_v47 }
 0x4a2   :  { %6356 = vtanh.f32 %v1071_v48 }
 0x4ab   :  { %v6355_v49 = vpop.eup %6354 }
 0x4ac   :  { %v6357_v51 = vpop.eup %6356  ;;  %v1074_v52 = vmul.f32 0.5, %v6355_v49 }
 0x4ad   :  { %v1075_v53 = vmul.f32 0.5, %v6357_v51 }
 0x4ae   :  { %v1076_v55 = vadd.f32 0.5, %v1074_v52 }
 0x4af   :  { %v1077_v2 = vadd.f32 0.5, %v1075_v53 }
 0x4b0   :  { %v1078_v4 = vmul.f32 %v1076_v55, %v1068_v44 }
 0x4b1   :  { %v1079_v56 = vmul.f32 %v1077_v2, %v1069_v45 }
 0x4b2   :  { %v1080_v41 = vrot.slane %v1078_v4, 7  ;;  %v1086_v57 = vrot.slane %v1078_v4, 1 }
 0x4b3   :  { %v6964_v59 = vpack.c.bf16 %v1079_v56, %v1078_v4  ;;  %v1081_v61 = vrot.slane %v1079_v56, 7  ;;  %v1087_v62 = vrot.slane %v1079_v56, 1 }
 0x4b5   :  { %5290 = vmatmul.mubr.bf16.vlgmr.msra.gmra.mrb[8].mxu1 %v6964_v59  ;;  %v1082_v63 = vsel %vm620_vm5, %v1080_v41, %v1081_v61  ;;  %v1083_v3 = vsel %vm620_vm5, %v1081_v61, %v1080_v41  ;;  %v1088_v6 = vsel %vm627_vm7, %v1086_v57, %v1087_v62  ;;  %v1089_v8 = vsel %vm627_vm7, %v1087_v62, %v1086_v57 }
 0x4b6   :  { %5294 = vmatpush3.bf16.msra.mxu1 %v6084_v38  ;;  %5309 = vmatprep.mubr.msk.bf16.mxu1 %vm6507_vm0, %v6506_v0  ;;  %v1084_v10 = vmul.f32 %v6795_v58, %v1083_v3  ;;  %v1085_v12 = vmul.f32 %v6802_v60, %v1082_v63  ;;  %v1090_v13 = vmul.f32 %v6806_v5, %v1088_v6  ;;  %v6100_v63 = vld [vmem:[%s7480_s2 + $0x1c0] sm:$0xff]   ;;  %v6101_v3 = vld [vmem:[%s7480_s2 + $0x1c8] sm:$0xff]   ;;  %v6102_v6 = vld [vmem:[%s7480_s2 + $0x1d0] sm:$0xff]  }
 0x4b7   :  { %5295 = vmatprep.subr.bf16.mxu1 %v6506_v0  ;;  %v1091_v14 = vmul.f32 %v6809_v7, %v1089_v8  ;;  %v6103_v8 = vld [vmem:[%s7480_s2 + $0x1d8] sm:$0xff]  }
 0x4b8   :  { %v1092_v15 = vpack.c.bf16 %v1085_v12, %v1084_v10  ;;  %v6105_v10 = vld [vmem:[%s7480_s2 + $0x1e8] sm:$0xff]   ;;  %v6106_v12 = vld [vmem:[%s7480_s2 + $0x1f0] sm:$0xff]  }
 0x4b9   :  { %v1306_v43 = vpack.c.bf16 %v1091_v14, %v1090_v13  ;;  %v6107_v13 = vld [vmem:[%s7480_s2 + $0x1f8] sm:$0xff]  }
 0x4ba   :  { %5296 = vmatpush3.bf16.msra.mxu1 %v6085_v9  ;;  %v6104_v9 = vld [vmem:[%s7480_s2 + $0x1e0] sm:$0xff]  }
 0x4bb   :  { %5297 = vmatprep.subr.bf16.mxu1 %v6506_v0 }
 0x4be   :  { %5298 = vmatpush3.bf16.msra.mxu1 %v6086_v17 }
 0x4bf   :  { %5299 = vmatprep.subr.bf16.mxu1 %v6506_v0 }
 0x4c2   :  { %5300 = vmatpush3.bf16.msra.mxu1 %v6087_v46 }
 0x4c3   :  { %5301 = vmatprep.subr.bf16.mxu1 %v6506_v0 }
 0x4c6   :  { %5302 = vmatpush3.bf16.msra.mxu1 %v6088_v19 }
 0x4c7   :  { %5303 = vmatprep.subr.bf16.mxu1 %v6506_v0 }
 0x4ca   :  { %5304 = vmatpush3.bf16.msra.mxu1 %v6089_v20 }
 0x4cb   :  { %5305 = vmatprep.subr.bf16.mxu1 %v6506_v0 }
 0x4ce   :  { %5306 = vmatpush3.bf16.msra.mxu1 %v6090_v21 }
 0x4cf   :  { %5307 = vmatprep.subr.bf16.mxu1 %v6506_v0 }
 0x4d2   :  { %5308 = vmatpush3.bf16.msra.mxu1 %v6091_v22 }
 0x4d3   :  { %5313 = vmatprep.subr.bf16.mxu1 %v6506_v0 }
 0x4d5   :  { %5310 = vmatmul.mubr.bf16.vlgmr.msra.gmra.mrb[8].mxu1 %v1092_v15 }
 0x4d6   :  { %5314 = vmatpush3.bf16.msra.mxu1 %v6092_v23  ;;  %5329 = vmatprep.mubr.msk.bf16.mxu1 %vm6507_vm0, %v6506_v0  ;;  %v1415_v23 = vld [vmem:[%s7482_s4 + $0x3] sm:$0x1] }
 0x4d7   :  { %5315 = vmatprep.subr.bf16.mxu1 %v6506_v0 }
 0x4da   :  { %5316 = vmatpush3.bf16.msra.mxu1 %v6093_v24 }
 0x4db   :  { %5317 = vmatprep.subr.bf16.mxu1 %v6506_v0 }
 0x4de   :  { %5318 = vmatpush3.bf16.msra.mxu1 %v6094_v25 }
 0x4df   :  { %5319 = vmatprep.subr.bf16.mxu1 %v6506_v0 }
 0x4e2   :  { %5320 = vmatpush3.bf16.msra.mxu1 %v6095_v26  ;;  %v1416_v26 = vld [vmem:[%s7483_s5 + $0x3] sm:$0x1] }
 0x4e3   :  { %5321 = vmatprep.subr.bf16.mxu1 %v6506_v0 }
 0x4e6   :  { %5322 = vmatpush3.bf16.msra.mxu1 %v6096_v28 }
 0x4e7   :  { %5323 = vmatprep.subr.bf16.mxu1 %v6506_v0 }
 0x4ea   :  { %5324 = vmatpush3.bf16.msra.mxu1 %v6097_v29 }
 0x4eb   :  { %5325 = vmatprep.subr.bf16.mxu1 %v6506_v0 }
 0x4ee   :  { %5326 = vmatpush3.bf16.msra.mxu1 %v6098_v31 }
 0x4ef   :  { %5327 = vmatprep.subr.bf16.mxu1 %v6506_v0 }
 0x4f2   :  { %5328 = vmatpush3.bf16.msra.mxu1 %v6099_v32 }
 0x4f3   :  { %5654 = vmatprep.subr.bf16.mxu1 %v6508_v1 }
 0x4f5   :  { %5330 = vmatmul.mubr.bf16.vlgmr.msra.gmra.mrb[8].mxu1 %v1306_v43 }
 0x4f6   :  { %5656 = vmatpush3.bf16.msra.mxu1 %v6624_v11  ;;  %5460 = vmatprep.mubr.msk.f32.mxu1 %vm6507_vm0, %v6506_v0 }
 0x4f7   :  { %5657 = vmatprep.subr.bf16.mxu1 %v6508_v1 }
 0x4fa   :  { %5659 = vmatpush3.bf16.msra.mxu1 %v6628_v16 }
 0x4fb   :  { %5660 = vmatprep.subr.bf16.mxu1 %v6508_v1 }
 0x4fe   :  { %5662 = vmatpush3.bf16.msra.mxu1 %v6633_v18 }
 0x4ff   :  { %5663 = vmatprep.subr.bf16.mxu1 %v6508_v1 }
 0x502   :  { %5665 = vmatpush3.bf16.msra.mxu1 %v6655_v30 }
 0x503   :  { %5666 = vmatprep.subr.bf16.mxu1 %v6508_v1 }
 0x506   :  { %5668 = vmatpush3.bf16.msra.mxu1 %v6659_v33 }
 0x507   :  { %5669 = vmatprep.subr.bf16.mxu1 %v6508_v1 }
 0x50a   :  { %5671 = vmatpush3.bf16.msra.mxu1 %v6663_v36 }
 0x50b   :  { %5672 = vmatprep.subr.bf16.mxu1 %v6508_v1 }
 0x50e   :  { %5674 = vmatpush3.bf16.msra.mxu1 %v6667_v39 }
 0x50f   :  { %5675 = vmatprep.subr.bf16.mxu1 %v6508_v1 }
 0x512   :  { %5677 = vmatpush3.bf16.msra.mxu1 %v6670_v42 }
 0x513   :  { %5463 = vmatprep.subr.bf16.mxu1 %v6506_v0 }
 0x5c8   :  { %v7062_v34 = vpop.f32.mrb[8].mxu1 }
 0x5c9   :  { %v5331_v35 = vpop.f32.mrb[9].mxu1  ;;  %v1424_v40 = vmul.f32 %v7062_v34, %v7062_v34 }
 0x5ca   :  { %v7064_v37 = vpop.f32.mrb[10].mxu1 }
 0x5cb   :  { %v1417_v44 = vadd.f32 %v7064_v37, %v7062_v34  ;;  %v1425_v45 = vmul.f32 %v7064_v37, %v7064_v37  ;;  %v5332_v47 = vpop.f32.mrb[11].mxu1 }
 0x5cd   :  { %v1418_v48 = vrot.slane %v1417_v44, 4  ;;  %v1426_v49 = vadd.f32 %v1425_v45, %v1424_v40 }
 0x5cf   :  { %v1419_v51 = vadd.f32 %v1418_v48, %v1417_v44  ;;  %v1427_v52 = vrot.slane %v1426_v49, 4 }
 0x5d1   :  { %v1420_v53 = vrot.slane %v1419_v51, 2  ;;  %v1428_v55 = vadd.f32 %v1427_v52, %v1426_v49 }
 0x5d3   :  { %v1421_v2 = vadd.f32 %v1420_v53, %v1419_v51  ;;  %v1429_v4 = vrot.slane %v1428_v55, 2 }
 0x5d5   :  { %v1422_v56 = vrot.slane %v1421_v2, 1  ;;  %v1430_v38 = vadd.f32 %v1429_v4, %v1428_v55 }
 0x5d7   :  { %v1431_v41 = vrot.slane %v1430_v38, 1  ;;  %v1423_v57 = vadd.f32 %v1422_v56, %v1421_v2 }
 0x5d9   :  { %v1432_v61 = vadd.f32 %v1431_v41, %v1430_v38 }
 0x5db   :  { %v1433_v62 = vsel %vm261_vm1, %v1423_v57, %v1432_v61 }
 0x5dc   :  { %5366 = vmatmul.mubr.f32.vlgmr.msra.gmra.mrb[12].mxu0 %v1433_v62 }
 0x5dd   :  { %5384 = vmatprep.mubr.msk.bf16.mxu0 %vm6507_vm0, %v6506_v0  ;;  %5369 = vmatpush3.bf16.msra.mxu0 %v6100_v63 }
 0x5de   :  { %5370 = vmatprep.subr.bf16.mxu0 %v6506_v0 }
 0x5e1   :  { %5371 = vmatpush3.bf16.msra.mxu0 %v6101_v3 }
 0x5e2   :  { %5372 = vmatprep.subr.bf16.mxu0 %v6506_v0 }
 0x5e5   :  { %5373 = vmatpush3.bf16.msra.mxu0 %v6102_v6 }
 0x5e6   :  { %5374 = vmatprep.subr.bf16.mxu0 %v6506_v0 }
 0x5e9   :  { %5375 = vmatpush3.bf16.msra.mxu0 %v6103_v8  ;;  %v6109_v8 = vld [vmem:[%s7480_s2 + $0x188] sm:$0xff]  }
 0x5ea   :  { %5376 = vmatprep.subr.bf16.mxu0 %v6506_v0 }
 0x5ed   :  { %5377 = vmatpush3.bf16.msra.mxu0 %v6104_v9 }
 0x5ee   :  { %5378 = vmatprep.subr.bf16.mxu0 %v6506_v0 }
 0x5f1   :  { %5379 = vmatpush3.bf16.msra.mxu0 %v6105_v10 }
 0x5f2   :  { %5380 = vmatprep.subr.bf16.mxu0 %v6506_v0 }
 0x5f5   :  { %5381 = vmatpush3.bf16.msra.mxu0 %v6106_v12 }
 0x5f6   :  { %5382 = vmatprep.subr.bf16.mxu0 %v6506_v0 }
 0x5f9   :  { %5383 = vmatpush3.bf16.msra.mxu0 %v6107_v13 }
 0x5fa   :  { %5388 = vmatprep.subr.bf16.mxu0 %v6506_v0 }
 0x6af   :  { %v1500_v14 = vpop.f32.mrb[12].mxu0 }
 0x6b0   :  { %v1504_v15 = vmul.f32 0.001953125, %v1500_v14  ;;  %v5367_v43 = vpop.f32.mrb[13].mxu0 }
 0x6b1   :  { %v6110_v43 = vld [vmem:[%s7480_s2 + $0x190] sm:$0xff]  }
 0x6b2   :  { %v1505_v17 = vmul.f32 %v1504_v15, %v1504_v15 }
 0x6b4   :  { %v1507_v46 = vrot.slane %v1505_v17, 7  ;;  %v6111_v17 = vld [vmem:[%s7480_s2 + $0x198] sm:$0xff]  }
 0x6b6   :  { %v1509_v19 = vsub.f32 %v1504_v15, %v1507_v46  ;;  %v6112_v46 = vld [vmem:[%s7480_s2 + $0x1a0] sm:$0xff]  }
 0x6b8   :  { %v1510_v20 = vmax.f32 %v1509_v19, 0.0  ;;  %v6113_v19 = vld [vmem:[%s7480_s2 + $0x1a8] sm:$0xff]  }
 0x6ba   :  { %v1511_v21 = vadd.f32 1e-05, %v1510_v20  ;;  %v6114_v20 = vld [vmem:[%s7480_s2 + $0x1b0] sm:$0xff]  }
 0x6bc   :  { %6358 = vrsqrt.f32 %v1511_v21  ;;  %v6115_v21 = vld [vmem:[%s7480_s2 + $0x1b8] sm:$0xff]  }
 0x6c6   :  { %v6359_v22 = vpop.eup %6358 }
 0x6c7   :  { %v1514_v24 = vrot.slane %v6359_v22, 1  ;;  %v6116_v22 = vld [vmem:[%s7480_s2 + $0x200] sm:$0xff]  }
 0x6c9   :  { %v1516_v25 = vmul.f32 %v1514_v24, %v1415_v23  ;;  %v6117_v23 = vld [vmem:[%s7480_s2 + $0x208] sm:$0xff]   ;;  %v6118_v24 = vld [vmem:[%s7480_s2 + $0x210] sm:$0xff]  }
 0x6cb   :  { %v1517_v28 = vmul.f32 %v1516_v25, %v1504_v15  ;;  %v1522_v29 = vrot.slane %v1516_v25, %v6771_v54  ;;  %v6119_v25 = vld [vmem:[%s7480_s2 + $0x218] sm:$0xff]  }
 0x6cd   :  { %v1518_v31 = vsub.f32 %v1416_v26, %v1517_v28  ;;  %v1523_v32 = vmul.f32 %v1522_v29, %v7062_v34  ;;  %v1524_v35 = vmul.f32 %v1522_v29, %v7064_v37  ;;  %v6108_v34 = vld [vmem:[%s7480_s2 + $0x180] sm:$0xff]   ;;  %v6121_v28 = vld [vmem:[%s7480_s2 + $0x228] sm:$0xff]   ;;  %v6122_v29 = vld [vmem:[%s7480_s2 + $0x230] sm:$0xff]  }
 0x6ce   :  { %v6120_v26 = vld [vmem:[%s7480_s2 + $0x220] sm:$0xff]  }
 0x6cf   :  { %v1528_v40 = vrot.slane %v1518_v31, %v6771_v54  ;;  %v6123_v31 = vld [vmem:[%s7480_s2 + $0x238] sm:$0xff]  }
 0x6d1   :  { %v1529_v44 = vadd.f32 %v1528_v40, %v1523_v32  ;;  %v1530_v45 = vadd.f32 %v1528_v40, %v1524_v35 }
 0x6d3   :  { %v1531_v47 = vmul.f32 0.5, %v1529_v44  ;;  %v1532_v48 = vmul.f32 0.5, %v1530_v45 }
 0x6d5   :  { %6360 = vtanh.f32 %v1531_v47 }
 0x6d6   :  { %6362 = vtanh.f32 %v1532_v48 }
 0x6df   :  { %v6361_v49 = vpop.eup %6360 }
 0x6e0   :  { %v6363_v51 = vpop.eup %6362  ;;  %v1535_v52 = vmul.f32 0.5, %v6361_v49 }
 0x6e1   :  { %v1536_v53 = vmul.f32 0.5, %v6363_v51 }
 0x6e2   :  { %v1537_v55 = vadd.f32 0.5, %v1535_v52 }
 0x6e3   :  { %v1538_v2 = vadd.f32 0.5, %v1536_v53 }
 0x6e4   :  { %v1539_v4 = vmul.f32 %v1537_v55, %v1529_v44 }
 0x6e5   :  { %v1540_v56 = vmul.f32 %v1538_v2, %v1530_v45  ;;  %v6124_v2 = vld [vmem:[%s7480_s2 + $0x280] sm:$0xff]  }
 0x6e6   :  { %v1541_v37 = vrot.slane %v1539_v4, 7  ;;  %v1547_v38 = vrot.slane %v1539_v4, 1 }
 0x6e7   :  { %v1571_v41 = vpack.c.bf16 %v1540_v56, %v1539_v4  ;;  %v1542_v57 = vrot.slane %v1540_v56, 7  ;;  %v1548_v61 = vrot.slane %v1540_v56, 1  ;;  %v6125_v4 = vld [vmem:[%s7480_s2 + $0x288] sm:$0xff]   ;;  %v6126_v56 = vld [vmem:[%s7480_s2 + $0x290] sm:$0xff]  }
 0x6e9   :  { %5385 = vmatmul.mubr.bf16.vlgmr.msra.gmra.mrb[16].mxu0 %v1571_v41  ;;  %v1543_v62 = vsel %vm620_vm5, %v1541_v37, %v1542_v57  ;;  %v1544_v63 = vsel %vm620_vm5, %v1542_v57, %v1541_v37  ;;  %v1549_v3 = vsel %vm627_vm7, %v1547_v38, %v1548_v61  ;;  %v1550_v6 = vsel %vm627_vm7, %v1548_v61, %v1547_v38  ;;  %v6128_v37 = vld [vmem:[%s7480_s2 + $0x2a0] sm:$0xff]   ;;  %v6129_v38 = vld [vmem:[%s7480_s2 + $0x2a8] sm:$0xff]   ;;  %v6130_v41 = vld [vmem:[%s7480_s2 + $0x2b0] sm:$0xff]  }
 0x6ea   :  { %5389 = vmatpush3.bf16.msra.mxu0 %v6108_v34  ;;  %5404 = vmatprep.mubr.msk.bf16.mxu0 %vm6507_vm0, %v6506_v0  ;;  %v1545_v9 = vmul.f32 %v6795_v58, %v1544_v63  ;;  %v1546_v10 = vmul.f32 %v6802_v60, %v1543_v62  ;;  %v1551_v12 = vmul.f32 %v6806_v5, %v1549_v3  ;;  %v6127_v34 = vld [vmem:[%s7480_s2 + $0x298] sm:$0xff]  }
 0x6eb   :  { %5390 = vmatprep.subr.bf16.mxu0 %v6506_v0  ;;  %v1552_v13 = vmul.f32 %v6809_v7, %v1550_v6  ;;  %v6131_v57 = vld [vmem:[%s7480_s2 + $0x2b8] sm:$0xff]  }
 0x6ec   :  { %v1553_v14 = vpack.c.bf16 %v1546_v10, %v1545_v9 }
 0x6ed   :  { %v1767_v15 = vpack.c.bf16 %v1552_v13, %v1551_v12  ;;  %v1876_v13 = vld [vmem:[%s7482_s4 + $0x4] sm:$0x1] }
 0x6ee   :  { %5391 = vmatpush3.bf16.msra.mxu0 %v6109_v8 }
 0x6ef   :  { %5392 = vmatprep.subr.bf16.mxu0 %v6506_v0 }
 0x6f2   :  { %5393 = vmatpush3.bf16.msra.mxu0 %v6110_v43  ;;  %v1877_v43 = vld [vmem:[%s7483_s5 + $0x4] sm:$0x1] }
 0x6f3   :  { %5394 = vmatprep.subr.bf16.mxu0 %v6506_v0 }
 0x6f6   :  { %5395 = vmatpush3.bf16.msra.mxu0 %v6111_v17 }
 0x6f7   :  { %5396 = vmatprep.subr.bf16.mxu0 %v6506_v0 }
 0x6fa   :  { %5397 = vmatpush3.bf16.msra.mxu0 %v6112_v46 }
 0x6fb   :  { %5398 = vmatprep.subr.bf16.mxu0 %v6506_v0 }
 0x6fe   :  { %5399 = vmatpush3.bf16.msra.mxu0 %v6113_v19 }
 0x6ff   :  { %5400 = vmatprep.subr.bf16.mxu0 %v6506_v0 }
 0x702   :  { %5401 = vmatpush3.bf16.msra.mxu0 %v6114_v20 }
 0x703   :  { %5402 = vmatprep.subr.bf16.mxu0 %v6506_v0 }
 0x706   :  { %5403 = vmatpush3.bf16.msra.mxu0 %v6115_v21 }
 0x707   :  { %5408 = vmatprep.subr.bf16.mxu0 %v6506_v0 }
 0x709   :  { %5405 = vmatmul.mubr.bf16.vlgmr.msra.gmra.mrb[16].mxu0 %v1553_v14 }
 0x70a   :  { %5409 = vmatpush3.bf16.msra.mxu0 %v6116_v22  ;;  %5424 = vmatprep.mubr.msk.bf16.mxu0 %vm6507_vm0, %v6506_v0 }
 0x70b   :  { %5410 = vmatprep.subr.bf16.mxu0 %v6506_v0 }
 0x70e   :  { %5411 = vmatpush3.bf16.msra.mxu0 %v6117_v23 }
 0x70f   :  { %5412 = vmatprep.subr.bf16.mxu0 %v6506_v0 }
 0x712   :  { %5413 = vmatpush3.bf16.msra.mxu0 %v6118_v24 }
 0x713   :  { %5414 = vmatprep.subr.bf16.mxu0 %v6506_v0 }
 0x716   :  { %5415 = vmatpush3.bf16.msra.mxu0 %v6119_v25 }
 0x717   :  { %5416 = vmatprep.subr.bf16.mxu0 %v6506_v0 }
 0x71a   :  { %5417 = vmatpush3.bf16.msra.mxu0 %v6120_v26 }
 0x71b   :  { %5418 = vmatprep.subr.bf16.mxu0 %v6506_v0 }
 0x71e   :  { %5419 = vmatpush3.bf16.msra.mxu0 %v6121_v28 }
 0x71f   :  { %5420 = vmatprep.subr.bf16.mxu0 %v6506_v0 }
 0x722   :  { %5421 = vmatpush3.bf16.msra.mxu0 %v6122_v29 }
 0x723   :  { %5422 = vmatprep.subr.bf16.mxu0 %v6506_v0 }
 0x726   :  { %5423 = vmatpush3.bf16.msra.mxu0 %v6123_v31 }
 0x727   :  { %5678 = vmatprep.subr.bf16.mxu0 %v6508_v1 }
 0x729   :  { %5425 = vmatmul.mubr.bf16.vlgmr.msra.gmra.mrb[16].mxu0 %v1767_v15 }
 0x72a   :  { %5680 = vmatpush3.bf16.msra.mxu0 %v6624_v11  ;;  %5555 = vmatprep.mubr.msk.f32.mxu0 %vm6507_vm0, %v6506_v0 }
 0x72b   :  { %5681 = vmatprep.subr.bf16.mxu0 %v6508_v1 }
 0x72e   :  { %5683 = vmatpush3.bf16.msra.mxu0 %v6628_v16 }
 0x72f   :  { %5684 = vmatprep.subr.bf16.mxu0 %v6508_v1 }
 0x732   :  { %5686 = vmatpush3.bf16.msra.mxu0 %v6633_v18 }
 0x733   :  { %5687 = vmatprep.subr.bf16.mxu0 %v6508_v1 }
 0x736   :  { %5689 = vmatpush3.bf16.msra.mxu0 %v6655_v30 }
 0x737   :  { %5690 = vmatprep.subr.bf16.mxu0 %v6508_v1 }
 0x73a   :  { %5692 = vmatpush3.bf16.msra.mxu0 %v6659_v33 }
 0x73b   :  { %5693 = vmatprep.subr.bf16.mxu0 %v6508_v1 }
 0x73e   :  { %5695 = vmatpush3.bf16.msra.mxu0 %v6663_v36 }
 0x73f   :  { %5696 = vmatprep.subr.bf16.mxu0 %v6508_v1 }
 0x742   :  { %5698 = vmatpush3.bf16.msra.mxu0 %v6667_v39 }
 0x743   :  { %5699 = vmatprep.subr.bf16.mxu0 %v6508_v1 }
 0x746   :  { %5701 = vmatpush3.bf16.msra.mxu0 %v6670_v42 }
 0x7fc   :  { %v7214_v11 = vpop.f32.mrb[16].mxu0 }
 0x7fd   :  { %v5426_v16 = vpop.f32.mrb[17].mxu0  ;;  %v1885_v30 = vmul.f32 %v7214_v11, %v7214_v11 }
 0x7fe   :  { %v7216_v18 = vpop.f32.mrb[18].mxu0 }
 0x7ff   :  { %v1878_v33 = vadd.f32 %v7216_v18, %v7214_v11  ;;  %v1886_v36 = vmul.f32 %v7216_v18, %v7216_v18  ;;  %v5427_v32 = vpop.f32.mrb[19].mxu0 }
 0x801   :  { %v1879_v39 = vrot.slane %v1878_v33, 4  ;;  %v1887_v35 = vadd.f32 %v1886_v36, %v1885_v30 }
 0x803   :  { %v1880_v1 = vadd.f32 %v1879_v39, %v1878_v33  ;;  %v1888_v40 = vrot.slane %v1887_v35, 4 }
 0x805   :  { %v1881_v42 = vrot.slane %v1880_v1, 2  ;;  %v1889_v44 = vadd.f32 %v1888_v40, %v1887_v35 }
 0x807   :  { %v1882_v45 = vadd.f32 %v1881_v42, %v1880_v1  ;;  %v1890_v47 = vrot.slane %v1889_v44, 2 }
 0x809   :  { %v1883_v48 = vrot.slane %v1882_v45, 1  ;;  %v1891_v49 = vadd.f32 %v1890_v47, %v1889_v44 }
 0x80b   :  { %v1892_v51 = vrot.slane %v1891_v49, 1  ;;  %v1884_v52 = vadd.f32 %v1883_v48, %v1882_v45  ;;  %v6133_v48 = vld [vmem:[%s7480_s2 + $0x248] sm:$0xff]  }
 0x80d   :  { %v1893_v53 = vadd.f32 %v1892_v51, %v1891_v49 }
 0x80f   :  { %v1894_v55 = vsel %vm261_vm1, %v1884_v52, %v1893_v53 }
 0x810   :  { %5461 = vmatmul.mubr.f32.vlgmr.msra.gmra.mrb[6].mxu1 %v1894_v55 }
 0x811   :  { %5479 = vmatprep.mubr.msk.bf16.mxu1 %vm6507_vm0, %v6506_v0  ;;  %5464 = vmatpush3.bf16.msra.mxu1 %v6124_v2 }
 0x812   :  { %5465 = vmatprep.subr.bf16.mxu1 %v6506_v0 }
 0x815   :  { %5466 = vmatpush3.bf16.msra.mxu1 %v6125_v4  ;;  %v6134_v4 = vld [vmem:[%s7480_s2 + $0x250] sm:$0xff]  }
 0x816   :  { %5467 = vmatprep.subr.bf16.mxu1 %v6506_v0 }
 0x819   :  { %5468 = vmatpush3.bf16.msra.mxu1 %v6126_v56  ;;  %v6139_v56 = vld [vmem:[%s7480_s2 + $0x278] sm:$0xff]  }
 0x81a   :  { %5469 = vmatprep.subr.bf16.mxu1 %v6506_v0 }
 0x81d   :  { %5470 = vmatpush3.bf16.msra.mxu1 %v6127_v34  ;;  %v6140_v34 = vld [vmem:[%s7480_s2 + $0x2c0] sm:$0xff]  }
 0x81e   :  { %5471 = vmatprep.subr.bf16.mxu1 %v6506_v0 }
 0x821   :  { %5472 = vmatpush3.bf16.msra.mxu1 %v6128_v37  ;;  %v6141_v37 = vld [vmem:[%s7480_s2 + $0x2c8] sm:$0xff]  }
 0x822   :  { %5473 = vmatprep.subr.bf16.mxu1 %v6506_v0 }
 0x825   :  { %5474 = vmatpush3.bf16.msra.mxu1 %v6129_v38  ;;  %v6142_v38 = vld [vmem:[%s7480_s2 + $0x2d0] sm:$0xff]  }
 0x826   :  { %5475 = vmatprep.subr.bf16.mxu1 %v6506_v0 }
 0x829   :  { %5476 = vmatpush3.bf16.msra.mxu1 %v6130_v41  ;;  %v6143_v41 = vld [vmem:[%s7480_s2 + $0x2d8] sm:$0xff]  }
 0x82a   :  { %5477 = vmatprep.subr.bf16.mxu1 %v6506_v0 }
 0x82d   :  { %5478 = vmatpush3.bf16.msra.mxu1 %v6131_v57  ;;  %v6144_v57 = vld [vmem:[%s7480_s2 + $0x2e0] sm:$0xff]  }
 0x82e   :  { %5483 = vmatprep.subr.bf16.mxu1 %v6506_v0 }
 0x8e3   :  { %v1961_v61 = vpop.f32.mrb[6].mxu1 }
 0x8e4   :  { %v1965_v62 = vmul.f32 0.001953125, %v1961_v61  ;;  %v5462_v63 = vpop.f32.mrb[7].mxu1  ;;  %v6145_v61 = vld [vmem:[%s7480_s2 + $0x2e8] sm:$0xff]  }
 0x8e5   :  { %v6147_v63 = vld [vmem:[%s7480_s2 + $0x2f8] sm:$0xff]  }
 0x8e6   :  { %v1966_v3 = vmul.f32 %v1965_v62, %v1965_v62 }
 0x8e8   :  { %v1968_v6 = vrot.slane %v1966_v3, 7  ;;  %v6150_v3 = vld [vmem:[#allocation4 + $0x10c] ss:$16 sps:$4 sm:$0xff]  }
 0x8ea   :  { %v1970_v8 = vsub.f32 %v1965_v62, %v1968_v6  ;;  %v6148_v6 = vld [vmem:[#allocation4 + $0x108] ss:$16 sps:$4 sm:$0xff]  }
 0x8ec   :  { %v1971_v9 = vmax.f32 %v1970_v8, 0.0  ;;  %v6153_v8 = vld [vmem:[#allocation4 + $0x12c] ss:$16 sps:$4 sm:$0xff]  }
 0x8ee   :  { %v1972_v10 = vadd.f32 1e-05, %v1971_v9  ;;  %v6151_v9 = vld [vmem:[#allocation4 + $0x128] ss:$16 sps:$4 sm:$0xff]  }
 0x8f0   :  { %6364 = vrsqrt.f32 %v1972_v10  ;;  %v6509_v10 = vmov 0  }
 0x8fa   :  { %v6365_v12 = vpop.eup %6364 }
 0x8fb   :  { %v1975_v14 = vrot.slane %v6365_v12, 1  ;;  %v6156_v12 = vld [vmem:[#allocation4 + $0x14c] ss:$16 sps:$4 sm:$0xff]  }
 0x8fd   :  { %v1977_v15 = vmul.f32 %v1975_v14, %v1876_v13  ;;  %v6154_v13 = vld [vmem:[#allocation4 + $0x148] ss:$16 sps:$4 sm:$0xff]   ;;  %v6159_v14 = vld [vmem:[#allocation4 + $0x16c] ss:$16 sps:$4 sm:$0xff]  }
 0x8ff   :  { %v1978_v17 = vmul.f32 %v1977_v15, %v1965_v62  ;;  %v1983_v46 = vrot.slane %v1977_v15, %v6771_v54  ;;  %v6146_v62 = vld [vmem:[%s7480_s2 + $0x2f0] sm:$0xff]   ;;  %v6157_v15 = vld [vmem:[#allocation4 + $0x168] ss:$16 sps:$4 sm:$0xff]  }
 0x901   :  { %v1979_v19 = vsub.f32 %v1877_v43, %v1978_v17  ;;  %v1984_v20 = vmul.f32 %v1983_v46, %v7214_v11  ;;  %v1985_v21 = vmul.f32 %v1983_v46, %v7216_v18  ;;  %v6132_v11 = vld [vmem:[%s7480_s2 + $0x240] sm:$0xff]   ;;  %v6160_v43 = vld [vmem:[#allocation4 + $0x188] ss:$16 sps:$4 sm:$0xff]   ;;  %v6165_v17 = vld [vmem:[#allocation4 + $0x1ac] ss:$16 sps:$4 sm:$0xff]  }
 0x902   :  { %v6163_v46 = vld [vmem:[#allocation4 + $0x1a8] ss:$16 sps:$4 sm:$0xff]  }
 0x903   :  { %v1989_v22 = vrot.slane %v1979_v19, %v6771_v54  ;;  %v6168_v19 = vld [vmem:[#allocation4 + $0x1cc] ss:$16 sps:$4 sm:$0xff]  }
 0x905   :  { %v1990_v23 = vadd.f32 %v1989_v22, %v1984_v20  ;;  %v1991_v24 = vadd.f32 %v1989_v22, %v1985_v21  ;;  %v6166_v20 = vld [vmem:[#allocation4 + $0x1c8] ss:$16 sps:$4 sm:$0xff]   ;;  %v6171_v21 = vld [vmem:[#allocation4 + $0x1ec] ss:$16 sps:$4 sm:$0xff]  }
 0x906   :  { %v6169_v22 = vld [vmem:[#allocation4 + $0x1e8] ss:$16 sps:$4 sm:$0xff]  }
 0x907   :  { %v1992_v25 = vmul.f32 0.5, %v1990_v23  ;;  %v1993_v26 = vmul.f32 0.5, %v1991_v24 }
 0x909   :  { %6366 = vtanh.f32 %v1992_v25  ;;  %v6177_v25 = vld [vmem:[#allocation4 + $0x2c] ss:$16 sps:$4 sm:$0xff]  }
 0x90a   :  { %6368 = vtanh.f32 %v1993_v26  ;;  %v6175_v26 = vld [vmem:[#allocation4 + $0x28] ss:$16 sps:$4 sm:$0xff]  }
 0x913   :  { %v6367_v28 = vpop.eup %6366 }
 0x914   :  { %v6369_v29 = vpop.eup %6368  ;;  %v1996_v31 = vmul.f32 0.5, %v6367_v28  ;;  %v6180_v28 = vld [vmem:[#allocation4 + $0x4c] ss:$16 sps:$4 sm:$0xff]  }
 0x915   :  { %v1997_v16 = vmul.f32 0.5, %v6369_v29  ;;  %v6178_v29 = vld [vmem:[#allocation4 + $0x48] ss:$16 sps:$4 sm:$0xff]  }
 0x916   :  { %v1998_v30 = vadd.f32 0.5, %v1996_v31  ;;  %v6183_v31 = vld [vmem:[#allocation4 + $0x6c] ss:$16 sps:$4 sm:$0xff]  }
 0x917   :  { %v1999_v33 = vadd.f32 0.5, %v1997_v16  ;;  %v6181_v16 = vld [vmem:[#allocation4 + $0x68] ss:$16 sps:$4 sm:$0xff]  }
 0x918   :  { %v2000_v36 = vmul.f32 %v1998_v30, %v1990_v23  ;;  %v6174_v23 = vld [vmem:[#allocation4 + $0xc] ss:$16 sps:$4 sm:$0xff]  }
 0x919   :  { %v2001_v32 = vmul.f32 %v1999_v33, %v1991_v24  ;;  %v6172_v24 = vld [vmem:[#allocation4 + $0x8] ss:$16 sps:$4 sm:$0xff]   ;;  %v6186_v30 = vld [vmem:[#allocation4 + $0x8c] ss:$16 sps:$4 sm:$0xff]  }
 0x91a   :  { %v2002_v18 = vrot.slane %v2000_v36, 7  ;;  %v2008_v39 = vrot.slane %v2000_v36, 1  ;;  %v6184_v33 = vld [vmem:[#allocation4 + $0x88] ss:$16 sps:$4 sm:$0xff]  }
 0x91b   :  { %v7272_v35 = vpack.c.bf16 %v2001_v32, %v2000_v36  ;;  %v2003_v1 = vrot.slane %v2001_v32, 7  ;;  %v2009_v40 = vrot.slane %v2001_v32, 1  ;;  %v6189_v36 = vld [vmem:[#allocation4 + $0xac] ss:$16 sps:$4 sm:$0xff]   ;;  %v6187_v32 = vld [vmem:[#allocation4 + $0xa8] ss:$16 sps:$4 sm:$0xff]  }
 0x91d   :  { %5480 = vmatmul.mubr.bf16.vlgmr.msra.gmra.mrb[12].mxu1 %v7272_v35  ;;  %v2004_v42 = vsel %vm620_vm5, %v2002_v18, %v2003_v1  ;;  %v2005_v44 = vsel %vm620_vm5, %v2003_v1, %v2002_v18  ;;  %v2010_v45 = vsel %vm627_vm7, %v2008_v39, %v2009_v40  ;;  %v2011_v47 = vsel %vm627_vm7, %v2009_v40, %v2008_v39  ;;  %v6190_v18 = vld [vmem:[#allocation4 + $0xc8] ss:$16 sps:$4 sm:$0xff]   ;;  %v6195_v39 = vld [vmem:[#allocation4 + $0xec] ss:$16 sps:$4 sm:$0xff]  }
 0x91e   :  { %5484 = vmatpush3.bf16.msra.mxu1 %v6132_v11  ;;  %5499 = vmatprep.mubr.msk.bf16.mxu1 %vm6507_vm0, %v6506_v0  ;;  %v2006_v49 = vmul.f32 %v6795_v58, %v2005_v44  ;;  %v2007_v51 = vmul.f32 %v6802_v60, %v2004_v42  ;;  %v2012_v52 = vmul.f32 %v6806_v5, %v2010_v45  ;;  %v6135_v58 = vld [vmem:[%s7480_s2 + $0x258] sm:$0xff]   ;;  %v6136_v60 = vld [vmem:[%s7480_s2 + $0x260] sm:$0xff]   ;;  %v6137_v5 = vld [vmem:[%s7480_s2 + $0x268] sm:$0xff]  }
 0x91f   :  { %5485 = vmatprep.subr.bf16.mxu1 %v6506_v0  ;;  %v2013_v53 = vmul.f32 %v6809_v7, %v2011_v47  ;;  %v6138_v7 = vld [vmem:[%s7480_s2 + $0x270] sm:$0xff]   ;;  %v6192_v11 = vld [vmem:[#allocation4 + $0xcc] ss:$16 sps:$4 sm:$0xff]   ;;  %v6193_v1 = vld [vmem:[#allocation4 + $0xe8] ss:$16 sps:$4 sm:$0xff]  }
 0x920   :  { %v2014_v55 = vpack.c.bf16 %v2007_v51, %v2006_v49  ;;  %v6198_v40 = vld [vmem:[#allocation4 + $0x20c] ss:$16 sps:$4 sm:$0xff]   ;;  %v6196_v42 = vld [vmem:[#allocation4 + $0x208] ss:$16 sps:$4 sm:$0xff]  }
 0x921   :  { %v2228_v2 = vpack.c.bf16 %v2013_v53, %v2012_v52  ;;  %v6201_v44 = vld [vmem:[#allocation4 + $0x22c] ss:$16 sps:$4 sm:$0xff]   ;;  %v6199_v45 = vld [vmem:[#allocation4 + $0x228] ss:$16 sps:$4 sm:$0xff]  }
 0x922   :  { %5486 = vmatpush3.bf16.msra.mxu1 %v6133_v48  ;;  %v6204_v47 = vld [vmem:[#allocation4 + $0x24c] ss:$16 sps:$4 sm:$0xff]   ;;  %v6202_v48 = vld [vmem:[#allocation4 + $0x248] ss:$16 sps:$4 sm:$0xff]  }
 0x923   :  { %5487 = vmatprep.subr.bf16.mxu1 %v6506_v0  ;;  %v6207_v49 = vld [vmem:[#allocation4 + $0x26c] ss:$16 sps:$4 sm:$0xff]   ;;  %v6205_v51 = vld [vmem:[#allocation4 + $0x268] ss:$16 sps:$4 sm:$0xff]  }
 0x924   :  { %v6210_v52 = vld [vmem:[#allocation4 + $0x28c] ss:$16 sps:$4 sm:$0xff]   ;;  %v6208_v53 = vld [vmem:[#allocation4 + $0x288] ss:$16 sps:$4 sm:$0xff]  }
 0x926   :  { %5488 = vmatpush3.bf16.msra.mxu1 %v6134_v4  ;;  %v6216_v4 = vld [vmem:[#allocation4 + $0x2cc] ss:$16 sps:$4 sm:$0xff]  }
 0x927   :  { %5489 = vmatprep.subr.bf16.mxu1 %v6506_v0 }
 0x92a   :  { %5490 = vmatpush3.bf16.msra.mxu1 %v6135_v58  ;;  %v6214_v58 = vld [vmem:[#allocation4 + $0x2c8] ss:$16 sps:$4 sm:$0xff]  }
 0x92b   :  { %5491 = vmatprep.subr.bf16.mxu1 %v6506_v0 }
 0x92e   :  { %5492 = vmatpush3.bf16.msra.mxu1 %v6136_v60  ;;  %v6219_v60 = vld [vmem:[#allocation4 + $0x2ec] ss:$16 sps:$4 sm:$0xff]  }
 0x92f   :  { %5493 = vmatprep.subr.bf16.mxu1 %v6506_v0 }
 0x932   :  { %5494 = vmatpush3.bf16.msra.mxu1 %v6137_v5  ;;  %v6217_v5 = vld [vmem:[#allocation4 + $0x2e8] ss:$16 sps:$4 sm:$0xff]  }
 0x933   :  { %5495 = vmatprep.subr.bf16.mxu1 %v6506_v0 }
 0x936   :  { %5496 = vmatpush3.bf16.msra.mxu1 %v6138_v7  ;;  %v6222_v7 = vld [vmem:[#allocation4 + $0x104] ss:$16 sps:$4 sm:$0xff]  }
 0x937   :  { %5497 = vmatprep.subr.bf16.mxu1 %v6506_v0  ;;  %2689 = vmatprep.subr.bf16.mxu0 %v6222_v7  ;;  %v6279_v7 = vld [vmem:[#allocation4 + $0x264] ss:$16 sps:$4 sm:$0xff]  }
 0x93a   :  { %5498 = vmatpush3.bf16.msra.mxu1 %v6139_v56 }
 0x93b   :  { %5503 = vmatprep.subr.bf16.mxu1 %v6506_v0 }
 0x93d   :  { %5500 = vmatmul.mubr.bf16.vlgmr.msra.gmra.mrb[12].mxu1 %v2014_v55  ;;  %v6213_v55 = vld [vmem:[#allocation4 + $0x2ac] ss:$16 sps:$4 sm:$0xff]  }
 0x93e   :  { %5504 = vmatpush3.bf16.msra.mxu1 %v6140_v34  ;;  %5519 = vmatprep.mubr.msk.bf16.mxu1 %vm6507_vm0, %v6506_v0 }
 0x93f   :  { %5505 = vmatprep.subr.bf16.mxu1 %v6506_v0 }
 0x942   :  { %5506 = vmatpush3.bf16.msra.mxu1 %v6141_v37 }
 0x943   :  { %5507 = vmatprep.subr.bf16.mxu1 %v6506_v0 }
 0x946   :  { %5508 = vmatpush3.bf16.msra.mxu1 %v6142_v38 }
 0x947   :  { %5509 = vmatprep.subr.bf16.mxu1 %v6506_v0 }
 0x94a   :  { %5510 = vmatpush3.bf16.msra.mxu1 %v6143_v41 }
 0x94b   :  { %5511 = vmatprep.subr.bf16.mxu1 %v6506_v0 }
 0x94e   :  { %5512 = vmatpush3.bf16.msra.mxu1 %v6144_v57 }
 0x94f   :  { %5513 = vmatprep.subr.bf16.mxu1 %v6506_v0 }
 0x952   :  { %5514 = vmatpush3.bf16.msra.mxu1 %v6145_v61 }
 0x953   :  { %5515 = vmatprep.subr.bf16.mxu1 %v6506_v0 }
 0x956   :  { %5516 = vmatpush3.bf16.msra.mxu1 %v6146_v62 }
 0x957   :  { %5517 = vmatprep.subr.bf16.mxu1 %v6506_v0  ;;  %v6162_v0 = vld [vmem:[#allocation4 + $0x18c] ss:$16 sps:$4 sm:$0xff]  }
 0x95a   :  { %5518 = vmatpush3.bf16.msra.mxu1 %v6147_v63 }
 0x95b   :  { %2732 = vmatprep.subr.bf16.mxu1 %v6150_v3 }
 0x95d   :  { %5520 = vmatmul.mubr.bf16.vlgmr.msra.gmra.mrb[12].mxu1 %v2228_v2  ;;  %v6211_v2 = vld [vmem:[#allocation4 + $0x2a8] ss:$16 sps:$4 sm:$0xff]  }
 0x95e   :  { %2733 = vmatpush1.bf16.msra.mxu1 %v6148_v6  ;;  %2764 = vmatprep.mubr.bf16.mxu1 %v6509_v10 }
 0x95f   :  { %2734 = vmatprep.subr.bf16.mxu1 %v6153_v8 }
 0x962   :  { %2735 = vmatpush1.bf16.msra.mxu1 %v6151_v9 }
 0x963   :  { %2736 = vmatprep.subr.bf16.mxu1 %v6156_v12 }
 0x966   :  { %2737 = vmatpush1.bf16.msra.mxu1 %v6154_v13 }
 0x967   :  { %2738 = vmatprep.subr.bf16.mxu1 %v6159_v14 }
 0x96a   :  { %2739 = vmatpush1.bf16.msra.mxu1 %v6157_v15 }
 0x96b   :  { %2740 = vmatprep.subr.bf16.mxu1 %v6162_v0 }
 0x96e   :  { %2741 = vmatpush1.bf16.msra.mxu1 %v6160_v43  ;;  %v6220_v43 = vld [vmem:[#allocation4 + $0x100] ss:$16 sps:$4 sm:$0xff]  }
 0x96f   :  { %2742 = vmatprep.subr.bf16.mxu1 %v6165_v17 }
 0x972   :  { %2743 = vmatpush1.bf16.msra.mxu1 %v6163_v46 }
 0x973   :  { %2744 = vmatprep.subr.bf16.mxu1 %v6168_v19  ;;  %v6225_v19 = vld [vmem:[#allocation4 + $0x124] ss:$16 sps:$4 sm:$0xff]  }
 0x976   :  { %2745 = vmatpush1.bf16.msra.mxu1 %v6166_v20 }
 0x977   :  { %2746 = vmatprep.subr.bf16.mxu1 %v6171_v21  ;;  %v6223_v21 = vld [vmem:[#allocation4 + $0x120] ss:$16 sps:$4 sm:$0xff]  }
 0x97a   :  { %2747 = vmatpush1.bf16.msra.mxu1 %v6169_v22  ;;  %v6228_v22 = vld [vmem:[#allocation4 + $0x144] ss:$16 sps:$4 sm:$0xff]  }
 0x97b   :  { %2978 = vmatprep.subr.bf16.mxu1 %v6174_v23  ;;  %v6226_v23 = vld [vmem:[#allocation4 + $0x140] ss:$16 sps:$4 sm:$0xff]  }
 0x97d   :  { %2765 = vmatmul.mubr.bf16.vlgmr.msra.gmra.mrb[16].mxu1 %v6964_v59 }
 0x97e   :  { %2979 = vmatpush1.bf16.msra.mxu1 %v6172_v24  ;;  %3010 = vmatprep.mubr.bf16.mxu1 %v6509_v10  ;;  %v6231_v24 = vld [vmem:[#allocation4 + $0x164] ss:$16 sps:$4 sm:$0xff]  }
 0x97f   :  { %2980 = vmatprep.subr.bf16.mxu1 %v6177_v25  ;;  %v6229_v25 = vld [vmem:[#allocation4 + $0x160] ss:$16 sps:$4 sm:$0xff]  }
 0x982   :  { %2981 = vmatpush1.bf16.msra.mxu1 %v6175_v26  ;;  %v6234_v26 = vld [vmem:[#allocation4 + $0x184] ss:$16 sps:$4 sm:$0xff]  }
 0x983   :  { %2982 = vmatprep.subr.bf16.mxu1 %v6180_v28  ;;  %v6232_v28 = vld [vmem:[#allocation4 + $0x180] ss:$16 sps:$4 sm:$0xff]  }
 0x986   :  { %2983 = vmatpush1.bf16.msra.mxu1 %v6178_v29  ;;  %v6237_v29 = vld [vmem:[#allocation4 + $0x1a4] ss:$16 sps:$4 sm:$0xff]  }
 0x987   :  { %2984 = vmatprep.subr.bf16.mxu1 %v6183_v31  ;;  %v6235_v31 = vld [vmem:[#allocation4 + $0x1a0] ss:$16 sps:$4 sm:$0xff]  }
 0x98a   :  { %2985 = vmatpush1.bf16.msra.mxu1 %v6181_v16  ;;  %v6240_v16 = vld [vmem:[#allocation4 + $0x1c4] ss:$16 sps:$4 sm:$0xff]  }
 0x98b   :  { %2986 = vmatprep.subr.bf16.mxu1 %v6186_v30  ;;  %v6238_v30 = vld [vmem:[#allocation4 + $0x1c0] ss:$16 sps:$4 sm:$0xff]  }
 0x98e   :  { %2987 = vmatpush1.bf16.msra.mxu1 %v6184_v33  ;;  %v6243_v33 = vld [vmem:[#allocation4 + $0x1e4] ss:$16 sps:$4 sm:$0xff]  }
 0x98f   :  { %2988 = vmatprep.subr.bf16.mxu1 %v6189_v36  ;;  %v6241_v36 = vld [vmem:[#allocation4 + $0x1e0] ss:$16 sps:$4 sm:$0xff]  }
 0x992   :  { %2989 = vmatpush1.bf16.msra.mxu1 %v6187_v32  ;;  %v6246_v32 = vld [vmem:[#allocation4 + $0x4] ss:$16 sps:$4 sm:$0xff]  }
 0x993   :  { %2990 = vmatprep.subr.bf16.mxu1 %v6192_v11  ;;  %v6244_v11 = vld [vmem:[#allocation4] ss:$16 sps:$4 sm:$0xff]  }
 0x996   :  { %2991 = vmatpush1.bf16.msra.mxu1 %v6190_v18  ;;  %v6249_v18 = vld [vmem:[#allocation4 + $0x24] ss:$16 sps:$4 sm:$0xff]  }
 0x997   :  { %2992 = vmatprep.subr.bf16.mxu1 %v6195_v39  ;;  %v6247_v39 = vld [vmem:[#allocation4 + $0x20] ss:$16 sps:$4 sm:$0xff]  }
 0x99a   :  { %2993 = vmatpush1.bf16.msra.mxu1 %v6193_v1  ;;  %v6252_v1 = vld [vmem:[#allocation4 + $0x44] ss:$16 sps:$4 sm:$0xff]  }
 0x99b   :  { %3257 = vmatprep.subr.bf16.mxu1 %v6198_v40  ;;  %v6250_v40 = vld [vmem:[#allocation4 + $0x40] ss:$16 sps:$4 sm:$0xff]  }
 0x99d   :  { %3011 = vmatmul.mubr.bf16.vlgmr.msra.gmra.mrb[16].mxu1 %v6783_v27 }
 0x99e   :  { %3258 = vmatpush1.bf16.msra.mxu1 %v6196_v42  ;;  %3289 = vmatprep.mubr.bf16.mxu1 %v6509_v10  ;;  %v6255_v42 = vld [vmem:[#allocation4 + $0x64] ss:$16 sps:$4 sm:$0xff]  }
 0x99f   :  { %3259 = vmatprep.subr.bf16.mxu1 %v6201_v44  ;;  %v6253_v44 = vld [vmem:[#allocation4 + $0x60] ss:$16 sps:$4 sm:$0xff]  }
 0x9a2   :  { %3260 = vmatpush1.bf16.msra.mxu1 %v6199_v45  ;;  %v6258_v45 = vld [vmem:[#allocation4 + $0x84] ss:$16 sps:$4 sm:$0xff]  }
 0x9a3   :  { %3261 = vmatprep.subr.bf16.mxu1 %v6204_v47  ;;  %v6256_v47 = vld [vmem:[#allocation4 + $0x80] ss:$16 sps:$4 sm:$0xff]  }
 0x9a6   :  { %3262 = vmatpush1.bf16.msra.mxu1 %v6202_v48  ;;  %v6261_v48 = vld [vmem:[#allocation4 + $0xa4] ss:$16 sps:$4 sm:$0xff]  }
 0x9a7   :  { %3263 = vmatprep.subr.bf16.mxu1 %v6207_v49  ;;  %v6264_v49 = vld [vmem:[#allocation4 + $0xc4] ss:$16 sps:$4 sm:$0xff]  }
 0x9aa   :  { %3264 = vmatpush1.bf16.msra.mxu1 %v6205_v51  ;;  %v6262_v51 = vld [vmem:[#allocation4 + $0xc0] ss:$16 sps:$4 sm:$0xff]  }
 0x9ab   :  { %3265 = vmatprep.subr.bf16.mxu1 %v6210_v52  ;;  %v6267_v52 = vld [vmem:[#allocation4 + $0xe4] ss:$16 sps:$4 sm:$0xff]  }
 0x9ae   :  { %3266 = vmatpush1.bf16.msra.mxu1 %v6208_v53  ;;  %v6265_v53 = vld [vmem:[#allocation4 + $0xe0] ss:$16 sps:$4 sm:$0xff]  }
 0x9af   :  { %3267 = vmatprep.subr.bf16.mxu1 %v6213_v55  ;;  %v6270_v55 = vld [vmem:[#allocation4 + $0x204] ss:$16 sps:$4 sm:$0xff]  }
 0x9b2   :  { %3268 = vmatpush1.bf16.msra.mxu1 %v6211_v2  ;;  %v6268_v2 = vld [vmem:[#allocation4 + $0x200] ss:$16 sps:$4 sm:$0xff]  }
 0x9b3   :  { %3269 = vmatprep.subr.bf16.mxu1 %v6216_v4  ;;  %v6273_v4 = vld [vmem:[#allocation4 + $0x224] ss:$16 sps:$4 sm:$0xff]  }
 0x9b6   :  { %3270 = vmatpush1.bf16.msra.mxu1 %v6214_v58  ;;  %v6271_v58 = vld [vmem:[#allocation4 + $0x220] ss:$16 sps:$4 sm:$0xff]  }
 0x9b7   :  { %3271 = vmatprep.subr.bf16.mxu1 %v6219_v60  ;;  %v6276_v60 = vld [vmem:[#allocation4 + $0x244] ss:$16 sps:$4 sm:$0xff]  }
 0x9ba   :  { %3272 = vmatpush1.bf16.msra.mxu1 %v6217_v5  ;;  %v6274_v5 = vld [vmem:[#allocation4 + $0x240] ss:$16 sps:$4 sm:$0xff]  }
 0x9bd   :  { %3290 = vmatmul.mubr.bf16.vlgmr.msra.gmra.mrb[16].mxu1 %v7272_v35 }
 0x9be   :  { %3577 = vmatprep.mubr.bf16.mxu1 %v6509_v10 }
 0xa30   :  { %v7358_v56 = vpop.f32.mrb[12].mxu1 }
 0xa31   :  { %v5521_v34 = vpop.f32.mrb[13].mxu1  ;;  %v2346_v38 = vmul.f32 %v7358_v56, %v7358_v56 }
 0xa32   :  { %v7360_v37 = vpop.f32.mrb[14].mxu1  ;;  %v6277_v34 = vld [vmem:[#allocation4 + $0x260] ss:$16 sps:$4 sm:$0xff]  }
 0xa33   :  { %v2339_v41 = vadd.f32 %v7360_v37, %v7358_v56  ;;  %v2347_v57 = vmul.f32 %v7360_v37, %v7360_v37  ;;  %v5522_v61 = vpop.f32.mrb[15].mxu1 }
 0xa34   :  { %v6288_v61 = vld [vmem:[#allocation4 + $0x2c4] ss:$16 sps:$4 sm:$0xff]  }
 0xa35   :  { %v2340_v62 = vrot.slane %v2339_v41, 4  ;;  %v2348_v63 = vadd.f32 %v2347_v57, %v2346_v38  ;;  %v6282_v38 = vld [vmem:[#allocation4 + $0x284] ss:$16 sps:$4 sm:$0xff]  }
 0xa36   :  { %v6285_v57 = vld [vmem:[#allocation4 + $0x2a4] ss:$16 sps:$4 sm:$0xff]  }
 0xa37   :  { %v2341_v3 = vadd.f32 %v2340_v62, %v2339_v41  ;;  %v2349_v6 = vrot.slane %v2348_v63, 4  ;;  %v6280_v41 = vld [vmem:[#allocation4 + $0x280] ss:$16 sps:$4 sm:$0xff]  }
 0xa38   :  { %v6286_v62 = vld [vmem:[#allocation4 + $0x2c0] ss:$16 sps:$4 sm:$0xff]  }
 0xa39   :  { %v2342_v8 = vrot.slane %v2341_v3, 2  ;;  %v2350_v9 = vadd.f32 %v2349_v6, %v2348_v63  ;;  %v6291_v63 = vld [vmem:[#allocation4 + $0x2e4] ss:$16 sps:$4 sm:$0xff]  }
 0xa3a   :  { %v6294_v6 = vld [vmem:[#allocation4 + $0x304] ss:$16 sps:$4 sm:$0xff]  }
 0xa3b   :  { %v2343_v12 = vadd.f32 %v2342_v8, %v2341_v3  ;;  %v2351_v13 = vrot.slane %v2350_v9, 2  ;;  %v6289_v3 = vld [vmem:[#allocation4 + $0x2e0] ss:$16 sps:$4 sm:$0xff]   ;;  %v6297_v8 = vld [vmem:[#allocation4 + $0x30c] ss:$16 sps:$4 sm:$0xff]  }
 0xa3c   :  { %3545 = vmatprep.subr.bf16.mxu1 %v6297_v8 }
 0xa3d   :  { %v2344_v14 = vrot.slane %v2343_v12, 1  ;;  %v2352_v15 = vadd.f32 %v2351_v13, %v2350_v9  ;;  %v6292_v9 = vld [vmem:[#allocation4 + $0x300] ss:$16 sps:$4 sm:$0xff]   ;;  %v6300_v13 = vld [vmem:[#allocation4 + $0x324] ss:$16 sps:$4 sm:$0xff]  }
 0xa3f   :  { %v2353_v0 = vrot.slane %v2352_v15, 1  ;;  %v2345_v17 = vadd.f32 %v2344_v14, %v2343_v12  ;;  %v6295_v12 = vld [vmem:[#allocation4 + $0x308] ss:$16 sps:$4 sm:$0xff]   ;;  %v6303_v14 = vld [vmem:[#allocation4 + $0x32c] ss:$16 sps:$4 sm:$0xff]  }
 0xa40   :  { %3546 = vmatpush1.bf16.msra.mxu1 %v6295_v12 }
 0xa41   :  { %v2354_v46 = vadd.f32 %v2353_v0, %v2352_v15  ;;  %v6298_v15 = vld [vmem:[#allocation4 + $0x320] ss:$16 sps:$4 sm:$0xff]   ;;  %v6301_v0 = vld [vmem:[#allocation4 + $0x328] ss:$16 sps:$4 sm:$0xff]   ;;  %3547 = vmatprep.subr.bf16.mxu1 %v6303_v14 }
 0xa43   :  { %v2355_v20 = vsel %vm261_vm1, %v2345_v17, %v2354_v46  ;;  %v6304_v17 = vld [vmem:[#allocation4 + $0x340] ss:$16 sps:$4 sm:$0xff]   ;;  %v6312_v46 = vld [vmem:[#allocation4 + $0x364] ss:$16 sps:$4 sm:$0xff]  }
 0xa44   :  { %5556 = vmatmul.mubr.f32.vlgmr.msra.gmra.mrb[14].mxu0 %v2355_v20  ;;  %3548 = vmatpush1.bf16.msra.mxu1 %v6301_v0  ;;  %v6310_v20 = vld [vmem:[#allocation4 + $0x360] ss:$16 sps:$4 sm:$0xff]  }
 0xa45   :  { %2690 = vmatpush1.bf16.msra.mxu0 %v6220_v43  ;;  %2721 = vmatprep.mubr.bf16.mxu0 %v6509_v10  ;;  %v6306_v43 = vld [vmem:[#allocation4 + $0x344] ss:$16 sps:$4 sm:$0xff]  }
 0xa46   :  { %2691 = vmatprep.subr.bf16.mxu0 %v6225_v19  ;;  %v6315_v19 = vld [vmem:[#allocation4 + $0x36c] ss:$16 sps:$4 sm:$0xff]   ;;  %v3670_v0 = vld [vmem:[#allocation7 + $0x20] sm:$0xff] }
 0xa49   :  { %2692 = vmatpush1.bf16.msra.mxu0 %v6223_v21  ;;  %v6313_v21 = vld [vmem:[#allocation4 + $0x368] ss:$16 sps:$4 sm:$0xff]  }
 0xa4a   :  { %2693 = vmatprep.subr.bf16.mxu0 %v6228_v22  ;;  %v6316_v22 = vld [vmem:[#allocation4 + $0x380] ss:$16 sps:$4 sm:$0xff]  }
 0xa4d   :  { %2694 = vmatpush1.bf16.msra.mxu0 %v6226_v23  ;;  %v6318_v23 = vld [vmem:[#allocation4 + $0x384] ss:$16 sps:$4 sm:$0xff]  }
 0xa4e   :  { %2695 = vmatprep.subr.bf16.mxu0 %v6231_v24  ;;  %v6319_v24 = vld [vmem:[#allocation4 + $0x388] ss:$16 sps:$4 sm:$0xff]  }
 0xa51   :  { %2696 = vmatpush1.bf16.msra.mxu0 %v6229_v25  ;;  %v6321_v25 = vld [vmem:[#allocation4 + $0x38c] ss:$16 sps:$4 sm:$0xff]  }
 0xa52   :  { %2697 = vmatprep.subr.bf16.mxu0 %v6234_v26  ;;  %v6324_v26 = vld [vmem:[#allocation4 + $0x3a4] ss:$16 sps:$4 sm:$0xff]  }
 0xa55   :  { %2698 = vmatpush1.bf16.msra.mxu0 %v6232_v28  ;;  %v6327_v28 = vld [vmem:[#allocation4 + $0x3ac] ss:$16 sps:$4 sm:$0xff]  }
 0xa56   :  { %2699 = vmatprep.subr.bf16.mxu0 %v6237_v29  ;;  %v6322_v29 = vld [vmem:[#allocation4 + $0x3a0] ss:$16 sps:$4 sm:$0xff]  }
 0xa59   :  { %2700 = vmatpush1.bf16.msra.mxu0 %v6235_v31  ;;  %v6325_v31 = vld [vmem:[#allocation4 + $0x3a8] ss:$16 sps:$4 sm:$0xff]  }
 0xa5a   :  { %2701 = vmatprep.subr.bf16.mxu0 %v6240_v16  ;;  %v6330_v16 = vld [vmem:[#allocation4 + $0x3c4] ss:$16 sps:$4 sm:$0xff]  }
 0xa5d   :  { %2702 = vmatpush1.bf16.msra.mxu0 %v6238_v30  ;;  %v6333_v30 = vld [vmem:[#allocation4 + $0x3cc] ss:$16 sps:$4 sm:$0xff]  }
 0xa5e   :  { %2703 = vmatprep.subr.bf16.mxu0 %v6243_v33  ;;  %v6328_v33 = vld [vmem:[#allocation4 + $0x3c0] ss:$16 sps:$4 sm:$0xff]  }
 0xa61   :  { %2704 = vmatpush1.bf16.msra.mxu0 %v6241_v36  ;;  %v6331_v36 = vld [vmem:[#allocation4 + $0x3c8] ss:$16 sps:$4 sm:$0xff]  }
 0xa62   :  { %2935 = vmatprep.subr.bf16.mxu0 %v6246_v32  ;;  %v6336_v32 = vld [vmem:[#allocation4 + $0x3e4] ss:$16 sps:$4 sm:$0xff]  }
 0xa64   :  { %2722 = vmatmul.mubr.bf16.vlgmr.msra.gmra.mrb[20].mxu0 %v6964_v59  ;;  %v6259_v59 = vld [vmem:[#allocation4 + $0xa0] ss:$16 sps:$4 sm:$0xff]  }
 0xa65   :  { %2936 = vmatpush1.bf16.msra.mxu0 %v6244_v11  ;;  %2967 = vmatprep.mubr.bf16.mxu0 %v6509_v10  ;;  %v6339_v11 = vld [vmem:[#allocation4 + $0x3ec] ss:$16 sps:$4 sm:$0xff]  }
 0xa66   :  { %2937 = vmatprep.subr.bf16.mxu0 %v6249_v18  ;;  %v6334_v18 = vld [vmem:[#allocation4 + $0x3e0] ss:$16 sps:$4 sm:$0xff]  }
 0xa69   :  { %2938 = vmatpush1.bf16.msra.mxu0 %v6247_v39  ;;  %v6337_v39 = vld [vmem:[#allocation4 + $0x3e8] ss:$16 sps:$4 sm:$0xff]  }
 0xa6a   :  { %2939 = vmatprep.subr.bf16.mxu0 %v6252_v1  ;;  %v3667_v1 = vld [vmem:[#allocation7 + $0x8] sm:$0xff] }
 0xa6d   :  { %2940 = vmatpush1.bf16.msra.mxu0 %v6250_v40  ;;  %v3671_v40 = vld [vmem:[#allocation7 + $0x28] sm:$0xff] }
 0xa6e   :  { %2941 = vmatprep.subr.bf16.mxu0 %v6255_v42  ;;  %v3669_v42 = vld [vmem:[#allocation7 + $0x18] sm:$0xff] }
 0xa71   :  { %2942 = vmatpush1.bf16.msra.mxu0 %v6253_v44  ;;  %v5702_v44 = vpack.c.bf16 %v3671_v40, %v3667_v1 }
 0xa72   :  { %2943 = vmatprep.subr.bf16.mxu0 %v6258_v45  ;;  %v3673_v45 = vld [vmem:[#allocation7 + $0x38] sm:$0xff] }
 0xa75   :  { %2944 = vmatpush1.bf16.msra.mxu0 %v6256_v47  ;;  %v5830_v47 = vpack.c.bf16 %v3673_v45, %v3669_v42  ;;  %v3684_v42 = vld [vmem:[#allocation7 + $0x90] sm:$0xff]  ;;  %v3691_v45 = vld [vmem:[#allocation7 + $0xc8] sm:$0xff] }
 0xa76   :  { %2945 = vmatprep.subr.bf16.mxu0 %v6261_v48 }
 0xa79   :  { %2946 = vmatpush1.bf16.msra.mxu0 %v6259_v59 }
 0xa7a   :  { %2947 = vmatprep.subr.bf16.mxu0 %v6264_v49 }
 0xa7d   :  { %2948 = vmatpush1.bf16.msra.mxu0 %v6262_v51 }
 0xa7e   :  { %2949 = vmatprep.subr.bf16.mxu0 %v6267_v52 }
 0xa81   :  { %2950 = vmatpush1.bf16.msra.mxu0 %v6265_v53 }
 0xa82   :  { %3214 = vmatprep.subr.bf16.mxu0 %v6270_v55 }
 0xa84   :  { %2968 = vmatmul.mubr.bf16.vlgmr.msra.gmra.mrb[20].mxu0 %v6783_v27  ;;  %v6283_v27 = vld [vmem:[#allocation4 + $0x2a0] ss:$16 sps:$4 sm:$0xff]  }
 0xa85   :  { %3215 = vmatpush1.bf16.msra.mxu0 %v6268_v2  ;;  %3246 = vmatprep.mubr.bf16.mxu0 %v6509_v10 }
 0xa86   :  { %3216 = vmatprep.subr.bf16.mxu0 %v6273_v4 }
 0xa89   :  { %3217 = vmatpush1.bf16.msra.mxu0 %v6271_v58  ;;  %v2337_v58 = vld [vmem:[%s7482_s4 + $0x5] sm:$0x1] }
 0xa8a   :  { %3218 = vmatprep.subr.bf16.mxu0 %v6276_v60 }
 0xa8d   :  { %3219 = vmatpush1.bf16.msra.mxu0 %v6274_v5 }
 0xa8e   :  { %3220 = vmatprep.subr.bf16.mxu0 %v6279_v7  ;;  %v2338_v7 = vld [vmem:[%s7483_s5 + $0x5] sm:$0x1] }
 0xa91   :  { %3221 = vmatpush1.bf16.msra.mxu0 %v6277_v34 }
 0xa92   :  { %3222 = vmatprep.subr.bf16.mxu0 %v6282_v38 }
 0xa95   :  { %3223 = vmatpush1.bf16.msra.mxu0 %v6280_v41 }
 0xa96   :  { %3224 = vmatprep.subr.bf16.mxu0 %v6285_v57 }
 0xa99   :  { %3225 = vmatpush1.bf16.msra.mxu0 %v6283_v27 }
 0xa9a   :  { %3226 = vmatprep.subr.bf16.mxu0 %v6288_v61 }
 0xa9d   :  { %3227 = vmatpush1.bf16.msra.mxu0 %v6286_v62 }
 0xa9e   :  { %3228 = vmatprep.subr.bf16.mxu0 %v6291_v63 }
 0xaa1   :  { %3229 = vmatpush1.bf16.msra.mxu0 %v6289_v3 }
 0xaa2   :  { %3502 = vmatprep.subr.bf16.mxu0 %v6294_v6 }
 0xaa4   :  { %3247 = vmatmul.mubr.bf16.vlgmr.msra.gmra.mrb[20].mxu0 %v7272_v35  ;;  %v6309_v35 = vld [vmem:[#allocation4 + $0x34c] ss:$16 sps:$4 sm:$0xff]  }
 0xaa5   :  { %3534 = vmatprep.mubr.bf16.mxu0 %v6509_v10  ;;  %3503 = vmatpush1.bf16.msra.mxu0 %v6292_v9  ;;  %v6307_v10 = vld [vmem:[#allocation4 + $0x348] ss:$16 sps:$4 sm:$0xff]  }
 0xaa6   :  { %3504 = vmatprep.subr.bf16.mxu0 %v6300_v13  ;;  %3549 = vmatprep.subr.bf16.mxu1 %v6309_v35  ;;  %v3668_v35 = vld [vmem:[#allocation7 + $0x10] sm:$0xff] }
 0xaa7   :  { %3550 = vmatpush1.bf16.msra.mxu1 %v6307_v10  ;;  %v3679_v10 = vld [vmem:[#allocation7 + $0x68] sm:$0xff] }
 0xaa8   :  { %3551 = vmatprep.subr.bf16.mxu1 %v6315_v19  ;;  %v3681_v19 = vld [vmem:[#allocation7 + $0x78] sm:$0xff] }
 0xaa9   :  { %3505 = vmatpush1.bf16.msra.mxu0 %v6298_v15  ;;  %v3666_v15 = vld [vmem:[#allocation7] sm:$0xff] }
 0xaaa   :  { %3506 = vmatprep.subr.bf16.mxu0 %v6306_v43 }
 0xaab   :  { %3552 = vmatpush1.bf16.msra.mxu1 %v6313_v21  ;;  %v5704_v21 = vpack.c.bf16 %v3670_v0, %v3666_v15  ;;  %v3706_v15 = vld [vmem:[#allocation7 + $0x140] sm:$0xff] }
 0xaac   :  { %3553 = vmatprep.subr.bf16.mxu1 %v6321_v25  ;;  %v3710_v0 = vld [vmem:[#allocation7 + $0x160] sm:$0xff] }
 0xaad   :  { %3507 = vmatpush1.bf16.msra.mxu0 %v6304_v17  ;;  %v3675_v17 = vld [vmem:[#allocation7 + $0x48] sm:$0xff] }
 0xaae   :  { %3508 = vmatprep.subr.bf16.mxu0 %v6312_v46  ;;  %v3677_v46 = vld [vmem:[#allocation7 + $0x58] sm:$0xff] }
 0xaaf   :  { %3554 = vmatpush1.bf16.msra.mxu1 %v6319_v24  ;;  %v3678_v24 = vld [vmem:[#allocation7 + $0x60] sm:$0xff] }
 0xab0   :  { %3555 = vmatprep.subr.bf16.mxu1 %v6327_v28  ;;  %v5834_v28 = vpack.c.bf16 %v3681_v19, %v3677_v46  ;;  %v3717_v46 = vld [vmem:[#allocation7 + $0x198] sm:$0xff] }
 0xab1   :  { %3509 = vmatpush1.bf16.msra.mxu0 %v6310_v20  ;;  %v3721_v19 = vld [vmem:[#allocation7 + $0x1b8] sm:$0xff] }
 0xab2   :  { %3510 = vmatprep.subr.bf16.mxu0 %v6318_v23  ;;  %v3674_v23 = vld [vmem:[#allocation7 + $0x40] sm:$0xff] }
 0xab3   :  { %3556 = vmatpush1.bf16.msra.mxu1 %v6325_v31  ;;  %v3680_v31 = vld [vmem:[#allocation7 + $0x70] sm:$0xff] }
 0xab4   :  { %3557 = vmatprep.subr.bf16.mxu1 %v6333_v30  ;;  %v3687_v30 = vld [vmem:[#allocation7 + $0xa8] sm:$0xff] }
 0xab5   :  { %3511 = vmatpush1.bf16.msra.mxu0 %v6316_v22 }
 0xab6   :  { %3512 = vmatprep.subr.bf16.mxu0 %v6324_v26  ;;  %v5706_v26 = vpack.c.bf16 %v3679_v10, %v3675_v17  ;;  %v3712_v17 = vld [vmem:[#allocation7 + $0x170] sm:$0xff]  ;;  %v3719_v10 = vld [vmem:[#allocation7 + $0x1a8] sm:$0xff] }
 0xab7   :  { %3558 = vmatpush1.bf16.msra.mxu1 %v6331_v36  ;;  %v3689_v36 = vld [vmem:[#allocation7 + $0xb8] sm:$0xff] }
 0xab8   :  { %3559 = vmatprep.subr.bf16.mxu1 %v6339_v11 }
 0xab9   :  { %3513 = vmatpush1.bf16.msra.mxu0 %v6322_v29  ;;  %v3676_v29 = vld [vmem:[#allocation7 + $0x50] sm:$0xff] }
 0xaba   :  { %3514 = vmatprep.subr.bf16.mxu0 %v6330_v16  ;;  %v3683_v16 = vld [vmem:[#allocation7 + $0x88] sm:$0xff]  ;;  %v5836_v11 = vpack.c.bf16 %v3680_v31, %v3676_v29 }
 0xabb   :  { %3560 = vmatpush1.bf16.msra.mxu1 %v6337_v39  ;;  %v3686_v39 = vld [vmem:[#allocation7 + $0xa0] sm:$0xff]  ;;  %v5710_v1 = vpack.c.bf16 %v3687_v30, %v3683_v16  ;;  %v3723_v29 = vld [vmem:[#allocation7 + $0x1c8] sm:$0xff]  ;;  %v3725_v16 = vld [vmem:[#allocation7 + $0x1d8] sm:$0xff] }
 0xabc   :  { %5831 = vmatprep.subr.bf16.mxu1 %v5830_v47  ;;  %v3695_v47 = vld [vmem:[#allocation7 + $0xe8] sm:$0xff]  ;;  %v3729_v30 = vld [vmem:[#allocation7 + $0x1f8] sm:$0xff] }
 0xabd   :  { %3515 = vmatpush1.bf16.msra.mxu0 %v6328_v33  ;;  %v3685_v33 = vld [vmem:[#allocation7 + $0x98] sm:$0xff]  ;;  %v3727_v31 = vld [vmem:[#allocation7 + $0x1e8] sm:$0xff] }
 0xabe   :  { %3516 = vmatprep.subr.bf16.mxu0 %v6336_v32  ;;  %v5708_v32 = vpack.c.bf16 %v3678_v24, %v3674_v23  ;;  %v5838_v40 = vpack.c.bf16 %v3689_v36, %v3685_v33  ;;  %v3718_v23 = vld [vmem:[#allocation7 + $0x1a0] sm:$0xff] }
 0xac1   :  { %3517 = vmatpush1.bf16.msra.mxu0 %v6334_v18  ;;  %v3682_v18 = vld [vmem:[#allocation7 + $0x80] sm:$0xff] }
 0xac2   :  { %5703 = vmatprep.subr.bf16.mxu0 %v5702_v44  ;;  %v3688_v44 = vld [vmem:[#allocation7 + $0xb0] sm:$0xff] }
 0xb17   :  { %v2422_v48 = vpop.f32.mrb[14].mxu0 }
 0xb18   :  { %v2426_v59 = vmul.f32 0.001953125, %v2422_v48  ;;  %v5557_v49 = vpop.f32.mrb[15].mxu0  ;;  %v3693_v48 = vld [vmem:[#allocation7 + $0xd8] sm:$0xff] }
 0xb19   :  { %v5712_v49 = vpack.c.bf16 %v3686_v39, %v3682_v18  ;;  %v5730_v18 = vpack.c.bf16 %v3727_v31, %v3723_v29  ;;  %v5858_v39 = vpack.c.bf16 %v3729_v30, %v3725_v16  ;;  %v3763_v29 = vld [vmem:[#allocation7 + $0x308] sm:$0xff]  ;;  %v3765_v16 = vld [vmem:[#allocation7 + $0x318] sm:$0xff] }
 0xb1a   :  { %v2427_v51 = vmul.f32 %v2426_v59, %v2426_v59  ;;  %v3767_v31 = vld [vmem:[#allocation7 + $0x328] sm:$0xff] }
 0xb1b   :  { %v5750_v30 = vpack.c.bf16 %v3767_v31, %v3763_v29 }
 0xb1c   :  { %v2429_v52 = vrot.slane %v2427_v51, 7  ;;  %v5840_v51 = vpack.c.bf16 %v3688_v44, %v3684_v42  ;;  %v3731_v42 = vld [vmem:[#allocation7 + $0x208] sm:$0xff] }
 0xb1d   :  { %v3735_v44 = vld [vmem:[#allocation7 + $0x228] sm:$0xff] }
 0xb1e   :  { %v2431_v53 = vsub.f32 %v2426_v59, %v2429_v52  ;;  %v3690_v52 = vld [vmem:[#allocation7 + $0xc0] sm:$0xff] }
 0xb20   :  { %v2432_v55 = vmax.f32 %v2431_v53, 0.0  ;;  %v3694_v53 = vld [vmem:[#allocation7 + $0xe0] sm:$0xff] }
 0xb22   :  { %v2433_v2 = vadd.f32 1e-05, %v2432_v55  ;;  %v5714_v55 = vpack.c.bf16 %v3695_v47, %v3691_v45  ;;  %v3733_v45 = vld [vmem:[#allocation7 + $0x218] sm:$0xff] }
 0xb23   :  { %v3737_v47 = vld [vmem:[#allocation7 + $0x238] sm:$0xff] }
 0xb24   :  { %6370 = vrsqrt.f32 %v2433_v2 }
 0xb2e   :  { %v6371_v4 = vpop.eup %6370 }
 0xb2f   :  { %v2436_v60 = vrot.slane %v6371_v4, 1  ;;  %v3692_v4 = vld [vmem:[#allocation7 + $0xd0] sm:$0xff] }
 0xb31   :  { %v2438_v5 = vmul.f32 %v2436_v60, %v2337_v58  ;;  %v3696_v58 = vld [vmem:[#allocation7 + $0xf0] sm:$0xff]  ;;  %v3699_v60 = vld [vmem:[#allocation7 + $0x108] sm:$0xff] }
 0xb33   :  { %v2439_v34 = vmul.f32 %v2438_v5, %v2426_v59  ;;  %v2444_v38 = vrot.slane %v2438_v5, %v6771_v54  ;;  %v3697_v59 = vld [vmem:[#allocation7 + $0xf8] sm:$0xff]  ;;  %v3703_v5 = vld [vmem:[#allocation7 + $0x128] sm:$0xff] }
 0xb34   :  { %v5842_v2 = vpack.c.bf16 %v3697_v59, %v3693_v48 }
 0xb35   :  { %v2440_v41 = vsub.f32 %v2338_v7, %v2439_v34  ;;  %v2445_v57 = vmul.f32 %v2444_v38, %v7358_v56  ;;  %v2446_v27 = vmul.f32 %v2444_v38, %v7360_v37  ;;  %v3672_v56 = vld [vmem:[#allocation7 + $0x30] sm:$0xff]  ;;  %v3701_v7 = vld [vmem:[#allocation7 + $0x118] sm:$0xff]  ;;  %v5716_v38 = vpack.c.bf16 %v3694_v53, %v3690_v52 }
 0xb36   :  { %v5832_v22 = vpack.c.bf16 %v3672_v56, %v3668_v35  ;;  %v3705_v34 = vld [vmem:[#allocation7 + $0x138] sm:$0xff]  ;;  %v3708_v56 = vld [vmem:[#allocation7 + $0x150] sm:$0xff]  ;;  %v5734_v52 = vpack.c.bf16 %v3735_v44, %v3731_v42  ;;  %v5862_v53 = vpack.c.bf16 %v3737_v47, %v3733_v45  ;;  %v3771_v42 = vld [vmem:[#allocation7 + $0x348] sm:$0xff] }
 0xb37   :  { %v2450_v61 = vrot.slane %v2440_v41, %v6771_v54  ;;  %v5844_v41 = vpack.c.bf16 %v3696_v58, %v3692_v4  ;;  %v3739_v4 = vld [vmem:[#allocation7 + $0x248] sm:$0xff]  ;;  %v3773_v45 = vld [vmem:[#allocation7 + $0x358] sm:$0xff] }
 0xb38   :  { %v3743_v58 = vld [vmem:[#allocation7 + $0x268] sm:$0xff] }
 0xb39   :  { %v2451_v62 = vadd.f32 %v2450_v61, %v2445_v57  ;;  %v2452_v63 = vadd.f32 %v2450_v61, %v2446_v27  ;;  %v3698_v57 = vld [vmem:[#allocation7 + $0x100] sm:$0xff]  ;;  %v5718_v61 = vpack.c.bf16 %v3703_v5, %v3699_v60  ;;  %v3741_v60 = vld [vmem:[#allocation7 + $0x258] sm:$0xff]  ;;  %v3775_v44 = vld [vmem:[#allocation7 + $0x368] sm:$0xff] }
 0xb3a   :  { %v3702_v27 = vld [vmem:[#allocation7 + $0x120] sm:$0xff]  ;;  %v3745_v5 = vld [vmem:[#allocation7 + $0x278] sm:$0xff]  ;;  %v5754_v47 = vpack.c.bf16 %v3775_v44, %v3771_v42 }
 0xb3b   :  { %v2453_v3 = vmul.f32 0.5, %v2451_v62  ;;  %v2454_v6 = vmul.f32 0.5, %v2452_v63 }
 0xb3d   :  { %6372 = vtanh.f32 %v2453_v3  ;;  %v3704_v3 = vld [vmem:[#allocation7 + $0x130] sm:$0xff] }
 0xb3e   :  { %6374 = vtanh.f32 %v2454_v6  ;;  %v3707_v6 = vld [vmem:[#allocation7 + $0x148] sm:$0xff] }
 0xb47   :  { %v6373_v8 = vpop.eup %6372 }
 0xb48   :  { %v6375_v9 = vpop.eup %6374  ;;  %v2457_v12 = vmul.f32 0.5, %v6373_v8  ;;  %v3711_v8 = vld [vmem:[#allocation7 + $0x168] sm:$0xff] }
 0xb49   :  { %v2458_v13 = vmul.f32 0.5, %v6375_v9  ;;  %v3709_v9 = vld [vmem:[#allocation7 + $0x158] sm:$0xff] }
 0xb4a   :  { %v2459_v14 = vadd.f32 0.5, %v2457_v12  ;;  %v3713_v12 = vld [vmem:[#allocation7 + $0x178] sm:$0xff] }
 0xb4b   :  { %v2460_v43 = vadd.f32 0.5, %v2458_v13  ;;  %v5720_v13 = vpack.c.bf16 %v3702_v27, %v3698_v57  ;;  %v5850_v35 = vpack.c.bf16 %v3713_v12, %v3709_v9  ;;  %v5738_v57 = vpack.c.bf16 %v3743_v58, %v3739_v4  ;;  %v3779_v4 = vld [vmem:[#allocation7 + $0x388] sm:$0xff] }
 0xb4c   :  { %v2461_v37 = vmul.f32 %v2459_v14, %v2451_v62  ;;  %v5846_v62 = vpack.c.bf16 %v3705_v34, %v3701_v7  ;;  %v5866_v27 = vpack.c.bf16 %v3745_v5, %v3741_v60  ;;  %v3783_v58 = vld [vmem:[#allocation7 + $0x3a8] sm:$0xff]  ;;  %v3781_v60 = vld [vmem:[#allocation7 + $0x398] sm:$0xff] }
 0xb4d   :  { %v2462_v20 = vmul.f32 %v2460_v43, %v2452_v63  ;;  %v3700_v63 = vld [vmem:[#allocation7 + $0x110] sm:$0xff]  ;;  %v5722_v43 = vpack.c.bf16 %v3711_v8, %v3707_v6  ;;  %v3749_v6 = vld [vmem:[#allocation7 + $0x298] sm:$0xff]  ;;  %v5758_v5 = vpack.c.bf16 %v3783_v58, %v3779_v4 }
 0xb4e   :  { %v5848_v14 = vpack.c.bf16 %v3704_v3, %v3700_v63  ;;  %v3747_v63 = vld [vmem:[#allocation7 + $0x288] sm:$0xff]  ;;  %v3753_v8 = vld [vmem:[#allocation7 + $0x2b8] sm:$0xff] }
 0xb4f   :  { %v3308_v25 = vpack.c.bf16 %v2462_v20, %v2461_v37  ;;  %v3715_v37 = vld [vmem:[#allocation7 + $0x188] sm:$0xff]  ;;  %v5724_v20 = vpack.c.bf16 %v3710_v0, %v3706_v15  ;;  %v5870_v15 = vpack.c.bf16 %v3753_v8, %v3749_v6  ;;  %v3750_v0 = vld [vmem:[#allocation7 + $0x2a0] sm:$0xff]  ;;  %v3789_v6 = vld [vmem:[#allocation7 + $0x3d8] sm:$0xff] }
 0xb50   :  { %v5726_v24 = vpack.c.bf16 %v3719_v10, %v3715_v37  ;;  %v3751_v3 = vld [vmem:[#allocation7 + $0x2a8] sm:$0xff] }
 0xb51   :  { %3535 = vmatmul.mubr.bf16.vlgmr.msra.gmra.mrb[20].mxu0 %v3308_v25  ;;  %3578 = vmatmul.mubr.bf16.vlgmr.msra.gmra.mrb[16].mxu1 %v3308_v25  ;;  %v5854_v25 = vpack.c.bf16 %v3721_v19, %v3717_v46  ;;  %v3755_v37 = vld [vmem:[#allocation7 + $0x2c8] sm:$0xff]  ;;  %v3757_v46 = vld [vmem:[#allocation7 + $0x2d8] sm:$0xff] }
 0xb52   :  { %5705 = vmatpush1.bf16.msra.mxu0 %v5704_v21  ;;  %5833 = vmatpush1.bf16.msra.mxu1 %v5832_v22  ;;  %v5852_v21 = vpack.c.bf16 %v3712_v17, %v3708_v56  ;;  %v3714_v22 = vld [vmem:[#allocation7 + $0x180] sm:$0xff]  ;;  %v3759_v10 = vld [vmem:[#allocation7 + $0x2e8] sm:$0xff] }
 0xb53   :  { %5707 = vmatprep.subr.bf16.mxu0 %v5706_v26  ;;  %5835 = vmatprep.subr.bf16.mxu1 %v5834_v28  ;;  %v3716_v26 = vld [vmem:[#allocation7 + $0x190] sm:$0xff]  ;;  %v5728_v33 = vpack.c.bf16 %v3718_v23, %v3714_v22  ;;  %v5746_v19 = vpack.c.bf16 %v3759_v10, %v3755_v37  ;;  %v3758_v22 = vld [vmem:[#allocation7 + $0x2e0] sm:$0xff]  ;;  %v3797_v37 = vld [vmem:[#allocation7 + $0x418] sm:$0xff] }
 0xb54   :  { %v3720_v28 = vld [vmem:[#allocation7 + $0x1b0] sm:$0xff] }
 0xb55   :  { %v5856_v36 = vpack.c.bf16 %v3720_v28, %v3716_v26  ;;  %v3760_v26 = vld [vmem:[#allocation7 + $0x2f0] sm:$0xff] }
 0xb56   :  { %5709 = vmatpush1.bf16.msra.mxu0 %v5708_v32  ;;  %5837 = vmatpush1.bf16.msra.mxu1 %v5836_v11  ;;  %v3722_v32 = vld [vmem:[#allocation7 + $0x1c0] sm:$0xff] }
 0xb57   :  { %5711 = vmatprep.subr.bf16.mxu0 %v5710_v1  ;;  %5839 = vmatprep.subr.bf16.mxu1 %v5838_v40  ;;  %v3726_v11 = vld [vmem:[#allocation7 + $0x1e0] sm:$0xff]  ;;  %v3724_v1 = vld [vmem:[#allocation7 + $0x1d0] sm:$0xff] }
 0xb58   :  { %v3728_v40 = vld [vmem:[#allocation7 + $0x1f0] sm:$0xff]  ;;  %v5732_v48 = vpack.c.bf16 %v3726_v11, %v3722_v32  ;;  %v3766_v32 = vld [vmem:[#allocation7 + $0x320] sm:$0xff] }
 0xb59   :  { %v5860_v59 = vpack.c.bf16 %v3728_v40, %v3724_v1  ;;  %v3768_v1 = vld [vmem:[#allocation7 + $0x330] sm:$0xff] }
 0xb5a   :  { %5713 = vmatpush1.bf16.msra.mxu0 %v5712_v49  ;;  %5841 = vmatpush1.bf16.msra.mxu1 %v5840_v51  ;;  %v3730_v49 = vld [vmem:[#allocation7 + $0x200] sm:$0xff] }
 0xb5b   :  { %5715 = vmatprep.subr.bf16.mxu0 %v5714_v55  ;;  %5843 = vmatprep.subr.bf16.mxu1 %v5842_v2  ;;  %v3734_v51 = vld [vmem:[#allocation7 + $0x220] sm:$0xff]  ;;  %v3732_v55 = vld [vmem:[#allocation7 + $0x210] sm:$0xff] }
 0xb5c   :  { %v3736_v2 = vld [vmem:[#allocation7 + $0x230] sm:$0xff]  ;;  %v5736_v7 = vpack.c.bf16 %v3734_v51, %v3730_v49  ;;  %v3774_v49 = vld [vmem:[#allocation7 + $0x360] sm:$0xff] }
 0xb5d   :  { %v5864_v34 = vpack.c.bf16 %v3736_v2, %v3732_v55  ;;  %v3776_v55 = vld [vmem:[#allocation7 + $0x370] sm:$0xff] }
 0xb5e   :  { %5717 = vmatpush1.bf16.msra.mxu0 %v5716_v38  ;;  %5845 = vmatpush1.bf16.msra.mxu1 %v5844_v41  ;;  %v3738_v38 = vld [vmem:[#allocation7 + $0x240] sm:$0xff] }
 0xb5f   :  { %5719 = vmatprep.subr.bf16.mxu0 %v5718_v61  ;;  %5847 = vmatprep.subr.bf16.mxu1 %v5846_v62  ;;  %v3742_v41 = vld [vmem:[#allocation7 + $0x260] sm:$0xff]  ;;  %v3740_v61 = vld [vmem:[#allocation7 + $0x250] sm:$0xff] }
 0xb60   :  { %v3744_v62 = vld [vmem:[#allocation7 + $0x270] sm:$0xff]  ;;  %v5740_v9 = vpack.c.bf16 %v3742_v41, %v3738_v38  ;;  %v3782_v38 = vld [vmem:[#allocation7 + $0x3a0] sm:$0xff] }
 0xb61   :  { %v5868_v12 = vpack.c.bf16 %v3744_v62, %v3740_v61  ;;  %v3784_v61 = vld [vmem:[#allocation7 + $0x3b0] sm:$0xff] }
 0xb62   :  { %5721 = vmatpush1.bf16.msra.mxu0 %v5720_v13  ;;  %5849 = vmatpush1.bf16.msra.mxu1 %v5848_v14  ;;  %v3746_v13 = vld [vmem:[#allocation7 + $0x280] sm:$0xff]  ;;  %v5742_v14 = vpack.c.bf16 %v3751_v3, %v3747_v63  ;;  %v3787_v63 = vld [vmem:[#allocation7 + $0x3c8] sm:$0xff] }
 0xb63   :  { %5723 = vmatprep.subr.bf16.mxu0 %v5722_v43  ;;  %5851 = vmatprep.subr.bf16.mxu1 %v5850_v35  ;;  %v3748_v43 = vld [vmem:[#allocation7 + $0x290] sm:$0xff]  ;;  %v5744_v56 = vpack.c.bf16 %v3750_v0, %v3746_v13  ;;  %v3791_v3 = vld [vmem:[#allocation7 + $0x3e8] sm:$0xff]  ;;  %v3790_v13 = vld [vmem:[#allocation7 + $0x3e0] sm:$0xff] }
 0xb64   :  { %v3752_v35 = vld [vmem:[#allocation7 + $0x2b0] sm:$0xff]  ;;  %v5762_v8 = vpack.c.bf16 %v3791_v3, %v3787_v63 }
 0xb65   :  { %v5872_v17 = vpack.c.bf16 %v3752_v35, %v3748_v43  ;;  %v3788_v0 = vld [vmem:[#allocation7 + $0x3d0] sm:$0xff] }
 0xb66   :  { %5725 = vmatpush1.bf16.msra.mxu0 %v5724_v20  ;;  %5853 = vmatpush1.bf16.msra.mxu1 %v5852_v21  ;;  %v3761_v20 = vld [vmem:[#allocation7 + $0x2f8] sm:$0xff]  ;;  %v3754_v21 = vld [vmem:[#allocation7 + $0x2c0] sm:$0xff]  ;;  %v3792_v43 = vld [vmem:[#allocation7 + $0x3f0] sm:$0xff] }
 0xb67   :  { %5727 = vmatprep.subr.bf16.mxu0 %v5726_v24  ;;  %5855 = vmatprep.subr.bf16.mxu1 %v5854_v25  ;;  %v5874_v23 = vpack.c.bf16 %v3761_v20, %v3757_v46  ;;  %v5748_v24 = vpack.c.bf16 %v3758_v22, %v3754_v21  ;;  %v3756_v25 = vld [vmem:[#allocation7 + $0x2d0] sm:$0xff]  ;;  %v5892_v35 = vpack.c.bf16 %v3792_v43, %v3788_v0  ;;  %v3801_v46 = vld [vmem:[#allocation7 + $0x438] sm:$0xff] }
 0xb68   :  { %v5876_v28 = vpack.c.bf16 %v3760_v26, %v3756_v25 }
 0xb6a   :  { %5729 = vmatpush1.bf16.msra.mxu0 %v5728_v33  ;;  %5857 = vmatpush1.bf16.msra.mxu1 %v5856_v36  ;;  %v3769_v33 = vld [vmem:[#allocation7 + $0x338] sm:$0xff]  ;;  %v3762_v36 = vld [vmem:[#allocation7 + $0x300] sm:$0xff] }
 0xb6b   :  { %5731 = vmatprep.subr.bf16.mxu0 %v5730_v18  ;;  %5859 = vmatprep.subr.bf16.mxu1 %v5858_v39  ;;  %v5878_v11 = vpack.c.bf16 %v3769_v33, %v3765_v16  ;;  %v5752_v18 = vpack.c.bf16 %v3766_v32, %v3762_v36  ;;  %v3764_v39 = vld [vmem:[#allocation7 + $0x310] sm:$0xff] }
 0xb6c   :  { %v5880_v40 = vpack.c.bf16 %v3768_v1, %v3764_v39 }
 0xb6e   :  { %5733 = vmatpush1.bf16.msra.mxu0 %v5732_v48  ;;  %5861 = vmatpush1.bf16.msra.mxu1 %v5860_v59  ;;  %v3777_v48 = vld [vmem:[#allocation7 + $0x378] sm:$0xff]  ;;  %v3770_v59 = vld [vmem:[#allocation7 + $0x340] sm:$0xff] }
 0xb6f   :  { %5735 = vmatprep.subr.bf16.mxu0 %v5734_v52  ;;  %5863 = vmatprep.subr.bf16.mxu1 %v5862_v53  ;;  %v5882_v51 = vpack.c.bf16 %v3777_v48, %v3773_v45  ;;  %v5756_v52 = vpack.c.bf16 %v3774_v49, %v3770_v59  ;;  %v3772_v53 = vld [vmem:[#allocation7 + $0x350] sm:$0xff] }
 0xb70   :  { %v5884_v2 = vpack.c.bf16 %v3776_v55, %v3772_v53 }
 0xb72   :  { %5737 = vmatpush1.bf16.msra.mxu0 %v5736_v7  ;;  %5865 = vmatpush1.bf16.msra.mxu1 %v5864_v34  ;;  %v3785_v7 = vld [vmem:[#allocation7 + $0x3b8] sm:$0xff]  ;;  %v3778_v34 = vld [vmem:[#allocation7 + $0x380] sm:$0xff] }
 0xb73   :  { %5739 = vmatprep.subr.bf16.mxu0 %v5738_v57  ;;  %5867 = vmatprep.subr.bf16.mxu1 %v5866_v27  ;;  %v5886_v41 = vpack.c.bf16 %v3785_v7, %v3781_v60  ;;  %v5760_v57 = vpack.c.bf16 %v3782_v38, %v3778_v34  ;;  %v3780_v27 = vld [vmem:[#allocation7 + $0x390] sm:$0xff] }
 0xb74   :  { %v5888_v62 = vpack.c.bf16 %v3784_v61, %v3780_v27 }
 0xb76   :  { %5741 = vmatpush1.bf16.msra.mxu0 %v5740_v9  ;;  %5869 = vmatpush1.bf16.msra.mxu1 %v5868_v12  ;;  %v3793_v9 = vld [vmem:[#allocation7 + $0x3f8] sm:$0xff]  ;;  %v3786_v12 = vld [vmem:[#allocation7 + $0x3c0] sm:$0xff] }
 0xb77   :  { %5743 = vmatprep.subr.bf16.mxu0 %v5742_v14  ;;  %5871 = vmatprep.subr.bf16.mxu1 %v5870_v15  ;;  %v5890_v14 = vpack.c.bf16 %v3793_v9, %v3789_v6  ;;  %v5764_v15 = vpack.c.bf16 %v3790_v13, %v3786_v12 }
 0xb7a   :  { %5745 = vmatpush1.bf16.msra.mxu0 %v5744_v56  ;;  %5873 = vmatpush1.bf16.msra.mxu1 %v5872_v17  ;;  %v3795_v56 = vld [vmem:[#allocation7 + $0x408] sm:$0xff] }
 0xb7b   :  { %5747 = vmatprep.subr.bf16.mxu0 %v5746_v19  ;;  %5875 = vmatprep.subr.bf16.mxu1 %v5874_v23  ;;  %v3799_v17 = vld [vmem:[#allocation7 + $0x428] sm:$0xff]  ;;  %v5894_v19 = vpack.c.bf16 %v3801_v46, %v3797_v37 }
 0xb7c   :  { %v5766_v10 = vpack.c.bf16 %v3799_v17, %v3795_v56 }
 0xb7e   :  { %5749 = vmatpush1.bf16.msra.mxu0 %v5748_v24  ;;  %5877 = vmatpush1.bf16.msra.mxu1 %v5876_v28 }
 0xb7f   :  { %5751 = vmatprep.subr.bf16.mxu0 %v5750_v30  ;;  %5879 = vmatprep.subr.bf16.mxu1 %v5878_v11 }
 0xb82   :  { %5753 = vmatpush1.bf16.msra.mxu0 %v5752_v18  ;;  %5881 = vmatpush1.bf16.msra.mxu1 %v5880_v40 }
 0xb83   :  { %5755 = vmatprep.subr.bf16.mxu0 %v5754_v47  ;;  %5883 = vmatprep.subr.bf16.mxu1 %v5882_v51 }
 0xb86   :  { %5757 = vmatpush1.bf16.msra.mxu0 %v5756_v52  ;;  %5885 = vmatpush1.bf16.msra.mxu1 %v5884_v2 }
 0xb87   :  { %5759 = vmatprep.subr.bf16.mxu0 %v5758_v5  ;;  %5887 = vmatprep.subr.bf16.mxu1 %v5886_v41 }
 0xb8a   :  { %5761 = vmatpush1.bf16.msra.mxu0 %v5760_v57  ;;  %5889 = vmatpush1.bf16.msra.mxu1 %v5888_v62 }
 0xb8b   :  { %5763 = vmatprep.subr.bf16.mxu0 %v5762_v8  ;;  %5891 = vmatprep.subr.bf16.mxu1 %v5890_v14 }
 0xb8e   :  { %5765 = vmatpush1.bf16.msra.mxu0 %v5764_v15  ;;  %5893 = vmatpush1.bf16.msra.mxu1 %v5892_v35 }
 0xb8f   :  { %5767 = vmatprep.subr.bf16.mxu0 %v5766_v10  ;;  %5895 = vmatprep.subr.bf16.mxu1 %v5894_v19  ;;  %v3794_v19 = vld [vmem:[#allocation7 + $0x400] sm:$0xff] }
 0xc24   :  { %v7386_v20 = vpop.f32.mrb[20].mxu0  ;;  %v7388_v21 = vpop.f32.mrb[16].mxu1 }
 0xc25   :  { %v7390_v22 = vpop.f32.mrb[21].mxu0  ;;  %v7392_v23 = vpop.f32.mrb[17].mxu1  ;;  %v3626_v24 = vmul.f32 %v7386_v20, %v7386_v20  ;;  %v3628_v25 = vmul.f32 %v7388_v21, %v7388_v21 }
 0xc26   :  { %v3627_v26 = vmul.f32 %v7390_v22, %v7390_v22  ;;  %v3629_v28 = vmul.f32 %v7392_v23, %v7392_v23  ;;  %v7402_v29 = vpop.f32.mrb[22].mxu0  ;;  %v7404_v31 = vpop.f32.mrb[18].mxu1 }
 0xc27   :  { %v3598_v16 = vadd.f32 %v7402_v29, %v7386_v20  ;;  %v3630_v30 = vmul.f32 %v7402_v29, %v7402_v29  ;;  %v3612_v33 = vadd.f32 %v7404_v31, %v7388_v21  ;;  %v3632_v36 = vmul.f32 %v7404_v31, %v7404_v31  ;;  %v7414_v32 = vpop.f32.mrb[23].mxu0  ;;  %v7416_v11 = vpop.f32.mrb[19].mxu1 }
 0xc28   :  { %v3605_v18 = vadd.f32 %v7414_v32, %v7390_v22  ;;  %v3631_v39 = vmul.f32 %v7414_v32, %v7414_v32  ;;  %v3619_v1 = vadd.f32 %v7416_v11, %v7392_v23  ;;  %v3633_v40 = vmul.f32 %v7416_v11, %v7416_v11 }
 0xc29   :  { %v3599_v42 = vrot.slane %v3598_v16, 4  ;;  %v3634_v44 = vadd.f32 %v3630_v30, %v3626_v24  ;;  %v3613_v45 = vrot.slane %v3612_v33, 4  ;;  %v3648_v47 = vadd.f32 %v3632_v36, %v3628_v25 }
 0xc2a   :  { %v3606_v48 = vrot.slane %v3605_v18, 4  ;;  %v3641_v59 = vadd.f32 %v3631_v39, %v3627_v26  ;;  %v3620_v49 = vrot.slane %v3619_v1, 4  ;;  %v3655_v51 = vadd.f32 %v3633_v40, %v3629_v28  ;;  %v3798_v26 = vld [vmem:[#allocation7 + $0x420] sm:$0xff]  ;;  %v3796_v28 = vld [vmem:[#allocation7 + $0x410] sm:$0xff] }
 0xc2b   :  { %v3600_v52 = vadd.f32 %v3599_v42, %v3598_v16  ;;  %v3635_v53 = vrot.slane %v3634_v44, 4  ;;  %v3614_v55 = vadd.f32 %v3613_v45, %v3612_v33  ;;  %v3649_v2 = vrot.slane %v3648_v47, 4  ;;  %v3800_v16 = vld [vmem:[#allocation7 + $0x430] sm:$0xff] }
 0xc2c   :  { %v3607_v4 = vadd.f32 %v3606_v48, %v3605_v18  ;;  %v3642_v58 = vrot.slane %v3641_v59, 4  ;;  %v3621_v60 = vadd.f32 %v3620_v49, %v3619_v1  ;;  %v3656_v5 = vrot.slane %v3655_v51, 4  ;;  %v3803_v18 = vld [vmem:[#allocation7 + $0x448] sm:$0xff]  ;;  %v3805_v48 = vld [vmem:[#allocation7 + $0x458] sm:$0xff] }
 0xc2d   :  { %v3601_v7 = vrot.slane %v3600_v52, 2  ;;  %v3636_v34 = vadd.f32 %v3635_v53, %v3634_v44  ;;  %v3615_v38 = vrot.slane %v3614_v55, 2  ;;  %v3650_v41 = vadd.f32 %v3649_v2, %v3648_v47  ;;  %v3807_v47 = vld [vmem:[#allocation7 + $0x468] sm:$0xff]  ;;  %v3802_v53 = vld [vmem:[#allocation7 + $0x440] sm:$0xff] }
 0xc2e   :  { %v3608_v57 = vrot.slane %v3607_v4, 2  ;;  %v3643_v27 = vadd.f32 %v3642_v58, %v3641_v59  ;;  %v3622_v61 = vrot.slane %v3621_v60, 2  ;;  %v3657_v62 = vadd.f32 %v3656_v5, %v3655_v51  ;;  %v3809_v59 = vld [vmem:[#allocation7 + $0x478] sm:$0xff]  ;;  %v3808_v5 = vld [vmem:[#allocation7 + $0x470] sm:$0xff] }
 0xc2f   :  { %v3602_v63 = vadd.f32 %v3601_v7, %v3600_v52  ;;  %v3637_v3 = vrot.slane %v3636_v34, 2  ;;  %v3616_v6 = vadd.f32 %v3615_v38, %v3614_v55  ;;  %v3651_v8 = vrot.slane %v3650_v41, 2  ;;  %v3806_v55 = vld [vmem:[#allocation7 + $0x460] sm:$0xff]  ;;  %v3811_v7 = vld [vmem:[#allocation7 + $0x488] sm:$0xff] }
 0xc30   :  { %v3609_v9 = vadd.f32 %v3608_v57, %v3607_v4  ;;  %v3644_v12 = vrot.slane %v3643_v27, 2  ;;  %v3623_v13 = vadd.f32 %v3622_v61, %v3621_v60  ;;  %v3658_v14 = vrot.slane %v3657_v62, 2  ;;  %v3804_v60 = vld [vmem:[#allocation7 + $0x450] sm:$0xff]  ;;  %v3813_v57 = vld [vmem:[#allocation7 + $0x498] sm:$0xff] }
 0xc31   :  { %v3603_v15 = vrot.slane %v3602_v63, 1  ;;  %v3638_v0 = vadd.f32 %v3637_v3, %v3636_v34  ;;  %v3617_v43 = vrot.slane %v3616_v6, 1  ;;  %v3652_v35 = vadd.f32 %v3651_v8, %v3650_v41  ;;  %v3815_v41 = vld [vmem:[#allocation7 + $0x4a8] sm:$0xff]  ;;  %v3814_v3 = vld [vmem:[#allocation7 + $0x4a0] sm:$0xff] }
 0xc32   :  { %v3610_v56 = vrot.slane %v3609_v9, 1  ;;  %v3645_v17 = vadd.f32 %v3644_v12, %v3643_v27  ;;  %v3624_v37 = vrot.slane %v3623_v13, 1  ;;  %v3659_v10 = vadd.f32 %v3658_v14, %v3657_v62  ;;  %v3817_v27 = vld [vmem:[#allocation7 + $0x4b8] sm:$0xff]  ;;  %v3816_v12 = vld [vmem:[#allocation7 + $0x4b0] sm:$0xff]  ;;  %v3823_v14 = vld [vmem:[#allocation7 + $0x4e8] sm:$0xff] }
 0xc33   :  { %v3639_v46 = vrot.slane %v3638_v0, 1  ;;  %v3653_v24 = vrot.slane %v3652_v35, 1  ;;  %v3604_v33 = vadd.f32 %v3603_v15, %v3602_v63  ;;  %v3618_v39 = vadd.f32 %v3617_v43, %v3616_v6  ;;  %v3810_v63 = vld [vmem:[#allocation7 + $0x480] sm:$0xff]  ;;  %v3821_v15 = vld [vmem:[#allocation7 + $0x4d8] sm:$0xff] }
 0xc34   :  { %v3646_v25 = vrot.slane %v3645_v17, 1  ;;  %v3660_v30 = vrot.slane %v3659_v10, 1  ;;  %v3611_v40 = vadd.f32 %v3610_v56, %v3609_v9  ;;  %v3625_v44 = vadd.f32 %v3624_v37, %v3623_v13  ;;  %v3812_v9 = vld [vmem:[#allocation7 + $0x490] sm:$0xff]  ;;  %v3819_v13 = vld [vmem:[#allocation7 + $0x4c8] sm:$0xff]  ;;  %v3818_v56 = vld [vmem:[#allocation7 + $0x4c0] sm:$0xff] }
 0xc35   :  { %v3640_v36 = vadd.f32 %v3639_v46, %v3638_v0  ;;  %v3654_v1 = vadd.f32 %v3653_v24, %v3652_v35  ;;  %v5768_v51 = vpack.c.bf16 %v3798_v26, %v3794_v19  ;;  %v5896_v52 = vpack.c.bf16 %v3800_v16, %v3796_v28  ;;  %v3825_v0 = vld [vmem:[#allocation7 + $0x4f8] sm:$0xff]  ;;  %v3820_v46 = vld [vmem:[#allocation7 + $0x4d0] sm:$0xff]  ;;  %v3827_v24 = vld [vmem:[#allocation7 + $0x508] sm:$0xff] }
 0xc36   :  { %v3647_v42 = vadd.f32 %v3646_v25, %v3645_v17  ;;  %v3661_v45 = vadd.f32 %v3660_v30, %v3659_v10  ;;  %v5770_v34 = vpack.c.bf16 %v3807_v47, %v3803_v18  ;;  %v5898_v38 = vpack.c.bf16 %v3809_v59, %v3805_v48  ;;  %v3822_v17 = vld [vmem:[#allocation7 + $0x4e0] sm:$0xff]  ;;  %v3824_v19 = vld [vmem:[#allocation7 + $0x4f0] sm:$0xff]  ;;  %v3831_v25 = vld [vmem:[#allocation7 + $0x528] sm:$0xff] }
 0xc37   :  { %v3662_v49 = vsel %vm261_vm1, %v3604_v33, %v3640_v36  ;;  %v7428_v2 = vsel %vm261_vm1, %v3618_v39, %v3654_v1  ;;  %v5772_v61 = vpack.c.bf16 %v3806_v55, %v3802_v53  ;;  %v5900_v62 = vpack.c.bf16 %v3808_v5, %v3804_v60  ;;  %v3829_v26 = vld [vmem:[#allocation7 + $0x518] sm:$0xff]  ;;  %v3826_v33 = vld [vmem:[#allocation7 + $0x500] sm:$0xff]  ;;  %v3828_v1 = vld [vmem:[#allocation7 + $0x510] sm:$0xff] }
 0xc38   :  { %v3663_v4 = vsel %vm261_vm1, %v3611_v40, %v3647_v42  ;;  %v3665_v58 = vsel %vm261_vm1, %v3625_v44, %v3661_v45  ;;  %v5774_v6 = vpack.c.bf16 %v3815_v41, %v3811_v7  ;;  %v5902_v8 = vpack.c.bf16 %v3817_v27, %v3813_v57  ;;  %v3833_v28 = vld [vmem:[#allocation7 + $0x538] sm:$0xff]  ;;  %v3830_v36 = vld [vmem:[#allocation7 + $0x520] sm:$0xff]  ;;  %v3832_v40 = vld [vmem:[#allocation7 + $0x530] sm:$0xff] }
 0xc39   :  { %3986 = vmatprep.mubr.f32.mxu0 %v3663_v4  ;;  %4128 = vmatprep.mubr.f32.mxu1 %v3663_v4  ;;  %v5776_v43 = vpack.c.bf16 %v3814_v3, %v3810_v63  ;;  %v5904_v35 = vpack.c.bf16 %v3816_v12, %v3812_v9  ;;  %v5778_v37 = vpack.c.bf16 %v3823_v14, %v3819_v13  ;;  %v3835_v42 = vld [vmem:[#allocation7 + $0x548] sm:$0xff]  ;;  %v3837_v45 = vld [vmem:[#allocation7 + $0x558] sm:$0xff]  ;;  %v3836_v55 = vld [vmem:[#allocation7 + $0x550] sm:$0xff] }
 0xc3a   :  { %3987 = vmatmul.mubr.f32.vlgmr.msra.gmra.mrb[24].mxu0 %v3662_v49  ;;  %4129 = vmatmul.mubr.f32.vlgmr.msra.gmra.mrb[20].mxu1 %v3662_v49  ;;  %v5906_v10 = vpack.c.bf16 %v3825_v0, %v3821_v15  ;;  %v5780_v16 = vpack.c.bf16 %v3822_v17, %v3818_v56  ;;  %v5908_v30 = vpack.c.bf16 %v3824_v19, %v3820_v46  ;;  %v3839_v44 = vld [vmem:[#allocation7 + $0x568] sm:$0xff]  ;;  %v3841_v47 = vld [vmem:[#allocation7 + $0x578] sm:$0xff]  ;;  %v3834_v49 = vld [vmem:[#allocation7 + $0x540] sm:$0xff] }
 0xc3b   :  { %5769 = vmatpush1.bf16.msra.mxu0 %v5768_v51  ;;  %5897 = vmatpush1.bf16.msra.mxu1 %v5896_v52  ;;  %v5782_v18 = vpack.c.bf16 %v3831_v25, %v3827_v24  ;;  %v5910_v39 = vpack.c.bf16 %v3833_v28, %v3829_v26  ;;  %v5784_v48 = vpack.c.bf16 %v3830_v36, %v3826_v33  ;;  %v3838_v51 = vld [vmem:[#allocation7 + $0x560] sm:$0xff]  ;;  %v3840_v4 = vld [vmem:[#allocation7 + $0x570] sm:$0xff]  ;;  %v3847_v60 = vld [vmem:[#allocation7 + $0x5a8] sm:$0xff] }
 0xc3c   :  { %4057 = vmatprep.mubr.f32.mxu0 %v3665_v58  ;;  %4199 = vmatprep.mubr.f32.mxu1 %v3665_v58  ;;  %v5912_v59 = vpack.c.bf16 %v3832_v40, %v3828_v1  ;;  %v5786_v52 = vpack.c.bf16 %v3839_v44, %v3835_v42  ;;  %v5914_v53 = vpack.c.bf16 %v3841_v47, %v3837_v45  ;;  %v3843_v58 = vld [vmem:[#allocation7 + $0x588] sm:$0xff]  ;;  %v3845_v5 = vld [vmem:[#allocation7 + $0x598] sm:$0xff]  ;;  %v3842_v41 = vld [vmem:[#allocation7 + $0x580] sm:$0xff] }
 0xc3d   :  { %5771 = vmatprep.subr.bf16.mxu0 %v5770_v34  ;;  %5899 = vmatprep.subr.bf16.mxu1 %v5898_v38  ;;  %v3849_v7 = vld [vmem:[#allocation7 + $0x5b8] sm:$0xff]  ;;  %v5788_v34 = vpack.c.bf16 %v3838_v51, %v3834_v49  ;;  %v5916_v38 = vpack.c.bf16 %v3840_v4, %v3836_v55  ;;  %v3846_v57 = vld [vmem:[#allocation7 + $0x5a0] sm:$0xff]  ;;  %v5790_v27 = vpack.c.bf16 %v3847_v60, %v3843_v58  ;;  %v3848_v63 = vld [vmem:[#allocation7 + $0x5b0] sm:$0xff] }
 0xc3e   :  { %v3851_v3 = vld [vmem:[#allocation7 + $0x5c8] sm:$0xff]  ;;  %v3857_v9 = vld [vmem:[#allocation7 + $0x5f8] sm:$0xff]  ;;  %v5792_v12 = vpack.c.bf16 %v3846_v57, %v3842_v41  ;;  %v3850_v14 = vld [vmem:[#allocation7 + $0x5c0] sm:$0xff] }
 0xc3f   :  { %5773 = vmatpush1.bf16.msra.mxu0 %v5772_v61  ;;  %5901 = vmatpush1.bf16.msra.mxu1 %v5900_v62  ;;  %v5918_v61 = vpack.c.bf16 %v3849_v7, %v3845_v5  ;;  %v3844_v62 = vld [vmem:[#allocation7 + $0x590] sm:$0xff]  ;;  %v3854_v15 = vld [vmem:[#allocation7 + $0x5e0] sm:$0xff]  ;;  %v3859_v17 = vld [vmem:[#allocation7 + $0x608] sm:$0xff] }
 0xc40   :  { %5775 = vmatprep.subr.bf16.mxu0 %v5774_v6  ;;  %5903 = vmatprep.subr.bf16.mxu1 %v5902_v8  ;;  %v3855_v6 = vld [vmem:[#allocation7 + $0x5e8] sm:$0xff]  ;;  %v3853_v8 = vld [vmem:[#allocation7 + $0x5d8] sm:$0xff]  ;;  %v5920_v13 = vpack.c.bf16 %v3848_v63, %v3844_v62  ;;  %v3856_v56 = vld [vmem:[#allocation7 + $0x5f0] sm:$0xff]  ;;  %v5796_v19 = vpack.c.bf16 %v3854_v15, %v3850_v14 }
 0xc41   :  { %v5794_v0 = vpack.c.bf16 %v3855_v6, %v3851_v3  ;;  %v3865_v46 = vld [vmem:[#allocation7 + $0x638] sm:$0xff]  ;;  %v3858_v25 = vld [vmem:[#allocation7 + $0x600] sm:$0xff]  ;;  %v3864_v33 = vld [vmem:[#allocation7 + $0x630] sm:$0xff] }
 0xc42   :  { %v3862_v26 = vld [vmem:[#allocation7 + $0x620] sm:$0xff]  ;;  %v3867_v36 = vld [vmem:[#allocation7 + $0x648] sm:$0xff]  ;;  %v3873_v1 = vld [vmem:[#allocation7 + $0x678] sm:$0xff] }
 0xc43   :  { %5777 = vmatpush1.bf16.msra.mxu0 %v5776_v43  ;;  %5905 = vmatpush1.bf16.msra.mxu1 %v5904_v35  ;;  %v5922_v43 = vpack.c.bf16 %v3857_v9, %v3853_v8  ;;  %v3852_v35 = vld [vmem:[#allocation7 + $0x5d0] sm:$0xff]  ;;  %v5800_v40 = vpack.c.bf16 %v3862_v26, %v3858_v25  ;;  %v3866_v44 = vld [vmem:[#allocation7 + $0x640] sm:$0xff]  ;;  %v3875_v51 = vld [vmem:[#allocation7 + $0x688] sm:$0xff] }
 0xc44   :  { %5779 = vmatprep.subr.bf16.mxu0 %v5778_v37  ;;  %5907 = vmatprep.subr.bf16.mxu1 %v5906_v10  ;;  %v3863_v37 = vld [vmem:[#allocation7 + $0x628] sm:$0xff]  ;;  %v3861_v10 = vld [vmem:[#allocation7 + $0x618] sm:$0xff]  ;;  %v5924_v24 = vpack.c.bf16 %v3856_v56, %v3852_v35  ;;  %v3870_v45 = vld [vmem:[#allocation7 + $0x660] sm:$0xff] }
 0xc45   :  { %v5798_v28 = vpack.c.bf16 %v3863_v37, %v3859_v17  ;;  %v3872_v49 = vld [vmem:[#allocation7 + $0x670] sm:$0xff]  ;;  %v3881_v55 = vld [vmem:[#allocation7 + $0x6b8] sm:$0xff]  ;;  %v5804_v4 = vpack.c.bf16 %v3870_v45, %v3866_v44  ;;  %v3874_v60 = vld [vmem:[#allocation7 + $0x680] sm:$0xff] }
 0xc46   :  { %v3878_v5 = vld [vmem:[#allocation7 + $0x6a0] sm:$0xff]  ;;  %v3880_v41 = vld [vmem:[#allocation7 + $0x6b0] sm:$0xff]  ;;  %v3883_v57 = vld [vmem:[#allocation7 + $0x6c8] sm:$0xff] }
 0xc47   :  { %5781 = vmatpush1.bf16.msra.mxu0 %v5780_v16  ;;  %5909 = vmatpush1.bf16.msra.mxu1 %v5908_v30  ;;  %v5926_v16 = vpack.c.bf16 %v3865_v46, %v3861_v10  ;;  %v3860_v30 = vld [vmem:[#allocation7 + $0x610] sm:$0xff]  ;;  %v3889_v62 = vld [vmem:[#allocation7 + $0x6f8] sm:$0xff]  ;;  %v5808_v63 = vpack.c.bf16 %v3878_v5, %v3874_v60  ;;  %v3882_v6 = vld [vmem:[#allocation7 + $0x6c0] sm:$0xff] }
 0xc48   :  { %5783 = vmatprep.subr.bf16.mxu0 %v5782_v18  ;;  %5911 = vmatprep.subr.bf16.mxu1 %v5910_v39  ;;  %v3871_v18 = vld [vmem:[#allocation7 + $0x668] sm:$0xff]  ;;  %v3869_v39 = vld [vmem:[#allocation7 + $0x658] sm:$0xff]  ;;  %v5928_v42 = vpack.c.bf16 %v3864_v33, %v3860_v30  ;;  %v3886_v8 = vld [vmem:[#allocation7 + $0x6e0] sm:$0xff] }
 0xc49   :  { %v5802_v47 = vpack.c.bf16 %v3871_v18, %v3867_v36  ;;  %v3888_v14 = vld [vmem:[#allocation7 + $0x6f0] sm:$0xff]  ;;  %v3891_v15 = vld [vmem:[#allocation7 + $0x708] sm:$0xff]  ;;  %v3897_v35 = vld [vmem:[#allocation7 + $0x738] sm:$0xff]  ;;  %v5812_v56 = vpack.c.bf16 %v3886_v8, %v3882_v6 }
 0xc4a   :  { %v3890_v37 = vld [vmem:[#allocation7 + $0x700] sm:$0xff]  ;;  %v3896_v25 = vld [vmem:[#allocation7 + $0x730] sm:$0xff]  ;;  %v3899_v26 = vld [vmem:[#allocation7 + $0x748] sm:$0xff] }
 0xc4b   :  { %5785 = vmatpush1.bf16.msra.mxu0 %v5784_v48  ;;  %5913 = vmatpush1.bf16.msra.mxu1 %v5912_v59  ;;  %v5930_v48 = vpack.c.bf16 %v3873_v1, %v3869_v39  ;;  %v3868_v59 = vld [vmem:[#allocation7 + $0x650] sm:$0xff]  ;;  %v3894_v10 = vld [vmem:[#allocation7 + $0x720] sm:$0xff]  ;;  %v3905_v30 = vld [vmem:[#allocation7 + $0x778] sm:$0xff] }
 0xc4c   :  { %5787 = vmatprep.subr.bf16.mxu0 %v5786_v52  ;;  %5915 = vmatprep.subr.bf16.mxu1 %v5914_v53  ;;  %v3879_v52 = vld [vmem:[#allocation7 + $0x6a8] sm:$0xff]  ;;  %v3877_v53 = vld [vmem:[#allocation7 + $0x698] sm:$0xff]  ;;  %v5932_v58 = vpack.c.bf16 %v3872_v49, %v3868_v59  ;;  %v5816_v33 = vpack.c.bf16 %v3894_v10, %v3890_v37  ;;  %v3898_v18 = vld [vmem:[#allocation7 + $0x740] sm:$0xff] }
 0xc4d   :  { %v5806_v7 = vpack.c.bf16 %v3879_v52, %v3875_v51  ;;  %v3902_v39 = vld [vmem:[#allocation7 + $0x760] sm:$0xff]  ;;  %v3904_v44 = vld [vmem:[#allocation7 + $0x770] sm:$0xff]  ;;  %v3907_v45 = vld [vmem:[#allocation7 + $0x788] sm:$0xff] }
 0xc4e   :  { %v3913_v59 = vld [vmem:[#allocation7 + $0x7b8] sm:$0xff]  ;;  %v5820_v49 = vpack.c.bf16 %v3902_v39, %v3898_v18  ;;  %v3906_v52 = vld [vmem:[#allocation7 + $0x780] sm:$0xff]  ;;  %v3912_v60 = vld [vmem:[#allocation7 + $0x7b0] sm:$0xff] }
 0xc4f   :  { %5789 = vmatpush1.bf16.msra.mxu0 %v5788_v34  ;;  %5917 = vmatpush1.bf16.msra.mxu1 %v5916_v38  ;;  %v5934_v34 = vpack.c.bf16 %v3881_v55, %v3877_v53  ;;  %v3876_v38 = vld [vmem:[#allocation7 + $0x690] sm:$0xff]  ;;  %v3910_v53 = vld [vmem:[#allocation7 + $0x7a0] sm:$0xff]  ;;  %v3915_v5 = vld [vmem:[#allocation7 + $0x7c8] sm:$0xff] }
 0xc50   :  { %5791 = vmatprep.subr.bf16.mxu0 %v5790_v27  ;;  %5919 = vmatprep.subr.bf16.mxu1 %v5918_v61  ;;  %v3887_v27 = vld [vmem:[#allocation7 + $0x6e8] sm:$0xff]  ;;  %v3885_v61 = vld [vmem:[#allocation7 + $0x6d8] sm:$0xff]  ;;  %v5936_v3 = vpack.c.bf16 %v3880_v41, %v3876_v38  ;;  %v5824_v41 = vpack.c.bf16 %v3910_v53, %v3906_v52  ;;  %v3920_v6 = vld [vmem:[#allocation7 + $0x7f0] sm:$0xff] }
 0xc51   :  { %v5810_v9 = vpack.c.bf16 %v3887_v27, %v3883_v57  ;;  %v3921_v38 = vld [vmem:[#allocation7 + $0x7f8] sm:$0xff]  ;;  %v3914_v27 = vld [vmem:[#allocation7 + $0x7c0] sm:$0xff] }
 0xc53   :  { %5793 = vmatpush1.bf16.msra.mxu0 %v5792_v12  ;;  %5921 = vmatpush1.bf16.msra.mxu1 %v5920_v13  ;;  %v5938_v12 = vpack.c.bf16 %v3889_v62, %v3885_v61  ;;  %v3884_v13 = vld [vmem:[#allocation7 + $0x6d0] sm:$0xff] }
 0xc54   :  { %5795 = vmatprep.subr.bf16.mxu0 %v5794_v0  ;;  %5923 = vmatprep.subr.bf16.mxu1 %v5922_v43  ;;  %v3895_v0 = vld [vmem:[#allocation7 + $0x728] sm:$0xff]  ;;  %v3893_v43 = vld [vmem:[#allocation7 + $0x718] sm:$0xff]  ;;  %v5940_v17 = vpack.c.bf16 %v3888_v14, %v3884_v13 }
 0xc55   :  { %v5814_v46 = vpack.c.bf16 %v3895_v0, %v3891_v15 }
 0xc57   :  { %5797 = vmatpush1.bf16.msra.mxu0 %v5796_v19  ;;  %5925 = vmatpush1.bf16.msra.mxu1 %v5924_v24  ;;  %v5942_v19 = vpack.c.bf16 %v3897_v35, %v3893_v43  ;;  %v3892_v24 = vld [vmem:[#allocation7 + $0x710] sm:$0xff] }
 0xc58   :  { %5799 = vmatprep.subr.bf16.mxu0 %v5798_v28  ;;  %5927 = vmatprep.subr.bf16.mxu1 %v5926_v16  ;;  %v3903_v28 = vld [vmem:[#allocation7 + $0x768] sm:$0xff]  ;;  %v3901_v16 = vld [vmem:[#allocation7 + $0x758] sm:$0xff]  ;;  %v5944_v36 = vpack.c.bf16 %v3896_v25, %v3892_v24 }
 0xc59   :  { %v5818_v1 = vpack.c.bf16 %v3903_v28, %v3899_v26 }
 0xc5b   :  { %5801 = vmatpush1.bf16.msra.mxu0 %v5800_v40  ;;  %5929 = vmatpush1.bf16.msra.mxu1 %v5928_v42  ;;  %v5946_v40 = vpack.c.bf16 %v3905_v30, %v3901_v16  ;;  %v3900_v42 = vld [vmem:[#allocation7 + $0x750] sm:$0xff] }
 0xc5c   :  { %5803 = vmatprep.subr.bf16.mxu0 %v5802_v47  ;;  %5931 = vmatprep.subr.bf16.mxu1 %v5930_v48  ;;  %v3911_v47 = vld [vmem:[#allocation7 + $0x7a8] sm:$0xff]  ;;  %v3909_v48 = vld [vmem:[#allocation7 + $0x798] sm:$0xff]  ;;  %v5948_v51 = vpack.c.bf16 %v3904_v44, %v3900_v42 }
 0xc5d   :  { %v5822_v55 = vpack.c.bf16 %v3911_v47, %v3907_v45  ;;  %v6510_v45 = vmov 1966171168  }
 0xc5e   :  { %v4249_v47 = vunpack.c.l.s4 %v6510_v45 }
 0xc5f   :  { %5805 = vmatpush1.bf16.msra.mxu0 %v5804_v4  ;;  %5933 = vmatpush1.bf16.msra.mxu1 %v5932_v58  ;;  %v5950_v4 = vpack.c.bf16 %v3913_v59, %v3909_v48  ;;  %v3908_v58 = vld [vmem:[#allocation7 + $0x790] sm:$0xff] }
 0xc60   :  { %5807 = vmatprep.subr.bf16.mxu0 %v5806_v7  ;;  %5935 = vmatprep.subr.bf16.mxu1 %v5934_v34  ;;  %v3919_v7 = vld [vmem:[#allocation7 + $0x7e8] sm:$0xff]  ;;  %v3917_v34 = vld [vmem:[#allocation7 + $0x7d8] sm:$0xff]  ;;  %v5952_v57 = vpack.c.bf16 %v3912_v60, %v3908_v58  ;;  %v4250_v48 = vunpack.c.0.s8 %v4249_v47 }
 0xc61   :  { %v5826_v61 = vpack.c.bf16 %v3919_v7, %v3915_v5  ;;  %v5954_v62 = vpack.c.bf16 %v3921_v38, %v3917_v34  ;;  %v3596_v7 = vld [vmem:[%s7484_s6] sm:$0xf]  ;;  %v4279_v38 = vsub.s32 1, %v6765_v50 }
 0xc63   :  { %5809 = vmatpush1.bf16.msra.mxu0 %v5808_v63  ;;  %5937 = vmatpush1.bf16.msra.mxu1 %v5936_v3  ;;  %v3918_v63 = vld [vmem:[#allocation7 + $0x7e0] sm:$0xff]  ;;  %v3916_v3 = vld [vmem:[#allocation7 + $0x7d0] sm:$0xff] }
 0xc64   :  { %5811 = vmatprep.subr.bf16.mxu0 %v5810_v9  ;;  %5939 = vmatprep.subr.bf16.mxu1 %v5938_v12  ;;  %v5828_v8 = vpack.c.bf16 %v3918_v63, %v3914_v27  ;;  %v5956_v9 = vpack.c.bf16 %v3920_v6, %v3916_v3 }
 0xc67   :  { %5813 = vmatpush1.bf16.msra.mxu0 %v5812_v56  ;;  %5941 = vmatpush1.bf16.msra.mxu1 %v5940_v17 }
 0xc68   :  { %5815 = vmatprep.subr.bf16.mxu0 %v5814_v46  ;;  %5943 = vmatprep.subr.bf16.mxu1 %v5942_v19 }
 0xc6b   :  { %5817 = vmatpush1.bf16.msra.mxu0 %v5816_v33  ;;  %5945 = vmatpush1.bf16.msra.mxu1 %v5944_v36 }
 0xc6c   :  { %5819 = vmatprep.subr.bf16.mxu0 %v5818_v1  ;;  %5947 = vmatprep.subr.bf16.mxu1 %v5946_v40 }
 0xc6f   :  { %5821 = vmatpush1.bf16.msra.mxu0 %v5820_v49  ;;  %5949 = vmatpush1.bf16.msra.mxu1 %v5948_v51  ;;  %v4253_v51 = vsub.s32 %v4250_v48, %v6765_v50 }
 0xc70   :  { %5823 = vmatprep.subr.bf16.mxu0 %v5822_v55  ;;  %5951 = vmatprep.subr.bf16.mxu1 %v5950_v4 }
 0xc73   :  { %5825 = vmatpush1.bf16.msra.mxu0 %v5824_v41  ;;  %5953 = vmatpush1.bf16.msra.mxu1 %v5952_v57  ;;  %v4283_v41 = vsub.s32 2, %v6765_v50  ;;  %v4287_v57 = vsub.s32 3, %v6765_v50 }
 0xc74   :  { %5827 = vmatprep.subr.bf16.mxu0 %v5826_v61  ;;  %5955 = vmatprep.subr.bf16.mxu1 %v5954_v62 }
 0xc77   :  { %5829 = vmatpush1.bf16.msra.mxu0 %v5828_v8  ;;  %5957 = vmatpush1.bf16.msra.mxu1 %v5956_v9 }
 0xc7a   :  { %4058 = vmatmul.mubr.f32.vlgmr.msra.gmra.mrb[24].mxu0 %v7428_v2  ;;  %4200 = vmatmul.mubr.f32.vlgmr.msra.gmra.mrb[20].mxu1 %v7428_v2 }
 0xd4d   :  { %v4059_v12 = vpop.f32.mrb[24].mxu0  ;;  %v4201_v13 = vpop.f32.mrb[20].mxu1 }
 0xd4e   :  { %v4206_v14 = vmul.f32 0.001953125, %v4059_v12  ;;  %v4208_v15 = vmul.f32 0.001953125, %v4201_v13  ;;  %v4061_v0 = vpop.f32.mrb[25].mxu0  ;;  %v4203_v43 = vpop.f32.mrb[21].mxu1 }
 0xd4f   :  { %v4207_v35 = vmul.f32 0.001953125, %v4061_v0  ;;  %v4209_v56 = vmul.f32 0.001953125, %v4203_v43 }
 0xd50   :  { %v4210_v17 = vmul.f32 %v4206_v14, %v4206_v14  ;;  %v4212_v37 = vmul.f32 %v4208_v15, %v4208_v15 }
 0xd51   :  { %v4211_v10 = vmul.f32 %v4207_v35, %v4207_v35  ;;  %v4213_v46 = vmul.f32 %v4209_v56, %v4209_v56 }
 0xd52   :  { %v4218_v19 = vrot.slane %v4210_v17, 7  ;;  %v4220_v24 = vrot.slane %v4212_v37, 7 }
 0xd53   :  { %v4219_v25 = vrot.slane %v4211_v10, 7  ;;  %v4221_v26 = vrot.slane %v4213_v46, 7 }
 0xd54   :  { %v4226_v28 = vsub.f32 %v4206_v14, %v4218_v19  ;;  %v4228_v16 = vsub.f32 %v4208_v15, %v4220_v24 }
 0xd55   :  { %v4227_v30 = vsub.f32 %v4207_v35, %v4219_v25  ;;  %v4229_v2 = vsub.f32 %v4209_v56, %v4221_v26 }
 0xd56   :  { %v4230_v33 = vmax.f32 %v4226_v28, 0.0  ;;  %v4232_v36 = vmax.f32 %v4228_v16, 0.0 }
 0xd57   :  { %v4231_v18 = vmax.f32 %v4227_v30, 0.0  ;;  %v4233_v39 = vmax.f32 %v4229_v2, 0.0 }
 0xd58   :  { %v4234_v1 = vadd.f32 1e-05, %v4230_v33  ;;  %v4236_v40 = vadd.f32 1e-05, %v4232_v36 }
 0xd59   :  { %v4235_v42 = vadd.f32 1e-05, %v4231_v18  ;;  %v4237_v44 = vadd.f32 1e-05, %v4233_v39 }
 0xd5a   :  { %6376 = vrsqrt.f32 %v4234_v1 }
 0xd5b   :  { %6378 = vrsqrt.f32 %v4236_v40 }
 0xd5c   :  { %6380 = vrsqrt.f32 %v4235_v42 }
 0xd5d   :  { %6382 = vrsqrt.f32 %v4237_v44 }
 0xd64   :  { %v6377_v59 = vpop.eup %6376 }
 0xd65   :  { %v6379_v49 = vpop.eup %6378 }
 0xd66   :  { %v6381_v52 = vpop.eup %6380 }
 0xd67   :  { %v6383_v53 = vpop.eup %6382  ;;  %v4246_v55 = vcombine.low %v6377_v59, %v6381_v52 }
 0xd68   :  { %v4247_v4 = vcombine.low %v6379_v49, %v6383_v53 }
 0xd69   :  { %v4254_v58 = vrot.slane %v4246_v55, %v4253_v51 }
 0xd6a   :  { %v4261_v60 = vrot.slane %v4247_v4, %v4253_v51 }
 0xd6c   :  { %v4262_v5 = vcombine.high %v4254_v58, %v4261_v60 }
 0xd6e   :  { %v4269_v34 = vrot.slane %v4262_v5, %v4253_v51 }
 0xd70   :  { %v4271_v27 = vmul.f32 %v4269_v34, %v3596_v7 }
 0xd72   :  { %v4276_v61 = vrot.slane %v4271_v27, %v6771_v54  ;;  %v4280_v62 = vrot.slane %v4271_v27, %v4279_v38  ;;  %v4284_v63 = vrot.slane %v4271_v27, %v4283_v41  ;;  %v4288_v3 = vrot.slane %v4271_v27, %v4287_v57 }
 0xd74   :  { %v4293_v6 = vmul.f32 %v4276_v61, %v4206_v14  ;;  %v4294_v8 = vmul.f32 %v4280_v62, %v4207_v35  ;;  %v4295_v9 = vmul.f32 %v4284_v63, %v4208_v15  ;;  %v4296_v12 = vmul.f32 %v4288_v3, %v4209_v56 }
 0xd75   :  { %v4327_v13 = vmul.f32 %v4276_v61, %v7386_v20  ;;  %v4328_v0 = vmul.f32 %v4280_v62, %v7390_v22  ;;  %v4329_v43 = vmul.f32 %v4284_v63, %v7388_v21  ;;  %v4330_v17 = vmul.f32 %v4288_v3, %v7392_v23  ;;  %v3597_v20 = vld [vmem:[%s7485_s7] sm:$0xf] }
 0xd76   :  { %v4301_v37 = vcombine.low %v4293_v6, %v4294_v8  ;;  %v4302_v50 = vcombine.low %v4295_v9, %v4296_v12  ;;  %v4331_v10 = vmul.f32 %v4276_v61, %v7402_v29  ;;  %v4332_v46 = vmul.f32 %v4280_v62, %v7414_v32 }
 0xd77   :  { %v4333_v19 = vmul.f32 %v4284_v63, %v7404_v31  ;;  %v4334_v14 = vmul.f32 %v4288_v3, %v7416_v11 }
 0xd78   :  { %v4309_v15 = vrot.slane %v4301_v37, %v4253_v51  ;;  %v4316_v35 = vrot.slane %v4302_v50, %v4253_v51 }
 0xd7a   :  { %v4317_v56 = vcombine.low %v4309_v15, %v4316_v35 }
 0xd7c   :  { %v4324_v21 = vrot.slane %v4317_v56, %v4253_v51 }
 0xd7e   :  { %v4326_v22 = vsub.f32 %v3597_v20, %v4324_v21 }
 0xd80   :  { %v4339_v23 = vrot.slane %v4326_v22, %v6771_v54  ;;  %v4343_v24 = vrot.slane %v4326_v22, %v4279_v38  ;;  %v4347_v25 = vrot.slane %v4326_v22, %v4283_v41  ;;  %v4351_v29 = vrot.slane %v4326_v22, %v4287_v57 }
 0xd82   :  { %v4356_v26 = vadd.f32 %v4339_v23, %v4327_v13  ;;  %v4357_v32 = vadd.f32 %v4343_v24, %v4328_v0  ;;  %v4358_v28 = vadd.f32 %v4347_v25, %v4329_v43  ;;  %v4359_v31 = vadd.f32 %v4351_v29, %v4330_v17 }
 0xd83   :  { %v4360_v16 = vadd.f32 %v4339_v23, %v4331_v10  ;;  %v4361_v11 = vadd.f32 %v4343_v24, %v4332_v46  ;;  %v4362_v30 = vadd.f32 %v4347_v25, %v4333_v19  ;;  %v4363_v2 = vadd.f32 %v4351_v29, %v4334_v14 }
 0xd84   :  { %v4364_v33 = vmul.f32 0.5, %v4356_v26  ;;  %v4365_v36 = vmul.f32 0.5, %v4357_v32  ;;  %v4366_v18 = vmul.f32 0.5, %v4358_v28  ;;  %v4367_v39 = vmul.f32 0.5, %v4359_v31 }
 0xd85   :  { %v4368_v1 = vmul.f32 0.5, %v4360_v16  ;;  %v4369_v40 = vmul.f32 0.5, %v4361_v11  ;;  %v4370_v54 = vmul.f32 0.5, %v4362_v30  ;;  %v4371_v42 = vmul.f32 0.5, %v4363_v2 }
 0xd86   :  { %6384 = vtanh.f32 %v4364_v33 }
 0xd87   :  { %6386 = vtanh.f32 %v4365_v36 }
 0xd88   :  { %6388 = vtanh.f32 %v4366_v18 }
 0xd89   :  { %6390 = vtanh.f32 %v4367_v39 }
 0xd8a   :  { %6392 = vtanh.f32 %v4368_v1 }
 0xd8b   :  { %6394 = vtanh.f32 %v4369_v40 }
 0xd8c   :  { %6396 = vtanh.f32 %v4370_v54 }
 0xd8d   :  { %6398 = vtanh.f32 %v4371_v42 }
 0xd90   :  { %v6385_v44 = vpop.eup %6384 }
 0xd91   :  { %v6387_v45 = vpop.eup %6386  ;;  %v4380_v47 = vmul.f32 0.5, %v6385_v44 }
 0xd92   :  { %v6389_v48 = vpop.eup %6388  ;;  %v4381_v59 = vmul.f32 0.5, %v6387_v45 }
 0xd93   :  { %v6391_v49 = vpop.eup %6390  ;;  %v4382_v51 = vmul.f32 0.5, %v6389_v48  ;;  %v4388_v52 = vadd.f32 0.5, %v4380_v47 }
 0xd94   :  { %v6393_v53 = vpop.eup %6392  ;;  %v4383_v55 = vmul.f32 0.5, %v6391_v49  ;;  %v4389_v4 = vadd.f32 0.5, %v4381_v59 }
 0xd95   :  { %v6395_v58 = vpop.eup %6394  ;;  %v4384_v60 = vmul.f32 0.5, %v6393_v53  ;;  %v4390_v5 = vadd.f32 0.5, %v4382_v51  ;;  %v4396_v7 = vmul.f32 %v4388_v52, %v4356_v26 }
 0xd96   :  { %v6397_v34 = vpop.eup %6396  ;;  %v4385_v38 = vmul.f32 0.5, %v6395_v58  ;;  %v4391_v41 = vadd.f32 0.5, %v4383_v55  ;;  %v4397_v57 = vmul.f32 %v4389_v4, %v4357_v32 }
 0xd97   :  { %v6399_v27 = vpop.eup %6398  ;;  %v4386_v61 = vmul.f32 0.5, %v6397_v34  ;;  %v4392_v62 = vadd.f32 0.5, %v4384_v60  ;;  %v4398_v63 = vmul.f32 %v4390_v5, %v4358_v28  ;;  %4404 = vst [vmem:[%s7488_s10] sm:$0xff] %v4396_v7 }
 0xd98   :  { %v4387_v3 = vmul.f32 0.5, %v6399_v27  ;;  %v4393_v6 = vadd.f32 0.5, %v4385_v38  ;;  %v4399_v8 = vmul.f32 %v4391_v41, %v4359_v31  ;;  %4405 = vst [vmem:[%s7488_s10 + $0x8] sm:$0xff] %v4397_v57 }
 0xd99   :  { %v4394_v9 = vadd.f32 0.5, %v4386_v61  ;;  %v4400_v12 = vmul.f32 %v4392_v62, %v4360_v16  ;;  %4406 = vst [vmem:[%s7488_s10 + $0x10] sm:$0xff] %v4398_v63 }
 0xd9a   :  { %v4395_v13 = vadd.f32 0.5, %v4387_v3  ;;  %v4401_v0 = vmul.f32 %v4393_v6, %v4361_v11  ;;  %4407 = vst [vmem:[%s7488_s10 + $0x18] sm:$0xff] %v4399_v8 }
 0xd9b   :  { %v4402_v43 = vmul.f32 %v4394_v9, %v4362_v30  ;;  %4408 = vst [vmem:[%s7488_s10 + $0x20] sm:$0xff] %v4400_v12 }
 0xd9c   :  { %v4403_v17 = vmul.f32 %v4395_v13, %v4363_v2  ;;  %4409 = vst [vmem:[%s7488_s10 + $0x28] sm:$0xff] %v4401_v0 }
 0xd9d   :  { %4410 = vst [vmem:[%s7488_s10 + $0x30] sm:$0xff] %v4402_v43 }
 0xd9e   :  { %4411 = vst [vmem:[%s7488_s10 + $0x38] sm:$0xff] %v4403_v17 }
 0xd9f   :  { %4416 = vsyncpa [#allocation3], 1 }
 0xda0   :  { %4417 = vsyncpa [#allocation5], 1 }
 0xda1   :  { %4418 = vsyncpa [#allocation8], 1 }

</bundles_post_ra>
